<compile_context>
chip_gen: v5e
topology: v5e:2x2
jax: 0.10.0
libtpu: 0.0.40
codegen_flags: <defaults>
</compile_context>

<pallas_src>
import jax
import jax.numpy as jnp
from jax.experimental import pallas as pl
from jax.experimental.pallas import tpu as pltpu

NUM_LABELS = 13
LABEL_PAD = 128          # lane-dense decoder output (sliced back to 13 in wrapper)


def _make_kernel(T, B, H):
    """Single-shot LSTM recurrence over T steps, mean-pooled, decoded, sigmoid.

    Fused gate column order is [i | f | o | g] so one sigmoid covers the
    contiguous i/f/o slab and one tanh covers g.
    (PyTorch's packed order is [i, f, g, o] -- permute columns if importing a
    torch state_dict.)
    """

    def kernel(gx_ref, h0_ref, c0_ref, whh_ref, wdec_ref, bdec_ref,
               dec_ref, hT_ref, cT_ref):
        whh = whh_ref[...]                         # (H, 4H) bf16, hoisted once
        h = h0_ref[...]                            # (B, H) f32
        c = c0_ref[...]                            # (B, H) f32
        h_bf = h.astype(whh.dtype)                 # bf16 shadow feeding the MXU
        acc = jnp.zeros((B, H), jnp.float32)       # sum of outputs (for mean)

        # Fully-unrolled serial recurrence: static slices, no masking, no grid.
        for t in range(T):
            gx_t = gx_ref[pl.ds(t * B, B), :]      # (B, 4H) f32: precomputed x@W_ih
            gh = jnp.dot(h_bf, whh, preferred_element_type=jnp.float32)
            gates = gx_t + gh                      # (B, 4H) f32, one 128-lane vreg/row

            sig = jax.nn.sigmoid(gates)            # full-width EUP pass: [i|f|o|.]
            g_g = jnp.tanh(gates[:, 3 * H:])       # g
            i_g = sig[:, 0:H]
            f_g = sig[:, H:2 * H]
            o_g = sig[:, 2 * H:3 * H]

            c = f_g * c + i_g * g_g
            h = o_g * jnp.tanh(c)
            h_bf = h.astype(whh.dtype)             # off the f32 accumulate path
            acc = acc + h

        mean_out = acc * (1.0 / T)                 # torch.mean(output, 0)
        logits = jnp.dot(mean_out.astype(wdec_ref.dtype), wdec_ref[...],
                         preferred_element_type=jnp.float32) + bdec_ref[...]
        dec_ref[...] = jax.nn.sigmoid(logits)      # nn.Sigmoid()
        hT_ref[...] = h
        cT_ref[...] = c

    return kernel


def rnn_model_forward(tokens, h0, c0, params):
    """tokens: (T, B) int32; h0/c0: (1, B, H). Returns (decoded, (hT, cT))."""
    T, B = tokens.shape
    H = params["whh"].shape[0]

    # Pre-projected embedding table (V, 4H); exact because the LSTM has no
    # input bias. Precomputed at init; recomputed here only if absent.
    gx_table = params.get("gx_table")
    if gx_table is None:
        gx_table = jnp.dot(params["embedding"].astype(jnp.bfloat16),
                           params["wih"], preferred_element_type=jnp.float32)

    # Gather pre-activations for the whole sequence: (T*B, 4H) f32, lane-dense.
    # TODO(synk): could move this gather in-kernel via scalar-prefetched tokens
    # in SMEM + a VMEM-resident gx_table to drop the separate XLA gather HLO.
    gx = jnp.take(gx_table, tokens.reshape(-1), axis=0)

    h0_2d = h0.reshape(B, H).astype(jnp.float32)
    c0_2d = c0.reshape(B, H).astype(jnp.float32)

    kernel = _make_kernel(T, B, H)
    vmem = pl.BlockSpec(memory_space=pltpu.MemorySpace.VMEM)

    dec_pad, hT, cT = pl.pallas_call(
        kernel,
        out_shape=(
            jax.ShapeDtypeStruct((B, LABEL_PAD), jnp.float32),
            jax.ShapeDtypeStruct((B, H), jnp.float32),
            jax.ShapeDtypeStruct((B, H), jnp.float32),
        ),
        in_specs=[vmem] * 6,
        out_specs=(vmem, vmem, vmem),
    )(gx, h0_2d, c0_2d, params["whh"], params["wdec"], params["bdec"])

    decoded = dec_pad[:, :NUM_LABELS]
    return decoded, (hT.reshape(1, B, H), cT.reshape(1, B, H))


def init_params(key, vocab_size, embedding_dim, hidden_size):
    """Deterministic init mirroring the PyTorch module's init_weights / defaults."""
    k_emb, k_wih, k_whh, k_dec = jax.random.split(key, 4)
    initrange = 0.1
    E, H = embedding_dim, hidden_size

    embedding = jax.random.uniform(k_emb, (vocab_size, E), jnp.float32,
                                   -initrange, initrange)

    # PyTorch LSTM default init: uniform(-1/sqrt(H), 1/sqrt(H)), bias=False here.
    # Fused gate weights, column order [i | f | o | g], stored transposed so the
    # kernel computes h @ W_hh directly. bf16 = MXU-native input dtype.
    bound = 1.0 / (H ** 0.5)
    wih = jax.random.uniform(k_wih, (E, 4 * H), jnp.float32, -bound, bound)
    whh = jax.random.uniform(k_whh, (H, 4 * H), jnp.float32, -bound, bound)

    # Decoder: weight uniform(-0.1, 0.1), bias = 0; padded to 128 lanes.
    wdec_core = jax.random.uniform(k_dec, (H, NUM_LABELS), jnp.float32,
                                   -initrange, initrange)
    wdec = jnp.zeros((H, LABEL_PAD), jnp.float32).at[:, :NUM_LABELS].set(wdec_core)
    bdec = jnp.zeros((1, LABEL_PAD), jnp.float32)

    wih_bf = wih.astype(jnp.bfloat16)
    # Pre-projected embedding table: Embedding followed by x @ W_ih (no bias)
    # is exactly a row lookup in emb @ W_ih.
    gx_table = jnp.dot(embedding.astype(jnp.bfloat16), wih_bf,
                       preferred_element_type=jnp.float32)        # (V, 4H) f32

    return {
        "embedding": embedding,
        "wih": wih_bf,
        "whh": whh.astype(jnp.bfloat16),
        "wdec": wdec.astype(jnp.bfloat16),
        "bdec": bdec,
        "gx_table": gx_table,
    }


if __name__ == "__main__":
    # rnn_type='LSTM', num_layers=1, bidirectional=False.
    # TODO(synk): dropout=0.5 has no effect with num_layers=1 (PyTorch applies it
    # only between stacked layers), so it is intentionally not modeled.
    vocab_size, embedding_dim, hidden_size = 50, 16, 32
    T, B = 36, 8

    key = jax.random.PRNGKey(0)
    k_params, k_tok = jax.random.split(key)
    params = init_params(k_params, vocab_size, embedding_dim, hidden_size)

    tokens = jax.random.randint(k_tok, (T, B), 0, vocab_size, dtype=jnp.int32)
    h0 = jnp.zeros((1, B, hidden_size), jnp.float32)   # init_hidden
    c0 = jnp.zeros((1, B, hidden_size), jnp.float32)

    forward = jax.jit(rnn_model_forward)
    decoded, (hT, cT) = forward(tokens, h0, c0, params)
    jax.block_until_ready((decoded, hT, cT))

    assert decoded.shape == (B, NUM_LABELS)
    assert hT.shape == (1, B, hidden_size) and cT.shape == (1, B, hidden_size)
    assert bool(jnp.all(jnp.isfinite(decoded)))
    assert bool(jnp.all((decoded >= 0.0) & (decoded <= 1.0)))
    print("KERNEL_OK")
</pallas_src>

<mosaic_0001>
module attributes {stable_mosaic.version = 11 : i64} {
  func.func @kernel(%arg0: memref<288x128xf32, #tpu.memory_space<vmem>>, %arg1: memref<8x32xf32, #tpu.memory_space<vmem>>, %arg2: memref<8x32xf32, #tpu.memory_space<vmem>>, %arg3: memref<32x128xbf16, #tpu.memory_space<vmem>>, %arg4: memref<32x128xbf16, #tpu.memory_space<vmem>>, %arg5: memref<1x128xf32, #tpu.memory_space<vmem>>, %arg6: memref<8x128xf32, #tpu.memory_space<vmem>>, %arg7: memref<8x32xf32, #tpu.memory_space<vmem>>, %arg8: memref<8x32xf32, #tpu.memory_space<vmem>>) attributes {dimension_semantics = [], scalar_prefetch = 0 : i64, scratch_operands = 0 : i64, tpu.core_type = #tpu.core_type<tc>} {
    %c0 = arith.constant 0 : index
    %c0_0 = arith.constant 0 : index
    %0 = vector.load %arg3[%c0, %c0_0] : memref<32x128xbf16, #tpu.memory_space<vmem>>, vector<32x128xbf16>
    %c0_1 = arith.constant 0 : index
    %c0_2 = arith.constant 0 : index
    %1 = vector.load %arg1[%c0_1, %c0_2] : memref<8x32xf32, #tpu.memory_space<vmem>>, vector<8x32xf32>
    %c0_3 = arith.constant 0 : index
    %c0_4 = arith.constant 0 : index
    %2 = vector.load %arg2[%c0_3, %c0_4] : memref<8x32xf32, #tpu.memory_space<vmem>>, vector<8x32xf32>
    %3 = arith.truncf %1 : vector<8x32xf32> to vector<8x32xbf16>
    %cst = arith.constant 0.000000e+00 : f32
    %4 = vector.broadcast %cst : f32 to vector<8x32xf32>
    %c0_5 = arith.constant 0 : index
    %c0_6 = arith.constant 0 : index
    %5 = vector.load %arg0[%c0_5, %c0_6] : memref<288x128xf32, #tpu.memory_space<vmem>>, vector<8x128xf32>
    %cst_7 = arith.constant dense<0.000000e+00> : vector<8x128xf32>
    %6 = tpu.matmul %3, %0, %cst_7 {dimension_numbers = #tpu.dot_dimension_numbers<[1], [0], [0], [1], [0, 0, 1, 1], [], []>} : vector<8x32xbf16>, vector<32x128xbf16>, vector<8x128xf32> -> vector<8x128xf32>
    %7 = arith.addf %5, %6 : vector<8x128xf32>
    %8 = arith.negf %7 : vector<8x128xf32>
    %9 = math.exp %8 : vector<8x128xf32>
    %cst_8 = arith.constant 1.000000e+00 : f32
    %10 = vector.broadcast %cst_8 : f32 to vector<8x128xf32>
    %11 = arith.addf %10, %9 : vector<8x128xf32>
    %12 = arith.divf %10, %11 : vector<8x128xf32>
    %13 = vector.extract_strided_slice %7 {offsets = [0, 96], sizes = [8, 32], strides = [1, 1]} : vector<8x128xf32> to vector<8x32xf32>
    %14 = math.tanh %13 : vector<8x32xf32>
    %15 = vector.extract_strided_slice %12 {offsets = [0, 0], sizes = [8, 32], strides = [1, 1]} : vector<8x128xf32> to vector<8x32xf32>
    %16 = vector.extract_strided_slice %12 {offsets = [0, 32], sizes = [8, 32], strides = [1, 1]} : vector<8x128xf32> to vector<8x32xf32>
    %17 = vector.extract_strided_slice %12 {offsets = [0, 64], sizes = [8, 32], strides = [1, 1]} : vector<8x128xf32> to vector<8x32xf32>
    %18 = arith.mulf %16, %2 : vector<8x32xf32>
    %19 = arith.mulf %15, %14 : vector<8x32xf32>
    %20 = arith.addf %18, %19 : vector<8x32xf32>
    %21 = math.tanh %20 : vector<8x32xf32>
    %22 = arith.mulf %17, %21 : vector<8x32xf32>
    %23 = arith.truncf %22 : vector<8x32xf32> to vector<8x32xbf16>
    %24 = arith.addf %4, %22 : vector<8x32xf32>
    %c8 = arith.constant 8 : index
    %c0_9 = arith.constant 0 : index
    %25 = vector.load %arg0[%c8, %c0_9] : memref<288x128xf32, #tpu.memory_space<vmem>>, vector<8x128xf32>
    %cst_10 = arith.constant dense<0.000000e+00> : vector<8x128xf32>
    %26 = tpu.matmul %23, %0, %cst_10 {dimension_numbers = #tpu.dot_dimension_numbers<[1], [0], [0], [1], [0, 0, 1, 1], [], []>} : vector<8x32xbf16>, vector<32x128xbf16>, vector<8x128xf32> -> vector<8x128xf32>
    %27 = arith.addf %25, %26 : vector<8x128xf32>
    %28 = arith.negf %27 : vector<8x128xf32>
    %29 = math.exp %28 : vector<8x128xf32>
    %cst_11 = arith.constant 1.000000e+00 : f32
    %30 = vector.broadcast %cst_11 : f32 to vector<8x128xf32>
    %31 = arith.addf %30, %29 : vector<8x128xf32>
    %32 = arith.divf %30, %31 : vector<8x128xf32>
    %33 = vector.extract_strided_slice %27 {offsets = [0, 96], sizes = [8, 32], strides = [1, 1]} : vector<8x128xf32> to vector<8x32xf32>
    %34 = math.tanh %33 : vector<8x32xf32>
    %35 = vector.extract_strided_slice %32 {offsets = [0, 0], sizes = [8, 32], strides = [1, 1]} : vector<8x128xf32> to vector<8x32xf32>
    %36 = vector.extract_strided_slice %32 {offsets = [0, 32], sizes = [8, 32], strides = [1, 1]} : vector<8x128xf32> to vector<8x32xf32>
    %37 = vector.extract_strided_slice %32 {offsets = [0, 64], sizes = [8, 32], strides = [1, 1]} : vector<8x128xf32> to vector<8x32xf32>
    %38 = arith.mulf %36, %20 : vector<8x32xf32>
    %39 = arith.mulf %35, %34 : vector<8x32xf32>
    %40 = arith.addf %38, %39 : vector<8x32xf32>
    %41 = math.tanh %40 : vector<8x32xf32>
    %42 = arith.mulf %37, %41 : vector<8x32xf32>
    %43 = arith.truncf %42 : vector<8x32xf32> to vector<8x32xbf16>
    %44 = arith.addf %24, %42 : vector<8x32xf32>
    %c16 = arith.constant 16 : index
    %c0_12 = arith.constant 0 : index
    %45 = vector.load %arg0[%c16, %c0_12] : memref<288x128xf32, #tpu.memory_space<vmem>>, vector<8x128xf32>
    %cst_13 = arith.constant dense<0.000000e+00> : vector<8x128xf32>
    %46 = tpu.matmul %43, %0, %cst_13 {dimension_numbers = #tpu.dot_dimension_numbers<[1], [0], [0], [1], [0, 0, 1, 1], [], []>} : vector<8x32xbf16>, vector<32x128xbf16>, vector<8x128xf32> -> vector<8x128xf32>
    %47 = arith.addf %45, %46 : vector<8x128xf32>
    %48 = arith.negf %47 : vector<8x128xf32>
    %49 = math.exp %48 : vector<8x128xf32>
    %cst_14 = arith.constant 1.000000e+00 : f32
    %50 = vector.broadcast %cst_14 : f32 to vector<8x128xf32>
    %51 = arith.addf %50, %49 : vector<8x128xf32>
    %52 = arith.divf %50, %51 : vector<8x128xf32>
    %53 = vector.extract_strided_slice %47 {offsets = [0, 96], sizes = [8, 32], strides = [1, 1]} : vector<8x128xf32> to vector<8x32xf32>
    %54 = math.tanh %53 : vector<8x32xf32>
    %55 = vector.extract_strided_slice %52 {offsets = [0, 0], sizes = [8, 32], strides = [1, 1]} : vector<8x128xf32> to vector<8x32xf32>
    %56 = vector.extract_strided_slice %52 {offsets = [0, 32], sizes = [8, 32], strides = [1, 1]} : vector<8x128xf32> to vector<8x32xf32>
    %57 = vector.extract_strided_slice %52 {offsets = [0, 64], sizes = [8, 32], strides = [1, 1]} : vector<8x128xf32> to vector<8x32xf32>
    %58 = arith.mulf %56, %40 : vector<8x32xf32>
    %59 = arith.mulf %55, %54 : vector<8x32xf32>
    %60 = arith.addf %58, %59 : vector<8x32xf32>
    %61 = math.tanh %60 : vector<8x32xf32>
    %62 = arith.mulf %57, %61 : vector<8x32xf32>
    %63 = arith.truncf %62 : vector<8x32xf32> to vector<8x32xbf16>
    %64 = arith.addf %44, %62 : vector<8x32xf32>
    %c24 = arith.constant 24 : index
    %c0_15 = arith.constant 0 : index
    %65 = vector.load %arg0[%c24, %c0_15] : memref<288x128xf32, #tpu.memory_space<vmem>>, vector<8x128xf32>
    %cst_16 = arith.constant dense<0.000000e+00> : vector<8x128xf32>
    %66 = tpu.matmul %63, %0, %cst_16 {dimension_numbers = #tpu.dot_dimension_numbers<[1], [0], [0], [1], [0, 0, 1, 1], [], []>} : vector<8x32xbf16>, vector<32x128xbf16>, vector<8x128xf32> -> vector<8x128xf32>
    %67 = arith.addf %65, %66 : vector<8x128xf32>
    %68 = arith.negf %67 : vector<8x128xf32>
    %69 = math.exp %68 : vector<8x128xf32>
    %cst_17 = arith.constant 1.000000e+00 : f32
    %70 = vector.broadcast %cst_17 : f32 to vector<8x128xf32>
    %71 = arith.addf %70, %69 : vector<8x128xf32>
    %72 = arith.divf %70, %71 : vector<8x128xf32>
    %73 = vector.extract_strided_slice %67 {offsets = [0, 96], sizes = [8, 32], strides = [1, 1]} : vector<8x128xf32> to vector<8x32xf32>
    %74 = math.tanh %73 : vector<8x32xf32>
    %75 = vector.extract_strided_slice %72 {offsets = [0, 0], sizes = [8, 32], strides = [1, 1]} : vector<8x128xf32> to vector<8x32xf32>
    %76 = vector.extract_strided_slice %72 {offsets = [0, 32], sizes = [8, 32], strides = [1, 1]} : vector<8x128xf32> to vector<8x32xf32>
    %77 = vector.extract_strided_slice %72 {offsets = [0, 64], sizes = [8, 32], strides = [1, 1]} : vector<8x128xf32> to vector<8x32xf32>
    %78 = arith.mulf %76, %60 : vector<8x32xf32>
    %79 = arith.mulf %75, %74 : vector<8x32xf32>
    %80 = arith.addf %78, %79 : vector<8x32xf32>
    %81 = math.tanh %80 : vector<8x32xf32>
    %82 = arith.mulf %77, %81 : vector<8x32xf32>
    %83 = arith.truncf %82 : vector<8x32xf32> to vector<8x32xbf16>
    %84 = arith.addf %64, %82 : vector<8x32xf32>
    %c32 = arith.constant 32 : index
    %c0_18 = arith.constant 0 : index
    %85 = vector.load %arg0[%c32, %c0_18] : memref<288x128xf32, #tpu.memory_space<vmem>>, vector<8x128xf32>
    %cst_19 = arith.constant dense<0.000000e+00> : vector<8x128xf32>
    %86 = tpu.matmul %83, %0, %cst_19 {dimension_numbers = #tpu.dot_dimension_numbers<[1], [0], [0], [1], [0, 0, 1, 1], [], []>} : vector<8x32xbf16>, vector<32x128xbf16>, vector<8x128xf32> -> vector<8x128xf32>
    %87 = arith.addf %85, %86 : vector<8x128xf32>
    %88 = arith.negf %87 : vector<8x128xf32>
    %89 = math.exp %88 : vector<8x128xf32>
    %cst_20 = arith.constant 1.000000e+00 : f32
    %90 = vector.broadcast %cst_20 : f32 to vector<8x128xf32>
    %91 = arith.addf %90, %89 : vector<8x128xf32>
    %92 = arith.divf %90, %91 : vector<8x128xf32>
    %93 = vector.extract_strided_slice %87 {offsets = [0, 96], sizes = [8, 32], strides = [1, 1]} : vector<8x128xf32> to vector<8x32xf32>
    %94 = math.tanh %93 : vector<8x32xf32>
    %95 = vector.extract_strided_slice %92 {offsets = [0, 0], sizes = [8, 32], strides = [1, 1]} : vector<8x128xf32> to vector<8x32xf32>
    %96 = vector.extract_strided_slice %92 {offsets = [0, 32], sizes = [8, 32], strides = [1, 1]} : vector<8x128xf32> to vector<8x32xf32>
    %97 = vector.extract_strided_slice %92 {offsets = [0, 64], sizes = [8, 32], strides = [1, 1]} : vector<8x128xf32> to vector<8x32xf32>
    %98 = arith.mulf %96, %80 : vector<8x32xf32>
    %99 = arith.mulf %95, %94 : vector<8x32xf32>
    %100 = arith.addf %98, %99 : vector<8x32xf32>
    %101 = math.tanh %100 : vector<8x32xf32>
    %102 = arith.mulf %97, %101 : vector<8x32xf32>
    %103 = arith.truncf %102 : vector<8x32xf32> to vector<8x32xbf16>
    %104 = arith.addf %84, %102 : vector<8x32xf32>
    %c40 = arith.constant 40 : index
    %c0_21 = arith.constant 0 : index
    %105 = vector.load %arg0[%c40, %c0_21] : memref<288x128xf32, #tpu.memory_space<vmem>>, vector<8x128xf32>
    %cst_22 = arith.constant dense<0.000000e+00> : vector<8x128xf32>
    %106 = tpu.matmul %103, %0, %cst_22 {dimension_numbers = #tpu.dot_dimension_numbers<[1], [0], [0], [1], [0, 0, 1, 1], [], []>} : vector<8x32xbf16>, vector<32x128xbf16>, vector<8x128xf32> -> vector<8x128xf32>
    %107 = arith.addf %105, %106 : vector<8x128xf32>
    %108 = arith.negf %107 : vector<8x128xf32>
    %109 = math.exp %108 : vector<8x128xf32>
    %cst_23 = arith.constant 1.000000e+00 : f32
    %110 = vector.broadcast %cst_23 : f32 to vector<8x128xf32>
    %111 = arith.addf %110, %109 : vector<8x128xf32>
    %112 = arith.divf %110, %111 : vector<8x128xf32>
    %113 = vector.extract_strided_slice %107 {offsets = [0, 96], sizes = [8, 32], strides = [1, 1]} : vector<8x128xf32> to vector<8x32xf32>
    %114 = math.tanh %113 : vector<8x32xf32>
    %115 = vector.extract_strided_slice %112 {offsets = [0, 0], sizes = [8, 32], strides = [1, 1]} : vector<8x128xf32> to vector<8x32xf32>
    %116 = vector.extract_strided_slice %112 {offsets = [0, 32], sizes = [8, 32], strides = [1, 1]} : vector<8x128xf32> to vector<8x32xf32>
    %117 = vector.extract_strided_slice %112 {offsets = [0, 64], sizes = [8, 32], strides = [1, 1]} : vector<8x128xf32> to vector<8x32xf32>
    %118 = arith.mulf %116, %100 : vector<8x32xf32>
    %119 = arith.mulf %115, %114 : vector<8x32xf32>
    %120 = arith.addf %118, %119 : vector<8x32xf32>
    %121 = math.tanh %120 : vector<8x32xf32>
    %122 = arith.mulf %117, %121 : vector<8x32xf32>
    %123 = arith.truncf %122 : vector<8x32xf32> to vector<8x32xbf16>
    %124 = arith.addf %104, %122 : vector<8x32xf32>
    %c48 = arith.constant 48 : index
    %c0_24 = arith.constant 0 : index
    %125 = vector.load %arg0[%c48, %c0_24] : memref<288x128xf32, #tpu.memory_space<vmem>>, vector<8x128xf32>
    %cst_25 = arith.constant dense<0.000000e+00> : vector<8x128xf32>
    %126 = tpu.matmul %123, %0, %cst_25 {dimension_numbers = #tpu.dot_dimension_numbers<[1], [0], [0], [1], [0, 0, 1, 1], [], []>} : vector<8x32xbf16>, vector<32x128xbf16>, vector<8x128xf32> -> vector<8x128xf32>
    %127 = arith.addf %125, %126 : vector<8x128xf32>
    %128 = arith.negf %127 : vector<8x128xf32>
    %129 = math.exp %128 : vector<8x128xf32>
    %cst_26 = arith.constant 1.000000e+00 : f32
    %130 = vector.broadcast %cst_26 : f32 to vector<8x128xf32>
    %131 = arith.addf %130, %129 : vector<8x128xf32>
    %132 = arith.divf %130, %131 : vector<8x128xf32>
    %133 = vector.extract_strided_slice %127 {offsets = [0, 96], sizes = [8, 32], strides = [1, 1]} : vector<8x128xf32> to vector<8x32xf32>
    %134 = math.tanh %133 : vector<8x32xf32>
    %135 = vector.extract_strided_slice %132 {offsets = [0, 0], sizes = [8, 32], strides = [1, 1]} : vector<8x128xf32> to vector<8x32xf32>
    %136 = vector.extract_strided_slice %132 {offsets = [0, 32], sizes = [8, 32], strides = [1, 1]} : vector<8x128xf32> to vector<8x32xf32>
    %137 = vector.extract_strided_slice %132 {offsets = [0, 64], sizes = [8, 32], strides = [1, 1]} : vector<8x128xf32> to vector<8x32xf32>
    %138 = arith.mulf %136, %120 : vector<8x32xf32>
    %139 = arith.mulf %135, %134 : vector<8x32xf32>
    %140 = arith.addf %138, %139 : vector<8x32xf32>
    %141 = math.tanh %140 : vector<8x32xf32>
    %142 = arith.mulf %137, %141 : vector<8x32xf32>
    %143 = arith.truncf %142 : vector<8x32xf32> to vector<8x32xbf16>
    %144 = arith.addf %124, %142 : vector<8x32xf32>
    %c56 = arith.constant 56 : index
    %c0_27 = arith.constant 0 : index
    %145 = vector.load %arg0[%c56, %c0_27] : memref<288x128xf32, #tpu.memory_space<vmem>>, vector<8x128xf32>
    %cst_28 = arith.constant dense<0.000000e+00> : vector<8x128xf32>
    %146 = tpu.matmul %143, %0, %cst_28 {dimension_numbers = #tpu.dot_dimension_numbers<[1], [0], [0], [1], [0, 0, 1, 1], [], []>} : vector<8x32xbf16>, vector<32x128xbf16>, vector<8x128xf32> -> vector<8x128xf32>
    %147 = arith.addf %145, %146 : vector<8x128xf32>
    %148 = arith.negf %147 : vector<8x128xf32>
    %149 = math.exp %148 : vector<8x128xf32>
    %cst_29 = arith.constant 1.000000e+00 : f32
    %150 = vector.broadcast %cst_29 : f32 to vector<8x128xf32>
    %151 = arith.addf %150, %149 : vector<8x128xf32>
    %152 = arith.divf %150, %151 : vector<8x128xf32>
    %153 = vector.extract_strided_slice %147 {offsets = [0, 96], sizes = [8, 32], strides = [1, 1]} : vector<8x128xf32> to vector<8x32xf32>
    %154 = math.tanh %153 : vector<8x32xf32>
    %155 = vector.extract_strided_slice %152 {offsets = [0, 0], sizes = [8, 32], strides = [1, 1]} : vector<8x128xf32> to vector<8x32xf32>
    %156 = vector.extract_strided_slice %152 {offsets = [0, 32], sizes = [8, 32], strides = [1, 1]} : vector<8x128xf32> to vector<8x32xf32>
    %157 = vector.extract_strided_slice %152 {offsets = [0, 64], sizes = [8, 32], strides = [1, 1]} : vector<8x128xf32> to vector<8x32xf32>
    %158 = arith.mulf %156, %140 : vector<8x32xf32>
    %159 = arith.mulf %155, %154 : vector<8x32xf32>
    %160 = arith.addf %158, %159 : vector<8x32xf32>
    %161 = math.tanh %160 : vector<8x32xf32>
    %162 = arith.mulf %157, %161 : vector<8x32xf32>
    %163 = arith.truncf %162 : vector<8x32xf32> to vector<8x32xbf16>
    %164 = arith.addf %144, %162 : vector<8x32xf32>
    %c64 = arith.constant 64 : index
    %c0_30 = arith.constant 0 : index
    %165 = vector.load %arg0[%c64, %c0_30] : memref<288x128xf32, #tpu.memory_space<vmem>>, vector<8x128xf32>
    %cst_31 = arith.constant dense<0.000000e+00> : vector<8x128xf32>
    %166 = tpu.matmul %163, %0, %cst_31 {dimension_numbers = #tpu.dot_dimension_numbers<[1], [0], [0], [1], [0, 0, 1, 1], [], []>} : vector<8x32xbf16>, vector<32x128xbf16>, vector<8x128xf32> -> vector<8x128xf32>
    %167 = arith.addf %165, %166 : vector<8x128xf32>
    %168 = arith.negf %167 : vector<8x128xf32>
    %169 = math.exp %168 : vector<8x128xf32>
    %cst_32 = arith.constant 1.000000e+00 : f32
    %170 = vector.broadcast %cst_32 : f32 to vector<8x128xf32>
    %171 = arith.addf %170, %169 : vector<8x128xf32>
    %172 = arith.divf %170, %171 : vector<8x128xf32>
    %173 = vector.extract_strided_slice %167 {offsets = [0, 96], sizes = [8, 32], strides = [1, 1]} : vector<8x128xf32> to vector<8x32xf32>
    %174 = math.tanh %173 : vector<8x32xf32>
    %175 = vector.extract_strided_slice %172 {offsets = [0, 0], sizes = [8, 32], strides = [1, 1]} : vector<8x128xf32> to vector<8x32xf32>
    %176 = vector.extract_strided_slice %172 {offsets = [0, 32], sizes = [8, 32], strides = [1, 1]} : vector<8x128xf32> to vector<8x32xf32>
    %177 = vector.extract_strided_slice %172 {offsets = [0, 64], sizes = [8, 32], strides = [1, 1]} : vector<8x128xf32> to vector<8x32xf32>
    %178 = arith.mulf %176, %160 : vector<8x32xf32>
    %179 = arith.mulf %175, %174 : vector<8x32xf32>
    %180 = arith.addf %178, %179 : vector<8x32xf32>
    %181 = math.tanh %180 : vector<8x32xf32>
    %182 = arith.mulf %177, %181 : vector<8x32xf32>
    %183 = arith.truncf %182 : vector<8x32xf32> to vector<8x32xbf16>
    %184 = arith.addf %164, %182 : vector<8x32xf32>
    %c72 = arith.constant 72 : index
    %c0_33 = arith.constant 0 : index
    %185 = vector.load %arg0[%c72, %c0_33] : memref<288x128xf32, #tpu.memory_space<vmem>>, vector<8x128xf32>
    %cst_34 = arith.constant dense<0.000000e+00> : vector<8x128xf32>
    %186 = tpu.matmul %183, %0, %cst_34 {dimension_numbers = #tpu.dot_dimension_numbers<[1], [0], [0], [1], [0, 0, 1, 1], [], []>} : vector<8x32xbf16>, vector<32x128xbf16>, vector<8x128xf32> -> vector<8x128xf32>
    %187 = arith.addf %185, %186 : vector<8x128xf32>
    %188 = arith.negf %187 : vector<8x128xf32>
    %189 = math.exp %188 : vector<8x128xf32>
    %cst_35 = arith.constant 1.000000e+00 : f32
    %190 = vector.broadcast %cst_35 : f32 to vector<8x128xf32>
    %191 = arith.addf %190, %189 : vector<8x128xf32>
    %192 = arith.divf %190, %191 : vector<8x128xf32>
    %193 = vector.extract_strided_slice %187 {offsets = [0, 96], sizes = [8, 32], strides = [1, 1]} : vector<8x128xf32> to vector<8x32xf32>
    %194 = math.tanh %193 : vector<8x32xf32>
    %195 = vector.extract_strided_slice %192 {offsets = [0, 0], sizes = [8, 32], strides = [1, 1]} : vector<8x128xf32> to vector<8x32xf32>
    %196 = vector.extract_strided_slice %192 {offsets = [0, 32], sizes = [8, 32], strides = [1, 1]} : vector<8x128xf32> to vector<8x32xf32>
    %197 = vector.extract_strided_slice %192 {offsets = [0, 64], sizes = [8, 32], strides = [1, 1]} : vector<8x128xf32> to vector<8x32xf32>
    %198 = arith.mulf %196, %180 : vector<8x32xf32>
    %199 = arith.mulf %195, %194 : vector<8x32xf32>
    %200 = arith.addf %198, %199 : vector<8x32xf32>
    %201 = math.tanh %200 : vector<8x32xf32>
    %202 = arith.mulf %197, %201 : vector<8x32xf32>
    %203 = arith.truncf %202 : vector<8x32xf32> to vector<8x32xbf16>
    %204 = arith.addf %184, %202 : vector<8x32xf32>
    %c80 = arith.constant 80 : index
    %c0_36 = arith.constant 0 : index
    %205 = vector.load %arg0[%c80, %c0_36] : memref<288x128xf32, #tpu.memory_space<vmem>>, vector<8x128xf32>
    %cst_37 = arith.constant dense<0.000000e+00> : vector<8x128xf32>
    %206 = tpu.matmul %203, %0, %cst_37 {dimension_numbers = #tpu.dot_dimension_numbers<[1], [0], [0], [1], [0, 0, 1, 1], [], []>} : vector<8x32xbf16>, vector<32x128xbf16>, vector<8x128xf32> -> vector<8x128xf32>
    %207 = arith.addf %205, %206 : vector<8x128xf32>
    %208 = arith.negf %207 : vector<8x128xf32>
    %209 = math.exp %208 : vector<8x128xf32>
    %cst_38 = arith.constant 1.000000e+00 : f32
    %210 = vector.broadcast %cst_38 : f32 to vector<8x128xf32>
    %211 = arith.addf %210, %209 : vector<8x128xf32>
    %212 = arith.divf %210, %211 : vector<8x128xf32>
    %213 = vector.extract_strided_slice %207 {offsets = [0, 96], sizes = [8, 32], strides = [1, 1]} : vector<8x128xf32> to vector<8x32xf32>
    %214 = math.tanh %213 : vector<8x32xf32>
    %215 = vector.extract_strided_slice %212 {offsets = [0, 0], sizes = [8, 32], strides = [1, 1]} : vector<8x128xf32> to vector<8x32xf32>
    %216 = vector.extract_strided_slice %212 {offsets = [0, 32], sizes = [8, 32], strides = [1, 1]} : vector<8x128xf32> to vector<8x32xf32>
    %217 = vector.extract_strided_slice %212 {offsets = [0, 64], sizes = [8, 32], strides = [1, 1]} : vector<8x128xf32> to vector<8x32xf32>
    %218 = arith.mulf %216, %200 : vector<8x32xf32>
    %219 = arith.mulf %215, %214 : vector<8x32xf32>
    %220 = arith.addf %218, %219 : vector<8x32xf32>
    %221 = math.tanh %220 : vector<8x32xf32>
    %222 = arith.mulf %217, %221 : vector<8x32xf32>
    %223 = arith.truncf %222 : vector<8x32xf32> to vector<8x32xbf16>
    %224 = arith.addf %204, %222 : vector<8x32xf32>
    %c88 = arith.constant 88 : index
    %c0_39 = arith.constant 0 : index
    %225 = vector.load %arg0[%c88, %c0_39] : memref<288x128xf32, #tpu.memory_space<vmem>>, vector<8x128xf32>
    %cst_40 = arith.constant dense<0.000000e+00> : vector<8x128xf32>
    %226 = tpu.matmul %223, %0, %cst_40 {dimension_numbers = #tpu.dot_dimension_numbers<[1], [0], [0], [1], [0, 0, 1, 1], [], []>} : vector<8x32xbf16>, vector<32x128xbf16>, vector<8x128xf32> -> vector<8x128xf32>
    %227 = arith.addf %225, %226 : vector<8x128xf32>
    %228 = arith.negf %227 : vector<8x128xf32>
    %229 = math.exp %228 : vector<8x128xf32>
    %cst_41 = arith.constant 1.000000e+00 : f32
    %230 = vector.broadcast %cst_41 : f32 to vector<8x128xf32>
    %231 = arith.addf %230, %229 : vector<8x128xf32>
    %232 = arith.divf %230, %231 : vector<8x128xf32>
    %233 = vector.extract_strided_slice %227 {offsets = [0, 96], sizes = [8, 32], strides = [1, 1]} : vector<8x128xf32> to vector<8x32xf32>
    %234 = math.tanh %233 : vector<8x32xf32>
    %235 = vector.extract_strided_slice %232 {offsets = [0, 0], sizes = [8, 32], strides = [1, 1]} : vector<8x128xf32> to vector<8x32xf32>
    %236 = vector.extract_strided_slice %232 {offsets = [0, 32], sizes = [8, 32], strides = [1, 1]} : vector<8x128xf32> to vector<8x32xf32>
    %237 = vector.extract_strided_slice %232 {offsets = [0, 64], sizes = [8, 32], strides = [1, 1]} : vector<8x128xf32> to vector<8x32xf32>
    %238 = arith.mulf %236, %220 : vector<8x32xf32>
    %239 = arith.mulf %235, %234 : vector<8x32xf32>
    %240 = arith.addf %238, %239 : vector<8x32xf32>
    %241 = math.tanh %240 : vector<8x32xf32>
    %242 = arith.mulf %237, %241 : vector<8x32xf32>
    %243 = arith.truncf %242 : vector<8x32xf32> to vector<8x32xbf16>
    %244 = arith.addf %224, %242 : vector<8x32xf32>
    %c96 = arith.constant 96 : index
    %c0_42 = arith.constant 0 : index
    %245 = vector.load %arg0[%c96, %c0_42] : memref<288x128xf32, #tpu.memory_space<vmem>>, vector<8x128xf32>
    %cst_43 = arith.constant dense<0.000000e+00> : vector<8x128xf32>
    %246 = tpu.matmul %243, %0, %cst_43 {dimension_numbers = #tpu.dot_dimension_numbers<[1], [0], [0], [1], [0, 0, 1, 1], [], []>} : vector<8x32xbf16>, vector<32x128xbf16>, vector<8x128xf32> -> vector<8x128xf32>
    %247 = arith.addf %245, %246 : vector<8x128xf32>
    %248 = arith.negf %247 : vector<8x128xf32>
    %249 = math.exp %248 : vector<8x128xf32>
    %cst_44 = arith.constant 1.000000e+00 : f32
    %250 = vector.broadcast %cst_44 : f32 to vector<8x128xf32>
    %251 = arith.addf %250, %249 : vector<8x128xf32>
    %252 = arith.divf %250, %251 : vector<8x128xf32>
    %253 = vector.extract_strided_slice %247 {offsets = [0, 96], sizes = [8, 32], strides = [1, 1]} : vector<8x128xf32> to vector<8x32xf32>
    %254 = math.tanh %253 : vector<8x32xf32>
    %255 = vector.extract_strided_slice %252 {offsets = [0, 0], sizes = [8, 32], strides = [1, 1]} : vector<8x128xf32> to vector<8x32xf32>
    %256 = vector.extract_strided_slice %252 {offsets = [0, 32], sizes = [8, 32], strides = [1, 1]} : vector<8x128xf32> to vector<8x32xf32>
    %257 = vector.extract_strided_slice %252 {offsets = [0, 64], sizes = [8, 32], strides = [1, 1]} : vector<8x128xf32> to vector<8x32xf32>
    %258 = arith.mulf %256, %240 : vector<8x32xf32>
    %259 = arith.mulf %255, %254 : vector<8x32xf32>
    %260 = arith.addf %258, %259 : vector<8x32xf32>
    %261 = math.tanh %260 : vector<8x32xf32>
    %262 = arith.mulf %257, %261 : vector<8x32xf32>
    %263 = arith.truncf %262 : vector<8x32xf32> to vector<8x32xbf16>
    %264 = arith.addf %244, %262 : vector<8x32xf32>
    %c104 = arith.constant 104 : index
    %c0_45 = arith.constant 0 : index
    %265 = vector.load %arg0[%c104, %c0_45] : memref<288x128xf32, #tpu.memory_space<vmem>>, vector<8x128xf32>
    %cst_46 = arith.constant dense<0.000000e+00> : vector<8x128xf32>
    %266 = tpu.matmul %263, %0, %cst_46 {dimension_numbers = #tpu.dot_dimension_numbers<[1], [0], [0], [1], [0, 0, 1, 1], [], []>} : vector<8x32xbf16>, vector<32x128xbf16>, vector<8x128xf32> -> vector<8x128xf32>
    %267 = arith.addf %265, %266 : vector<8x128xf32>
    %268 = arith.negf %267 : vector<8x128xf32>
    %269 = math.exp %268 : vector<8x128xf32>
    %cst_47 = arith.constant 1.000000e+00 : f32
    %270 = vector.broadcast %cst_47 : f32 to vector<8x128xf32>
    %271 = arith.addf %270, %269 : vector<8x128xf32>
    %272 = arith.divf %270, %271 : vector<8x128xf32>
    %273 = vector.extract_strided_slice %267 {offsets = [0, 96], sizes = [8, 32], strides = [1, 1]} : vector<8x128xf32> to vector<8x32xf32>
    %274 = math.tanh %273 : vector<8x32xf32>
    %275 = vector.extract_strided_slice %272 {offsets = [0, 0], sizes = [8, 32], strides = [1, 1]} : vector<8x128xf32> to vector<8x32xf32>
    %276 = vector.extract_strided_slice %272 {offsets = [0, 32], sizes = [8, 32], strides = [1, 1]} : vector<8x128xf32> to vector<8x32xf32>
    %277 = vector.extract_strided_slice %272 {offsets = [0, 64], sizes = [8, 32], strides = [1, 1]} : vector<8x128xf32> to vector<8x32xf32>
    %278 = arith.mulf %276, %260 : vector<8x32xf32>
    %279 = arith.mulf %275, %274 : vector<8x32xf32>
    %280 = arith.addf %278, %279 : vector<8x32xf32>
    %281 = math.tanh %280 : vector<8x32xf32>
    %282 = arith.mulf %277, %281 : vector<8x32xf32>
    %283 = arith.truncf %282 : vector<8x32xf32> to vector<8x32xbf16>
    %284 = arith.addf %264, %282 : vector<8x32xf32>
    %c112 = arith.constant 112 : index
    %c0_48 = arith.constant 0 : index
    %285 = vector.load %arg0[%c112, %c0_48] : memref<288x128xf32, #tpu.memory_space<vmem>>, vector<8x128xf32>
    %cst_49 = arith.constant dense<0.000000e+00> : vector<8x128xf32>
    %286 = tpu.matmul %283, %0, %cst_49 {dimension_numbers = #tpu.dot_dimension_numbers<[1], [0], [0], [1], [0, 0, 1, 1], [], []>} : vector<8x32xbf16>, vector<32x128xbf16>, vector<8x128xf32> -> vector<8x128xf32>
    %287 = arith.addf %285, %286 : vector<8x128xf32>
    %288 = arith.negf %287 : vector<8x128xf32>
    %289 = math.exp %288 : vector<8x128xf32>
    %cst_50 = arith.constant 1.000000e+00 : f32
    %290 = vector.broadcast %cst_50 : f32 to vector<8x128xf32>
    %291 = arith.addf %290, %289 : vector<8x128xf32>
    %292 = arith.divf %290, %291 : vector<8x128xf32>
    %293 = vector.extract_strided_slice %287 {offsets = [0, 96], sizes = [8, 32], strides = [1, 1]} : vector<8x128xf32> to vector<8x32xf32>
    %294 = math.tanh %293 : vector<8x32xf32>
    %295 = vector.extract_strided_slice %292 {offsets = [0, 0], sizes = [8, 32], strides = [1, 1]} : vector<8x128xf32> to vector<8x32xf32>
    %296 = vector.extract_strided_slice %292 {offsets = [0, 32], sizes = [8, 32], strides = [1, 1]} : vector<8x128xf32> to vector<8x32xf32>
    %297 = vector.extract_strided_slice %292 {offsets = [0, 64], sizes = [8, 32], strides = [1, 1]} : vector<8x128xf32> to vector<8x32xf32>
    %298 = arith.mulf %296, %280 : vector<8x32xf32>
    %299 = arith.mulf %295, %294 : vector<8x32xf32>
    %300 = arith.addf %298, %299 : vector<8x32xf32>
    %301 = math.tanh %300 : vector<8x32xf32>
    %302 = arith.mulf %297, %301 : vector<8x32xf32>
    %303 = arith.truncf %302 : vector<8x32xf32> to vector<8x32xbf16>
    %304 = arith.addf %284, %302 : vector<8x32xf32>
    %c120 = arith.constant 120 : index
    %c0_51 = arith.constant 0 : index
    %305 = vector.load %arg0[%c120, %c0_51] : memref<288x128xf32, #tpu.memory_space<vmem>>, vector<8x128xf32>
    %cst_52 = arith.constant dense<0.000000e+00> : vector<8x128xf32>
    %306 = tpu.matmul %303, %0, %cst_52 {dimension_numbers = #tpu.dot_dimension_numbers<[1], [0], [0], [1], [0, 0, 1, 1], [], []>} : vector<8x32xbf16>, vector<32x128xbf16>, vector<8x128xf32> -> vector<8x128xf32>
    %307 = arith.addf %305, %306 : vector<8x128xf32>
    %308 = arith.negf %307 : vector<8x128xf32>
    %309 = math.exp %308 : vector<8x128xf32>
    %cst_53 = arith.constant 1.000000e+00 : f32
    %310 = vector.broadcast %cst_53 : f32 to vector<8x128xf32>
    %311 = arith.addf %310, %309 : vector<8x128xf32>
    %312 = arith.divf %310, %311 : vector<8x128xf32>
    %313 = vector.extract_strided_slice %307 {offsets = [0, 96], sizes = [8, 32], strides = [1, 1]} : vector<8x128xf32> to vector<8x32xf32>
    %314 = math.tanh %313 : vector<8x32xf32>
    %315 = vector.extract_strided_slice %312 {offsets = [0, 0], sizes = [8, 32], strides = [1, 1]} : vector<8x128xf32> to vector<8x32xf32>
    %316 = vector.extract_strided_slice %312 {offsets = [0, 32], sizes = [8, 32], strides = [1, 1]} : vector<8x128xf32> to vector<8x32xf32>
    %317 = vector.extract_strided_slice %312 {offsets = [0, 64], sizes = [8, 32], strides = [1, 1]} : vector<8x128xf32> to vector<8x32xf32>
    %318 = arith.mulf %316, %300 : vector<8x32xf32>
    %319 = arith.mulf %315, %314 : vector<8x32xf32>
    %320 = arith.addf %318, %319 : vector<8x32xf32>
    %321 = math.tanh %320 : vector<8x32xf32>
    %322 = arith.mulf %317, %321 : vector<8x32xf32>
    %323 = arith.truncf %322 : vector<8x32xf32> to vector<8x32xbf16>
    %324 = arith.addf %304, %322 : vector<8x32xf32>
    %c128 = arith.constant 128 : index
    %c0_54 = arith.constant 0 : index
    %325 = vector.load %arg0[%c128, %c0_54] : memref<288x128xf32, #tpu.memory_space<vmem>>, vector<8x128xf32>
    %cst_55 = arith.constant dense<0.000000e+00> : vector<8x128xf32>
    %326 = tpu.matmul %323, %0, %cst_55 {dimension_numbers = #tpu.dot_dimension_numbers<[1], [0], [0], [1], [0, 0, 1, 1], [], []>} : vector<8x32xbf16>, vector<32x128xbf16>, vector<8x128xf32> -> vector<8x128xf32>
    %327 = arith.addf %325, %326 : vector<8x128xf32>
    %328 = arith.negf %327 : vector<8x128xf32>
    %329 = math.exp %328 : vector<8x128xf32>
    %cst_56 = arith.constant 1.000000e+00 : f32
    %330 = vector.broadcast %cst_56 : f32 to vector<8x128xf32>
    %331 = arith.addf %330, %329 : vector<8x128xf32>
    %332 = arith.divf %330, %331 : vector<8x128xf32>
    %333 = vector.extract_strided_slice %327 {offsets = [0, 96], sizes = [8, 32], strides = [1, 1]} : vector<8x128xf32> to vector<8x32xf32>
    %334 = math.tanh %333 : vector<8x32xf32>
    %335 = vector.extract_strided_slice %332 {offsets = [0, 0], sizes = [8, 32], strides = [1, 1]} : vector<8x128xf32> to vector<8x32xf32>
    %336 = vector.extract_strided_slice %332 {offsets = [0, 32], sizes = [8, 32], strides = [1, 1]} : vector<8x128xf32> to vector<8x32xf32>
    %337 = vector.extract_strided_slice %332 {offsets = [0, 64], sizes = [8, 32], strides = [1, 1]} : vector<8x128xf32> to vector<8x32xf32>
    %338 = arith.mulf %336, %320 : vector<8x32xf32>
    %339 = arith.mulf %335, %334 : vector<8x32xf32>
    %340 = arith.addf %338, %339 : vector<8x32xf32>
    %341 = math.tanh %340 : vector<8x32xf32>
    %342 = arith.mulf %337, %341 : vector<8x32xf32>
    %343 = arith.truncf %342 : vector<8x32xf32> to vector<8x32xbf16>
    %344 = arith.addf %324, %342 : vector<8x32xf32>
    %c136 = arith.constant 136 : index
    %c0_57 = arith.constant 0 : index
    %345 = vector.load %arg0[%c136, %c0_57] : memref<288x128xf32, #tpu.memory_space<vmem>>, vector<8x128xf32>
    %cst_58 = arith.constant dense<0.000000e+00> : vector<8x128xf32>
    %346 = tpu.matmul %343, %0, %cst_58 {dimension_numbers = #tpu.dot_dimension_numbers<[1], [0], [0], [1], [0, 0, 1, 1], [], []>} : vector<8x32xbf16>, vector<32x128xbf16>, vector<8x128xf32> -> vector<8x128xf32>
    %347 = arith.addf %345, %346 : vector<8x128xf32>
    %348 = arith.negf %347 : vector<8x128xf32>
    %349 = math.exp %348 : vector<8x128xf32>
    %cst_59 = arith.constant 1.000000e+00 : f32
    %350 = vector.broadcast %cst_59 : f32 to vector<8x128xf32>
    %351 = arith.addf %350, %349 : vector<8x128xf32>
    %352 = arith.divf %350, %351 : vector<8x128xf32>
    %353 = vector.extract_strided_slice %347 {offsets = [0, 96], sizes = [8, 32], strides = [1, 1]} : vector<8x128xf32> to vector<8x32xf32>
    %354 = math.tanh %353 : vector<8x32xf32>
    %355 = vector.extract_strided_slice %352 {offsets = [0, 0], sizes = [8, 32], strides = [1, 1]} : vector<8x128xf32> to vector<8x32xf32>
    %356 = vector.extract_strided_slice %352 {offsets = [0, 32], sizes = [8, 32], strides = [1, 1]} : vector<8x128xf32> to vector<8x32xf32>
    %357 = vector.extract_strided_slice %352 {offsets = [0, 64], sizes = [8, 32], strides = [1, 1]} : vector<8x128xf32> to vector<8x32xf32>
    %358 = arith.mulf %356, %340 : vector<8x32xf32>
    %359 = arith.mulf %355, %354 : vector<8x32xf32>
    %360 = arith.addf %358, %359 : vector<8x32xf32>
    %361 = math.tanh %360 : vector<8x32xf32>
    %362 = arith.mulf %357, %361 : vector<8x32xf32>
    %363 = arith.truncf %362 : vector<8x32xf32> to vector<8x32xbf16>
    %364 = arith.addf %344, %362 : vector<8x32xf32>
    %c144 = arith.constant 144 : index
    %c0_60 = arith.constant 0 : index
    %365 = vector.load %arg0[%c144, %c0_60] : memref<288x128xf32, #tpu.memory_space<vmem>>, vector<8x128xf32>
    %cst_61 = arith.constant dense<0.000000e+00> : vector<8x128xf32>
    %366 = tpu.matmul %363, %0, %cst_61 {dimension_numbers = #tpu.dot_dimension_numbers<[1], [0], [0], [1], [0, 0, 1, 1], [], []>} : vector<8x32xbf16>, vector<32x128xbf16>, vector<8x128xf32> -> vector<8x128xf32>
    %367 = arith.addf %365, %366 : vector<8x128xf32>
    %368 = arith.negf %367 : vector<8x128xf32>
    %369 = math.exp %368 : vector<8x128xf32>
    %cst_62 = arith.constant 1.000000e+00 : f32
    %370 = vector.broadcast %cst_62 : f32 to vector<8x128xf32>
    %371 = arith.addf %370, %369 : vector<8x128xf32>
    %372 = arith.divf %370, %371 : vector<8x128xf32>
    %373 = vector.extract_strided_slice %367 {offsets = [0, 96], sizes = [8, 32], strides = [1, 1]} : vector<8x128xf32> to vector<8x32xf32>
    %374 = math.tanh %373 : vector<8x32xf32>
    %375 = vector.extract_strided_slice %372 {offsets = [0, 0], sizes = [8, 32], strides = [1, 1]} : vector<8x128xf32> to vector<8x32xf32>
    %376 = vector.extract_strided_slice %372 {offsets = [0, 32], sizes = [8, 32], strides = [1, 1]} : vector<8x128xf32> to vector<8x32xf32>
    %377 = vector.extract_strided_slice %372 {offsets = [0, 64], sizes = [8, 32], strides = [1, 1]} : vector<8x128xf32> to vector<8x32xf32>
    %378 = arith.mulf %376, %360 : vector<8x32xf32>
    %379 = arith.mulf %375, %374 : vector<8x32xf32>
    %380 = arith.addf %378, %379 : vector<8x32xf32>
    %381 = math.tanh %380 : vector<8x32xf32>
    %382 = arith.mulf %377, %381 : vector<8x32xf32>
    %383 = arith.truncf %382 : vector<8x32xf32> to vector<8x32xbf16>
    %384 = arith.addf %364, %382 : vector<8x32xf32>
    %c152 = arith.constant 152 : index
    %c0_63 = arith.constant 0 : index
    %385 = vector.load %arg0[%c152, %c0_63] : memref<288x128xf32, #tpu.memory_space<vmem>>, vector<8x128xf32>
    %cst_64 = arith.constant dense<0.000000e+00> : vector<8x128xf32>
    %386 = tpu.matmul %383, %0, %cst_64 {dimension_numbers = #tpu.dot_dimension_numbers<[1], [0], [0], [1], [0, 0, 1, 1], [], []>} : vector<8x32xbf16>, vector<32x128xbf16>, vector<8x128xf32> -> vector<8x128xf32>
    %387 = arith.addf %385, %386 : vector<8x128xf32>
    %388 = arith.negf %387 : vector<8x128xf32>
    %389 = math.exp %388 : vector<8x128xf32>
    %cst_65 = arith.constant 1.000000e+00 : f32
    %390 = vector.broadcast %cst_65 : f32 to vector<8x128xf32>
    %391 = arith.addf %390, %389 : vector<8x128xf32>
    %392 = arith.divf %390, %391 : vector<8x128xf32>
    %393 = vector.extract_strided_slice %387 {offsets = [0, 96], sizes = [8, 32], strides = [1, 1]} : vector<8x128xf32> to vector<8x32xf32>
    %394 = math.tanh %393 : vector<8x32xf32>
    %395 = vector.extract_strided_slice %392 {offsets = [0, 0], sizes = [8, 32], strides = [1, 1]} : vector<8x128xf32> to vector<8x32xf32>
    %396 = vector.extract_strided_slice %392 {offsets = [0, 32], sizes = [8, 32], strides = [1, 1]} : vector<8x128xf32> to vector<8x32xf32>
    %397 = vector.extract_strided_slice %392 {offsets = [0, 64], sizes = [8, 32], strides = [1, 1]} : vector<8x128xf32> to vector<8x32xf32>
    %398 = arith.mulf %396, %380 : vector<8x32xf32>
    %399 = arith.mulf %395, %394 : vector<8x32xf32>
    %400 = arith.addf %398, %399 : vector<8x32xf32>
    %401 = math.tanh %400 : vector<8x32xf32>
    %402 = arith.mulf %397, %401 : vector<8x32xf32>
    %403 = arith.truncf %402 : vector<8x32xf32> to vector<8x32xbf16>
    %404 = arith.addf %384, %402 : vector<8x32xf32>
    %c160 = arith.constant 160 : index
    %c0_66 = arith.constant 0 : index
    %405 = vector.load %arg0[%c160, %c0_66] : memref<288x128xf32, #tpu.memory_space<vmem>>, vector<8x128xf32>
    %cst_67 = arith.constant dense<0.000000e+00> : vector<8x128xf32>
    %406 = tpu.matmul %403, %0, %cst_67 {dimension_numbers = #tpu.dot_dimension_numbers<[1], [0], [0], [1], [0, 0, 1, 1], [], []>} : vector<8x32xbf16>, vector<32x128xbf16>, vector<8x128xf32> -> vector<8x128xf32>
    %407 = arith.addf %405, %406 : vector<8x128xf32>
    %408 = arith.negf %407 : vector<8x128xf32>
    %409 = math.exp %408 : vector<8x128xf32>
    %cst_68 = arith.constant 1.000000e+00 : f32
    %410 = vector.broadcast %cst_68 : f32 to vector<8x128xf32>
    %411 = arith.addf %410, %409 : vector<8x128xf32>
    %412 = arith.divf %410, %411 : vector<8x128xf32>
    %413 = vector.extract_strided_slice %407 {offsets = [0, 96], sizes = [8, 32], strides = [1, 1]} : vector<8x128xf32> to vector<8x32xf32>
    %414 = math.tanh %413 : vector<8x32xf32>
    %415 = vector.extract_strided_slice %412 {offsets = [0, 0], sizes = [8, 32], strides = [1, 1]} : vector<8x128xf32> to vector<8x32xf32>
    %416 = vector.extract_strided_slice %412 {offsets = [0, 32], sizes = [8, 32], strides = [1, 1]} : vector<8x128xf32> to vector<8x32xf32>
    %417 = vector.extract_strided_slice %412 {offsets = [0, 64], sizes = [8, 32], strides = [1, 1]} : vector<8x128xf32> to vector<8x32xf32>
    %418 = arith.mulf %416, %400 : vector<8x32xf32>
    %419 = arith.mulf %415, %414 : vector<8x32xf32>
    %420 = arith.addf %418, %419 : vector<8x32xf32>
    %421 = math.tanh %420 : vector<8x32xf32>
    %422 = arith.mulf %417, %421 : vector<8x32xf32>
    %423 = arith.truncf %422 : vector<8x32xf32> to vector<8x32xbf16>
    %424 = arith.addf %404, %422 : vector<8x32xf32>
    %c168 = arith.constant 168 : index
    %c0_69 = arith.constant 0 : index
    %425 = vector.load %arg0[%c168, %c0_69] : memref<288x128xf32, #tpu.memory_space<vmem>>, vector<8x128xf32>
    %cst_70 = arith.constant dense<0.000000e+00> : vector<8x128xf32>
    %426 = tpu.matmul %423, %0, %cst_70 {dimension_numbers = #tpu.dot_dimension_numbers<[1], [0], [0], [1], [0, 0, 1, 1], [], []>} : vector<8x32xbf16>, vector<32x128xbf16>, vector<8x128xf32> -> vector<8x128xf32>
    %427 = arith.addf %425, %426 : vector<8x128xf32>
    %428 = arith.negf %427 : vector<8x128xf32>
    %429 = math.exp %428 : vector<8x128xf32>
    %cst_71 = arith.constant 1.000000e+00 : f32
    %430 = vector.broadcast %cst_71 : f32 to vector<8x128xf32>
    %431 = arith.addf %430, %429 : vector<8x128xf32>
    %432 = arith.divf %430, %431 : vector<8x128xf32>
    %433 = vector.extract_strided_slice %427 {offsets = [0, 96], sizes = [8, 32], strides = [1, 1]} : vector<8x128xf32> to vector<8x32xf32>
    %434 = math.tanh %433 : vector<8x32xf32>
    %435 = vector.extract_strided_slice %432 {offsets = [0, 0], sizes = [8, 32], strides = [1, 1]} : vector<8x128xf32> to vector<8x32xf32>
    %436 = vector.extract_strided_slice %432 {offsets = [0, 32], sizes = [8, 32], strides = [1, 1]} : vector<8x128xf32> to vector<8x32xf32>
    %437 = vector.extract_strided_slice %432 {offsets = [0, 64], sizes = [8, 32], strides = [1, 1]} : vector<8x128xf32> to vector<8x32xf32>
    %438 = arith.mulf %436, %420 : vector<8x32xf32>
    %439 = arith.mulf %435, %434 : vector<8x32xf32>
    %440 = arith.addf %438, %439 : vector<8x32xf32>
    %441 = math.tanh %440 : vector<8x32xf32>
    %442 = arith.mulf %437, %441 : vector<8x32xf32>
    %443 = arith.truncf %442 : vector<8x32xf32> to vector<8x32xbf16>
    %444 = arith.addf %424, %442 : vector<8x32xf32>
    %c176 = arith.constant 176 : index
    %c0_72 = arith.constant 0 : index
    %445 = vector.load %arg0[%c176, %c0_72] : memref<288x128xf32, #tpu.memory_space<vmem>>, vector<8x128xf32>
    %cst_73 = arith.constant dense<0.000000e+00> : vector<8x128xf32>
    %446 = tpu.matmul %443, %0, %cst_73 {dimension_numbers = #tpu.dot_dimension_numbers<[1], [0], [0], [1], [0, 0, 1, 1], [], []>} : vector<8x32xbf16>, vector<32x128xbf16>, vector<8x128xf32> -> vector<8x128xf32>
    %447 = arith.addf %445, %446 : vector<8x128xf32>
    %448 = arith.negf %447 : vector<8x128xf32>
    %449 = math.exp %448 : vector<8x128xf32>
    %cst_74 = arith.constant 1.000000e+00 : f32
    %450 = vector.broadcast %cst_74 : f32 to vector<8x128xf32>
    %451 = arith.addf %450, %449 : vector<8x128xf32>
    %452 = arith.divf %450, %451 : vector<8x128xf32>
    %453 = vector.extract_strided_slice %447 {offsets = [0, 96], sizes = [8, 32], strides = [1, 1]} : vector<8x128xf32> to vector<8x32xf32>
    %454 = math.tanh %453 : vector<8x32xf32>
    %455 = vector.extract_strided_slice %452 {offsets = [0, 0], sizes = [8, 32], strides = [1, 1]} : vector<8x128xf32> to vector<8x32xf32>
    %456 = vector.extract_strided_slice %452 {offsets = [0, 32], sizes = [8, 32], strides = [1, 1]} : vector<8x128xf32> to vector<8x32xf32>
    %457 = vector.extract_strided_slice %452 {offsets = [0, 64], sizes = [8, 32], strides = [1, 1]} : vector<8x128xf32> to vector<8x32xf32>
    %458 = arith.mulf %456, %440 : vector<8x32xf32>
    %459 = arith.mulf %455, %454 : vector<8x32xf32>
    %460 = arith.addf %458, %459 : vector<8x32xf32>
    %461 = math.tanh %460 : vector<8x32xf32>
    %462 = arith.mulf %457, %461 : vector<8x32xf32>
    %463 = arith.truncf %462 : vector<8x32xf32> to vector<8x32xbf16>
    %464 = arith.addf %444, %462 : vector<8x32xf32>
    %c184 = arith.constant 184 : index
    %c0_75 = arith.constant 0 : index
    %465 = vector.load %arg0[%c184, %c0_75] : memref<288x128xf32, #tpu.memory_space<vmem>>, vector<8x128xf32>
    %cst_76 = arith.constant dense<0.000000e+00> : vector<8x128xf32>
    %466 = tpu.matmul %463, %0, %cst_76 {dimension_numbers = #tpu.dot_dimension_numbers<[1], [0], [0], [1], [0, 0, 1, 1], [], []>} : vector<8x32xbf16>, vector<32x128xbf16>, vector<8x128xf32> -> vector<8x128xf32>
    %467 = arith.addf %465, %466 : vector<8x128xf32>
    %468 = arith.negf %467 : vector<8x128xf32>
    %469 = math.exp %468 : vector<8x128xf32>
    %cst_77 = arith.constant 1.000000e+00 : f32
    %470 = vector.broadcast %cst_77 : f32 to vector<8x128xf32>
    %471 = arith.addf %470, %469 : vector<8x128xf32>
    %472 = arith.divf %470, %471 : vector<8x128xf32>
    %473 = vector.extract_strided_slice %467 {offsets = [0, 96], sizes = [8, 32], strides = [1, 1]} : vector<8x128xf32> to vector<8x32xf32>
    %474 = math.tanh %473 : vector<8x32xf32>
    %475 = vector.extract_strided_slice %472 {offsets = [0, 0], sizes = [8, 32], strides = [1, 1]} : vector<8x128xf32> to vector<8x32xf32>
    %476 = vector.extract_strided_slice %472 {offsets = [0, 32], sizes = [8, 32], strides = [1, 1]} : vector<8x128xf32> to vector<8x32xf32>
    %477 = vector.extract_strided_slice %472 {offsets = [0, 64], sizes = [8, 32], strides = [1, 1]} : vector<8x128xf32> to vector<8x32xf32>
    %478 = arith.mulf %476, %460 : vector<8x32xf32>
    %479 = arith.mulf %475, %474 : vector<8x32xf32>
    %480 = arith.addf %478, %479 : vector<8x32xf32>
    %481 = math.tanh %480 : vector<8x32xf32>
    %482 = arith.mulf %477, %481 : vector<8x32xf32>
    %483 = arith.truncf %482 : vector<8x32xf32> to vector<8x32xbf16>
    %484 = arith.addf %464, %482 : vector<8x32xf32>
    %c192 = arith.constant 192 : index
    %c0_78 = arith.constant 0 : index
    %485 = vector.load %arg0[%c192, %c0_78] : memref<288x128xf32, #tpu.memory_space<vmem>>, vector<8x128xf32>
    %cst_79 = arith.constant dense<0.000000e+00> : vector<8x128xf32>
    %486 = tpu.matmul %483, %0, %cst_79 {dimension_numbers = #tpu.dot_dimension_numbers<[1], [0], [0], [1], [0, 0, 1, 1], [], []>} : vector<8x32xbf16>, vector<32x128xbf16>, vector<8x128xf32> -> vector<8x128xf32>
    %487 = arith.addf %485, %486 : vector<8x128xf32>
    %488 = arith.negf %487 : vector<8x128xf32>
    %489 = math.exp %488 : vector<8x128xf32>
    %cst_80 = arith.constant 1.000000e+00 : f32
    %490 = vector.broadcast %cst_80 : f32 to vector<8x128xf32>
    %491 = arith.addf %490, %489 : vector<8x128xf32>
    %492 = arith.divf %490, %491 : vector<8x128xf32>
    %493 = vector.extract_strided_slice %487 {offsets = [0, 96], sizes = [8, 32], strides = [1, 1]} : vector<8x128xf32> to vector<8x32xf32>
    %494 = math.tanh %493 : vector<8x32xf32>
    %495 = vector.extract_strided_slice %492 {offsets = [0, 0], sizes = [8, 32], strides = [1, 1]} : vector<8x128xf32> to vector<8x32xf32>
    %496 = vector.extract_strided_slice %492 {offsets = [0, 32], sizes = [8, 32], strides = [1, 1]} : vector<8x128xf32> to vector<8x32xf32>
    %497 = vector.extract_strided_slice %492 {offsets = [0, 64], sizes = [8, 32], strides = [1, 1]} : vector<8x128xf32> to vector<8x32xf32>
    %498 = arith.mulf %496, %480 : vector<8x32xf32>
    %499 = arith.mulf %495, %494 : vector<8x32xf32>
    %500 = arith.addf %498, %499 : vector<8x32xf32>
    %501 = math.tanh %500 : vector<8x32xf32>
    %502 = arith.mulf %497, %501 : vector<8x32xf32>
    %503 = arith.truncf %502 : vector<8x32xf32> to vector<8x32xbf16>
    %504 = arith.addf %484, %502 : vector<8x32xf32>
    %c200 = arith.constant 200 : index
    %c0_81 = arith.constant 0 : index
    %505 = vector.load %arg0[%c200, %c0_81] : memref<288x128xf32, #tpu.memory_space<vmem>>, vector<8x128xf32>
    %cst_82 = arith.constant dense<0.000000e+00> : vector<8x128xf32>
    %506 = tpu.matmul %503, %0, %cst_82 {dimension_numbers = #tpu.dot_dimension_numbers<[1], [0], [0], [1], [0, 0, 1, 1], [], []>} : vector<8x32xbf16>, vector<32x128xbf16>, vector<8x128xf32> -> vector<8x128xf32>
    %507 = arith.addf %505, %506 : vector<8x128xf32>
    %508 = arith.negf %507 : vector<8x128xf32>
    %509 = math.exp %508 : vector<8x128xf32>
    %cst_83 = arith.constant 1.000000e+00 : f32
    %510 = vector.broadcast %cst_83 : f32 to vector<8x128xf32>
    %511 = arith.addf %510, %509 : vector<8x128xf32>
    %512 = arith.divf %510, %511 : vector<8x128xf32>
    %513 = vector.extract_strided_slice %507 {offsets = [0, 96], sizes = [8, 32], strides = [1, 1]} : vector<8x128xf32> to vector<8x32xf32>
    %514 = math.tanh %513 : vector<8x32xf32>
    %515 = vector.extract_strided_slice %512 {offsets = [0, 0], sizes = [8, 32], strides = [1, 1]} : vector<8x128xf32> to vector<8x32xf32>
    %516 = vector.extract_strided_slice %512 {offsets = [0, 32], sizes = [8, 32], strides = [1, 1]} : vector<8x128xf32> to vector<8x32xf32>
    %517 = vector.extract_strided_slice %512 {offsets = [0, 64], sizes = [8, 32], strides = [1, 1]} : vector<8x128xf32> to vector<8x32xf32>
    %518 = arith.mulf %516, %500 : vector<8x32xf32>
    %519 = arith.mulf %515, %514 : vector<8x32xf32>
    %520 = arith.addf %518, %519 : vector<8x32xf32>
    %521 = math.tanh %520 : vector<8x32xf32>
    %522 = arith.mulf %517, %521 : vector<8x32xf32>
    %523 = arith.truncf %522 : vector<8x32xf32> to vector<8x32xbf16>
    %524 = arith.addf %504, %522 : vector<8x32xf32>
    %c208 = arith.constant 208 : index
    %c0_84 = arith.constant 0 : index
    %525 = vector.load %arg0[%c208, %c0_84] : memref<288x128xf32, #tpu.memory_space<vmem>>, vector<8x128xf32>
    %cst_85 = arith.constant dense<0.000000e+00> : vector<8x128xf32>
    %526 = tpu.matmul %523, %0, %cst_85 {dimension_numbers = #tpu.dot_dimension_numbers<[1], [0], [0], [1], [0, 0, 1, 1], [], []>} : vector<8x32xbf16>, vector<32x128xbf16>, vector<8x128xf32> -> vector<8x128xf32>
    %527 = arith.addf %525, %526 : vector<8x128xf32>
    %528 = arith.negf %527 : vector<8x128xf32>
    %529 = math.exp %528 : vector<8x128xf32>
    %cst_86 = arith.constant 1.000000e+00 : f32
    %530 = vector.broadcast %cst_86 : f32 to vector<8x128xf32>
    %531 = arith.addf %530, %529 : vector<8x128xf32>
    %532 = arith.divf %530, %531 : vector<8x128xf32>
    %533 = vector.extract_strided_slice %527 {offsets = [0, 96], sizes = [8, 32], strides = [1, 1]} : vector<8x128xf32> to vector<8x32xf32>
    %534 = math.tanh %533 : vector<8x32xf32>
    %535 = vector.extract_strided_slice %532 {offsets = [0, 0], sizes = [8, 32], strides = [1, 1]} : vector<8x128xf32> to vector<8x32xf32>
    %536 = vector.extract_strided_slice %532 {offsets = [0, 32], sizes = [8, 32], strides = [1, 1]} : vector<8x128xf32> to vector<8x32xf32>
    %537 = vector.extract_strided_slice %532 {offsets = [0, 64], sizes = [8, 32], strides = [1, 1]} : vector<8x128xf32> to vector<8x32xf32>
    %538 = arith.mulf %536, %520 : vector<8x32xf32>
    %539 = arith.mulf %535, %534 : vector<8x32xf32>
    %540 = arith.addf %538, %539 : vector<8x32xf32>
    %541 = math.tanh %540 : vector<8x32xf32>
    %542 = arith.mulf %537, %541 : vector<8x32xf32>
    %543 = arith.truncf %542 : vector<8x32xf32> to vector<8x32xbf16>
    %544 = arith.addf %524, %542 : vector<8x32xf32>
    %c216 = arith.constant 216 : index
    %c0_87 = arith.constant 0 : index
    %545 = vector.load %arg0[%c216, %c0_87] : memref<288x128xf32, #tpu.memory_space<vmem>>, vector<8x128xf32>
    %cst_88 = arith.constant dense<0.000000e+00> : vector<8x128xf32>
    %546 = tpu.matmul %543, %0, %cst_88 {dimension_numbers = #tpu.dot_dimension_numbers<[1], [0], [0], [1], [0, 0, 1, 1], [], []>} : vector<8x32xbf16>, vector<32x128xbf16>, vector<8x128xf32> -> vector<8x128xf32>
    %547 = arith.addf %545, %546 : vector<8x128xf32>
    %548 = arith.negf %547 : vector<8x128xf32>
    %549 = math.exp %548 : vector<8x128xf32>
    %cst_89 = arith.constant 1.000000e+00 : f32
    %550 = vector.broadcast %cst_89 : f32 to vector<8x128xf32>
    %551 = arith.addf %550, %549 : vector<8x128xf32>
    %552 = arith.divf %550, %551 : vector<8x128xf32>
    %553 = vector.extract_strided_slice %547 {offsets = [0, 96], sizes = [8, 32], strides = [1, 1]} : vector<8x128xf32> to vector<8x32xf32>
    %554 = math.tanh %553 : vector<8x32xf32>
    %555 = vector.extract_strided_slice %552 {offsets = [0, 0], sizes = [8, 32], strides = [1, 1]} : vector<8x128xf32> to vector<8x32xf32>
    %556 = vector.extract_strided_slice %552 {offsets = [0, 32], sizes = [8, 32], strides = [1, 1]} : vector<8x128xf32> to vector<8x32xf32>
    %557 = vector.extract_strided_slice %552 {offsets = [0, 64], sizes = [8, 32], strides = [1, 1]} : vector<8x128xf32> to vector<8x32xf32>
    %558 = arith.mulf %556, %540 : vector<8x32xf32>
    %559 = arith.mulf %555, %554 : vector<8x32xf32>
    %560 = arith.addf %558, %559 : vector<8x32xf32>
    %561 = math.tanh %560 : vector<8x32xf32>
    %562 = arith.mulf %557, %561 : vector<8x32xf32>
    %563 = arith.truncf %562 : vector<8x32xf32> to vector<8x32xbf16>
    %564 = arith.addf %544, %562 : vector<8x32xf32>
    %c224 = arith.constant 224 : index
    %c0_90 = arith.constant 0 : index
    %565 = vector.load %arg0[%c224, %c0_90] : memref<288x128xf32, #tpu.memory_space<vmem>>, vector<8x128xf32>
    %cst_91 = arith.constant dense<0.000000e+00> : vector<8x128xf32>
    %566 = tpu.matmul %563, %0, %cst_91 {dimension_numbers = #tpu.dot_dimension_numbers<[1], [0], [0], [1], [0, 0, 1, 1], [], []>} : vector<8x32xbf16>, vector<32x128xbf16>, vector<8x128xf32> -> vector<8x128xf32>
    %567 = arith.addf %565, %566 : vector<8x128xf32>
    %568 = arith.negf %567 : vector<8x128xf32>
    %569 = math.exp %568 : vector<8x128xf32>
    %cst_92 = arith.constant 1.000000e+00 : f32
    %570 = vector.broadcast %cst_92 : f32 to vector<8x128xf32>
    %571 = arith.addf %570, %569 : vector<8x128xf32>
    %572 = arith.divf %570, %571 : vector<8x128xf32>
    %573 = vector.extract_strided_slice %567 {offsets = [0, 96], sizes = [8, 32], strides = [1, 1]} : vector<8x128xf32> to vector<8x32xf32>
    %574 = math.tanh %573 : vector<8x32xf32>
    %575 = vector.extract_strided_slice %572 {offsets = [0, 0], sizes = [8, 32], strides = [1, 1]} : vector<8x128xf32> to vector<8x32xf32>
    %576 = vector.extract_strided_slice %572 {offsets = [0, 32], sizes = [8, 32], strides = [1, 1]} : vector<8x128xf32> to vector<8x32xf32>
    %577 = vector.extract_strided_slice %572 {offsets = [0, 64], sizes = [8, 32], strides = [1, 1]} : vector<8x128xf32> to vector<8x32xf32>
    %578 = arith.mulf %576, %560 : vector<8x32xf32>
    %579 = arith.mulf %575, %574 : vector<8x32xf32>
    %580 = arith.addf %578, %579 : vector<8x32xf32>
    %581 = math.tanh %580 : vector<8x32xf32>
    %582 = arith.mulf %577, %581 : vector<8x32xf32>
    %583 = arith.truncf %582 : vector<8x32xf32> to vector<8x32xbf16>
    %584 = arith.addf %564, %582 : vector<8x32xf32>
    %c232 = arith.constant 232 : index
    %c0_93 = arith.constant 0 : index
    %585 = vector.load %arg0[%c232, %c0_93] : memref<288x128xf32, #tpu.memory_space<vmem>>, vector<8x128xf32>
    %cst_94 = arith.constant dense<0.000000e+00> : vector<8x128xf32>
    %586 = tpu.matmul %583, %0, %cst_94 {dimension_numbers = #tpu.dot_dimension_numbers<[1], [0], [0], [1], [0, 0, 1, 1], [], []>} : vector<8x32xbf16>, vector<32x128xbf16>, vector<8x128xf32> -> vector<8x128xf32>
    %587 = arith.addf %585, %586 : vector<8x128xf32>
    %588 = arith.negf %587 : vector<8x128xf32>
    %589 = math.exp %588 : vector<8x128xf32>
    %cst_95 = arith.constant 1.000000e+00 : f32
    %590 = vector.broadcast %cst_95 : f32 to vector<8x128xf32>
    %591 = arith.addf %590, %589 : vector<8x128xf32>
    %592 = arith.divf %590, %591 : vector<8x128xf32>
    %593 = vector.extract_strided_slice %587 {offsets = [0, 96], sizes = [8, 32], strides = [1, 1]} : vector<8x128xf32> to vector<8x32xf32>
    %594 = math.tanh %593 : vector<8x32xf32>
    %595 = vector.extract_strided_slice %592 {offsets = [0, 0], sizes = [8, 32], strides = [1, 1]} : vector<8x128xf32> to vector<8x32xf32>
    %596 = vector.extract_strided_slice %592 {offsets = [0, 32], sizes = [8, 32], strides = [1, 1]} : vector<8x128xf32> to vector<8x32xf32>
    %597 = vector.extract_strided_slice %592 {offsets = [0, 64], sizes = [8, 32], strides = [1, 1]} : vector<8x128xf32> to vector<8x32xf32>
    %598 = arith.mulf %596, %580 : vector<8x32xf32>
    %599 = arith.mulf %595, %594 : vector<8x32xf32>
    %600 = arith.addf %598, %599 : vector<8x32xf32>
    %601 = math.tanh %600 : vector<8x32xf32>
    %602 = arith.mulf %597, %601 : vector<8x32xf32>
    %603 = arith.truncf %602 : vector<8x32xf32> to vector<8x32xbf16>
    %604 = arith.addf %584, %602 : vector<8x32xf32>
    %c240 = arith.constant 240 : index
    %c0_96 = arith.constant 0 : index
    %605 = vector.load %arg0[%c240, %c0_96] : memref<288x128xf32, #tpu.memory_space<vmem>>, vector<8x128xf32>
    %cst_97 = arith.constant dense<0.000000e+00> : vector<8x128xf32>
    %606 = tpu.matmul %603, %0, %cst_97 {dimension_numbers = #tpu.dot_dimension_numbers<[1], [0], [0], [1], [0, 0, 1, 1], [], []>} : vector<8x32xbf16>, vector<32x128xbf16>, vector<8x128xf32> -> vector<8x128xf32>
    %607 = arith.addf %605, %606 : vector<8x128xf32>
    %608 = arith.negf %607 : vector<8x128xf32>
    %609 = math.exp %608 : vector<8x128xf32>
    %cst_98 = arith.constant 1.000000e+00 : f32
    %610 = vector.broadcast %cst_98 : f32 to vector<8x128xf32>
    %611 = arith.addf %610, %609 : vector<8x128xf32>
    %612 = arith.divf %610, %611 : vector<8x128xf32>
    %613 = vector.extract_strided_slice %607 {offsets = [0, 96], sizes = [8, 32], strides = [1, 1]} : vector<8x128xf32> to vector<8x32xf32>
    %614 = math.tanh %613 : vector<8x32xf32>
    %615 = vector.extract_strided_slice %612 {offsets = [0, 0], sizes = [8, 32], strides = [1, 1]} : vector<8x128xf32> to vector<8x32xf32>
    %616 = vector.extract_strided_slice %612 {offsets = [0, 32], sizes = [8, 32], strides = [1, 1]} : vector<8x128xf32> to vector<8x32xf32>
    %617 = vector.extract_strided_slice %612 {offsets = [0, 64], sizes = [8, 32], strides = [1, 1]} : vector<8x128xf32> to vector<8x32xf32>
    %618 = arith.mulf %616, %600 : vector<8x32xf32>
    %619 = arith.mulf %615, %614 : vector<8x32xf32>
    %620 = arith.addf %618, %619 : vector<8x32xf32>
    %621 = math.tanh %620 : vector<8x32xf32>
    %622 = arith.mulf %617, %621 : vector<8x32xf32>
    %623 = arith.truncf %622 : vector<8x32xf32> to vector<8x32xbf16>
    %624 = arith.addf %604, %622 : vector<8x32xf32>
    %c248 = arith.constant 248 : index
    %c0_99 = arith.constant 0 : index
    %625 = vector.load %arg0[%c248, %c0_99] : memref<288x128xf32, #tpu.memory_space<vmem>>, vector<8x128xf32>
    %cst_100 = arith.constant dense<0.000000e+00> : vector<8x128xf32>
    %626 = tpu.matmul %623, %0, %cst_100 {dimension_numbers = #tpu.dot_dimension_numbers<[1], [0], [0], [1], [0, 0, 1, 1], [], []>} : vector<8x32xbf16>, vector<32x128xbf16>, vector<8x128xf32> -> vector<8x128xf32>
    %627 = arith.addf %625, %626 : vector<8x128xf32>
    %628 = arith.negf %627 : vector<8x128xf32>
    %629 = math.exp %628 : vector<8x128xf32>
    %cst_101 = arith.constant 1.000000e+00 : f32
    %630 = vector.broadcast %cst_101 : f32 to vector<8x128xf32>
    %631 = arith.addf %630, %629 : vector<8x128xf32>
    %632 = arith.divf %630, %631 : vector<8x128xf32>
    %633 = vector.extract_strided_slice %627 {offsets = [0, 96], sizes = [8, 32], strides = [1, 1]} : vector<8x128xf32> to vector<8x32xf32>
    %634 = math.tanh %633 : vector<8x32xf32>
    %635 = vector.extract_strided_slice %632 {offsets = [0, 0], sizes = [8, 32], strides = [1, 1]} : vector<8x128xf32> to vector<8x32xf32>
    %636 = vector.extract_strided_slice %632 {offsets = [0, 32], sizes = [8, 32], strides = [1, 1]} : vector<8x128xf32> to vector<8x32xf32>
    %637 = vector.extract_strided_slice %632 {offsets = [0, 64], sizes = [8, 32], strides = [1, 1]} : vector<8x128xf32> to vector<8x32xf32>
    %638 = arith.mulf %636, %620 : vector<8x32xf32>
    %639 = arith.mulf %635, %634 : vector<8x32xf32>
    %640 = arith.addf %638, %639 : vector<8x32xf32>
    %641 = math.tanh %640 : vector<8x32xf32>
    %642 = arith.mulf %637, %641 : vector<8x32xf32>
    %643 = arith.truncf %642 : vector<8x32xf32> to vector<8x32xbf16>
    %644 = arith.addf %624, %642 : vector<8x32xf32>
    %c256 = arith.constant 256 : index
    %c0_102 = arith.constant 0 : index
    %645 = vector.load %arg0[%c256, %c0_102] : memref<288x128xf32, #tpu.memory_space<vmem>>, vector<8x128xf32>
    %cst_103 = arith.constant dense<0.000000e+00> : vector<8x128xf32>
    %646 = tpu.matmul %643, %0, %cst_103 {dimension_numbers = #tpu.dot_dimension_numbers<[1], [0], [0], [1], [0, 0, 1, 1], [], []>} : vector<8x32xbf16>, vector<32x128xbf16>, vector<8x128xf32> -> vector<8x128xf32>
    %647 = arith.addf %645, %646 : vector<8x128xf32>
    %648 = arith.negf %647 : vector<8x128xf32>
    %649 = math.exp %648 : vector<8x128xf32>
    %cst_104 = arith.constant 1.000000e+00 : f32
    %650 = vector.broadcast %cst_104 : f32 to vector<8x128xf32>
    %651 = arith.addf %650, %649 : vector<8x128xf32>
    %652 = arith.divf %650, %651 : vector<8x128xf32>
    %653 = vector.extract_strided_slice %647 {offsets = [0, 96], sizes = [8, 32], strides = [1, 1]} : vector<8x128xf32> to vector<8x32xf32>
    %654 = math.tanh %653 : vector<8x32xf32>
    %655 = vector.extract_strided_slice %652 {offsets = [0, 0], sizes = [8, 32], strides = [1, 1]} : vector<8x128xf32> to vector<8x32xf32>
    %656 = vector.extract_strided_slice %652 {offsets = [0, 32], sizes = [8, 32], strides = [1, 1]} : vector<8x128xf32> to vector<8x32xf32>
    %657 = vector.extract_strided_slice %652 {offsets = [0, 64], sizes = [8, 32], strides = [1, 1]} : vector<8x128xf32> to vector<8x32xf32>
    %658 = arith.mulf %656, %640 : vector<8x32xf32>
    %659 = arith.mulf %655, %654 : vector<8x32xf32>
    %660 = arith.addf %658, %659 : vector<8x32xf32>
    %661 = math.tanh %660 : vector<8x32xf32>
    %662 = arith.mulf %657, %661 : vector<8x32xf32>
    %663 = arith.truncf %662 : vector<8x32xf32> to vector<8x32xbf16>
    %664 = arith.addf %644, %662 : vector<8x32xf32>
    %c264 = arith.constant 264 : index
    %c0_105 = arith.constant 0 : index
    %665 = vector.load %arg0[%c264, %c0_105] : memref<288x128xf32, #tpu.memory_space<vmem>>, vector<8x128xf32>
    %cst_106 = arith.constant dense<0.000000e+00> : vector<8x128xf32>
    %666 = tpu.matmul %663, %0, %cst_106 {dimension_numbers = #tpu.dot_dimension_numbers<[1], [0], [0], [1], [0, 0, 1, 1], [], []>} : vector<8x32xbf16>, vector<32x128xbf16>, vector<8x128xf32> -> vector<8x128xf32>
    %667 = arith.addf %665, %666 : vector<8x128xf32>
    %668 = arith.negf %667 : vector<8x128xf32>
    %669 = math.exp %668 : vector<8x128xf32>
    %cst_107 = arith.constant 1.000000e+00 : f32
    %670 = vector.broadcast %cst_107 : f32 to vector<8x128xf32>
    %671 = arith.addf %670, %669 : vector<8x128xf32>
    %672 = arith.divf %670, %671 : vector<8x128xf32>
    %673 = vector.extract_strided_slice %667 {offsets = [0, 96], sizes = [8, 32], strides = [1, 1]} : vector<8x128xf32> to vector<8x32xf32>
    %674 = math.tanh %673 : vector<8x32xf32>
    %675 = vector.extract_strided_slice %672 {offsets = [0, 0], sizes = [8, 32], strides = [1, 1]} : vector<8x128xf32> to vector<8x32xf32>
    %676 = vector.extract_strided_slice %672 {offsets = [0, 32], sizes = [8, 32], strides = [1, 1]} : vector<8x128xf32> to vector<8x32xf32>
    %677 = vector.extract_strided_slice %672 {offsets = [0, 64], sizes = [8, 32], strides = [1, 1]} : vector<8x128xf32> to vector<8x32xf32>
    %678 = arith.mulf %676, %660 : vector<8x32xf32>
    %679 = arith.mulf %675, %674 : vector<8x32xf32>
    %680 = arith.addf %678, %679 : vector<8x32xf32>
    %681 = math.tanh %680 : vector<8x32xf32>
    %682 = arith.mulf %677, %681 : vector<8x32xf32>
    %683 = arith.truncf %682 : vector<8x32xf32> to vector<8x32xbf16>
    %684 = arith.addf %664, %682 : vector<8x32xf32>
    %c272 = arith.constant 272 : index
    %c0_108 = arith.constant 0 : index
    %685 = vector.load %arg0[%c272, %c0_108] : memref<288x128xf32, #tpu.memory_space<vmem>>, vector<8x128xf32>
    %cst_109 = arith.constant dense<0.000000e+00> : vector<8x128xf32>
    %686 = tpu.matmul %683, %0, %cst_109 {dimension_numbers = #tpu.dot_dimension_numbers<[1], [0], [0], [1], [0, 0, 1, 1], [], []>} : vector<8x32xbf16>, vector<32x128xbf16>, vector<8x128xf32> -> vector<8x128xf32>
    %687 = arith.addf %685, %686 : vector<8x128xf32>
    %688 = arith.negf %687 : vector<8x128xf32>
    %689 = math.exp %688 : vector<8x128xf32>
    %cst_110 = arith.constant 1.000000e+00 : f32
    %690 = vector.broadcast %cst_110 : f32 to vector<8x128xf32>
    %691 = arith.addf %690, %689 : vector<8x128xf32>
    %692 = arith.divf %690, %691 : vector<8x128xf32>
    %693 = vector.extract_strided_slice %687 {offsets = [0, 96], sizes = [8, 32], strides = [1, 1]} : vector<8x128xf32> to vector<8x32xf32>
    %694 = math.tanh %693 : vector<8x32xf32>
    %695 = vector.extract_strided_slice %692 {offsets = [0, 0], sizes = [8, 32], strides = [1, 1]} : vector<8x128xf32> to vector<8x32xf32>
    %696 = vector.extract_strided_slice %692 {offsets = [0, 32], sizes = [8, 32], strides = [1, 1]} : vector<8x128xf32> to vector<8x32xf32>
    %697 = vector.extract_strided_slice %692 {offsets = [0, 64], sizes = [8, 32], strides = [1, 1]} : vector<8x128xf32> to vector<8x32xf32>
    %698 = arith.mulf %696, %680 : vector<8x32xf32>
    %699 = arith.mulf %695, %694 : vector<8x32xf32>
    %700 = arith.addf %698, %699 : vector<8x32xf32>
    %701 = math.tanh %700 : vector<8x32xf32>
    %702 = arith.mulf %697, %701 : vector<8x32xf32>
    %703 = arith.truncf %702 : vector<8x32xf32> to vector<8x32xbf16>
    %704 = arith.addf %684, %702 : vector<8x32xf32>
    %c280 = arith.constant 280 : index
    %c0_111 = arith.constant 0 : index
    %705 = vector.load %arg0[%c280, %c0_111] : memref<288x128xf32, #tpu.memory_space<vmem>>, vector<8x128xf32>
    %cst_112 = arith.constant dense<0.000000e+00> : vector<8x128xf32>
    %706 = tpu.matmul %703, %0, %cst_112 {dimension_numbers = #tpu.dot_dimension_numbers<[1], [0], [0], [1], [0, 0, 1, 1], [], []>} : vector<8x32xbf16>, vector<32x128xbf16>, vector<8x128xf32> -> vector<8x128xf32>
    %707 = arith.addf %705, %706 : vector<8x128xf32>
    %708 = arith.negf %707 : vector<8x128xf32>
    %709 = math.exp %708 : vector<8x128xf32>
    %cst_113 = arith.constant 1.000000e+00 : f32
    %710 = vector.broadcast %cst_113 : f32 to vector<8x128xf32>
    %711 = arith.addf %710, %709 : vector<8x128xf32>
    %712 = arith.divf %710, %711 : vector<8x128xf32>
    %713 = vector.extract_strided_slice %707 {offsets = [0, 96], sizes = [8, 32], strides = [1, 1]} : vector<8x128xf32> to vector<8x32xf32>
    %714 = math.tanh %713 : vector<8x32xf32>
    %715 = vector.extract_strided_slice %712 {offsets = [0, 0], sizes = [8, 32], strides = [1, 1]} : vector<8x128xf32> to vector<8x32xf32>
    %716 = vector.extract_strided_slice %712 {offsets = [0, 32], sizes = [8, 32], strides = [1, 1]} : vector<8x128xf32> to vector<8x32xf32>
    %717 = vector.extract_strided_slice %712 {offsets = [0, 64], sizes = [8, 32], strides = [1, 1]} : vector<8x128xf32> to vector<8x32xf32>
    %718 = arith.mulf %716, %700 : vector<8x32xf32>
    %719 = arith.mulf %715, %714 : vector<8x32xf32>
    %720 = arith.addf %718, %719 : vector<8x32xf32>
    %721 = math.tanh %720 : vector<8x32xf32>
    %722 = arith.mulf %717, %721 : vector<8x32xf32>
    %723 = arith.addf %704, %722 : vector<8x32xf32>
    %cst_114 = arith.constant 0.027777778 : f32
    %724 = vector.broadcast %cst_114 : f32 to vector<8x32xf32>
    %725 = arith.mulf %723, %724 : vector<8x32xf32>
    %726 = arith.truncf %725 : vector<8x32xf32> to vector<8x32xbf16>
    %c0_115 = arith.constant 0 : index
    %c0_116 = arith.constant 0 : index
    %727 = vector.load %arg4[%c0_115, %c0_116] : memref<32x128xbf16, #tpu.memory_space<vmem>>, vector<32x128xbf16>
    %cst_117 = arith.constant dense<0.000000e+00> : vector<8x128xf32>
    %728 = tpu.matmul %726, %727, %cst_117 {dimension_numbers = #tpu.dot_dimension_numbers<[1], [0], [0], [1], [0, 0, 1, 1], [], []>} : vector<8x32xbf16>, vector<32x128xbf16>, vector<8x128xf32> -> vector<8x128xf32>
    %c0_118 = arith.constant 0 : index
    %c0_119 = arith.constant 0 : index
    %729 = vector.load %arg5[%c0_118, %c0_119] : memref<1x128xf32, #tpu.memory_space<vmem>>, vector<1x128xf32>
    %730 = vector.broadcast %729 : vector<1x128xf32> to vector<8x128xf32>
    %731 = arith.addf %728, %730 : vector<8x128xf32>
    %732 = arith.negf %731 : vector<8x128xf32>
    %733 = math.exp %732 : vector<8x128xf32>
    %cst_120 = arith.constant 1.000000e+00 : f32
    %734 = vector.broadcast %cst_120 : f32 to vector<8x128xf32>
    %735 = arith.addf %734, %733 : vector<8x128xf32>
    %736 = arith.divf %734, %735 : vector<8x128xf32>
    %c0_121 = arith.constant 0 : index
    %c0_122 = arith.constant 0 : index
    %737 = vector.load %arg6[%c0_121, %c0_122] : memref<8x128xf32, #tpu.memory_space<vmem>>, vector<8x128xf32>
    tpu.vector_store %arg6[%c0_121, %c0_122], %736 {strides = array<i32>} : memref<8x128xf32, #tpu.memory_space<vmem>>, vector<8x128xf32>,
    %c0_123 = arith.constant 0 : index
    %c0_124 = arith.constant 0 : index
    %738 = vector.load %arg7[%c0_123, %c0_124] : memref<8x32xf32, #tpu.memory_space<vmem>>, vector<8x32xf32>
    tpu.vector_store %arg7[%c0_123, %c0_124], %722 {strides = array<i32>} : memref<8x32xf32, #tpu.memory_space<vmem>>, vector<8x32xf32>,
    %c0_125 = arith.constant 0 : index
    %c0_126 = arith.constant 0 : index
    %739 = vector.load %arg8[%c0_125, %c0_126] : memref<8x32xf32, #tpu.memory_space<vmem>>, vector<8x32xf32>
    tpu.vector_store %arg8[%c0_125, %c0_126], %720 {strides = array<i32>} : memref<8x32xf32, #tpu.memory_space<vmem>>, vector<8x32xf32>,
    return
  }
}

</mosaic_0001>

<bundles_post_ra>
// kernel: rnn_model_forward.1
= control target key start
LH: loop header
LB: loop body
LE: loop exit
PB: predicated region body
PF: predicated region fallthrough
CT: control target
= control target key end

     0   :  { %14 = vsyncpa [#allocation3], 0  ;;  %s3275_s0 = inlined_call_operand.vmem [shape: f32[288,128], index: 0, kind: input, shape index: {}]   ;;  %s3276_s1 = inlined_call_operand.vmem [shape: f32[8,32], index: 1, kind: input, shape index: {}]   ;;  %s3277_s2 = inlined_call_operand.vmem [shape: f32[8,32], index: 2, kind: input, shape index: {}]   ;;  %s3278_s3 = inlined_call_operand.vmem [shape: bf16[32,128], index: 3, kind: input, shape index: {}]   ;;  %s3279_s4 = inlined_call_operand.vmem [shape: bf16[32,128], index: 4, kind: input, shape index: {}]   ;;  %s3280_s5 = inlined_call_operand.vmem [shape: f32[1,128], index: 5, kind: input, shape index: {}]   ;;  %s3281_s6 = inlined_call_operand.hbm [shape: f32[8,128], index: 6, kind: output, shape index: {0}]   ;;  %s3282_s7 = inlined_call_operand.hbm [shape: f32[8,32], index: 7, kind: output, shape index: {1}]   ;;  %s3283_s8 = inlined_call_operand.hbm [shape: f32[8,32], index: 8, kind: output, shape index: {2}]  }
   0x1   :  { %v2854_v0 = vld [vmem:[%s3278_s3 + $0x8] sm:$0xff] }
   0x2   :  { %15 = vsyncpa [#allocation5], 0  ;;  %59 = vmatpush.bf16.msra.mxu0 %v2854_v0  ;;  %v2860_v1 = vld [vmem:[%s3278_s3] sm:$0xff]  ;;  %123 = vmatpush.bf16.msra.mxu1 %v2854_v0  ;;  %vm49_vm0 = vcmask 261120   ;;  %s2800_s12 = smov 32   ;;  %v110_v34 = vld [vmem:[%s3275_s0 + $0x8] sm:$0xff] }
   0x3   :  { %v33_v2 = vld [vmem:[%s3276_s1] sm:$0xff]  ;;  %183 = vmatpush.bf16.msra.mxu2 %v2854_v0  ;;  %243 = vmatpush.bf16.msra.mxu3 %v2854_v0  ;;  %v170_v62 = vld [vmem:[%s3275_s0 + $0x10] sm:$0xff]  ;;  %s2298_s29 = sshll.u32 %s3282_s7, 4  ;;  %s2803_s30 = smov [#allocation4]   ;;  %s2299_s29 = int_to_ptr.hbm [resolvable:$true] %s2298_s29 }
   0x4   :  { %v35_v3 = vpack.c.bf16 %v33_v2, %v33_v2  ;;  %v36_v4 = vld [vmem:[%s3275_s0] sm:$0xff]  ;;  %s2296_s9 = sshll.u32 %s2803_s30, 4  ;;  %s2804_s10 = smov [#allocation6]   ;;  %s2297_s9 = int_to_ptr.vmem [resolvable:$true] %s2296_s9 }
   0x5   :  { %v34_v9 = vld [vmem:[%s3277_s2] sm:$0xff]  ;;  %s2801_s2 = smov 64   ;;  %s2307_s1 = sshll.u32 %s2804_s10, 4  ;;  %s2308_s1 = int_to_ptr.vmem [resolvable:$true] %s2307_s1 }
   0x6   :  { %60 = vmatpush.bf16.msra.mxu0 %v2860_v1  ;;  %124 = vmatpush.bf16.msra.mxu1 %v2860_v1  ;;  %s2805_s7 = smov [#allocation2]  }
   0x7   :  { %184 = vmatpush.bf16.msra.mxu2 %v2860_v1  ;;  %244 = vmatpush.bf16.msra.mxu3 %v2860_v1 }
   0x9   :  { %2335 = vmatmul.msk.bf16.vlgmr.msra.gmra.mxu0 %vm49_vm0, %v35_v3 }
   0xa   :  { %303 = vmatpush.bf16.msrb.mxu0 %v2854_v0  ;;  %363 = vmatpush.bf16.msrb.mxu1 %v2854_v0 }
   0xb   :  { %423 = vmatpush.bf16.msrb.mxu2 %v2854_v0  ;;  %483 = vmatpush.bf16.msrb.mxu3 %v2854_v0 }
   0xe   :  { %304 = vmatpush.bf16.msrb.mxu0 %v2860_v1  ;;  %364 = vmatpush.bf16.msrb.mxu1 %v2860_v1 }
   0xf   :  { %424 = vmatpush.bf16.msrb.mxu2 %v2860_v1  ;;  %484 = vmatpush.bf16.msrb.mxu3 %v2860_v1 }
  0x12   :  { %543 = vmatpush.bf16.msra.mxu0 %v2854_v0 }
  0x16   :  { %544 = vmatpush.bf16.msra.mxu0 %v2860_v1 }
  0x86   :  { %v62_v5 = vpop.f32.mrf.mxu0 }
  0x87   :  { %v66_v6 = vadd.f32 %v62_v5, %v36_v4 }
  0x89   :  { %2428 = vtanh.f32 %v66_v6  ;;  %v2336_v10 = vmul.f32 -1.442695, %v66_v6 }
  0x8b   :  { %2430 = vpow2.f32 %v2336_v10 }
  0x8e   :  { %v64_v7 = vpop.f32.mrf.mxu0 }
  0x8f   :  { %v2429_v8 = vpop.eup %2428 }
  0x90   :  { %93 = vrot.lane.b32.xlu0 %v2429_v8, %s2800_s12 }
  0x91   :  { %v2431_v11 = vpop.eup %2430 }
  0x92   :  { %v70_v12 = vadd.f32 1.0, %v2431_v11 }
  0x94   :  { %2432 = vrcp.f32 %v70_v12  ;;  %v82_v18 = vand.u32 2147483648, %v70_v12  ;;  %vm76_vm2 = vweird.f32 %v70_v12  ;;  %v80_v19 = vand.u32 2147483647, %v70_v12 }
  0x96   :  { %v83_v21 = vor.u32 1.1754944e-38, %v82_v18  ;;  %vm81_vm4 = vcmp.eq.f32.partialorder %v80_v19, 8.507059e+37 }
  0x98   :  { %88 = vrot.lane.b32.xlu0 %v34_v9, %s2800_s12 }
  0x9a   :  { %v2433_v13 = vpop.eup %2432 }
  0x9b   :  { %v72_v14 = vmul.f32 %v2433_v13, %v70_v12  ;;  %vm77_vm1 = vweird.f32 %v2433_v13 }
  0x9c   :  { %vm78_vm3 = vmor %vm76_vm2, %vm77_vm1 }
  0x9d   :  { %v73_v15 = vsub.f32 1.0, %v72_v14 }
  0x9f   :  { %v74_v16 = vmul.f32 %v2433_v13, %v73_v15 }
  0xa1   :  { %v75_v17 = vadd.f32 %v2433_v13, %v74_v16 }
  0xa3   :  { %v79_v20 = vsel %vm78_vm3, %v2433_v13, %v75_v17 }
  0xa4   :  { %v84_v23 = vsel %vm81_vm4, %v83_v21, %v79_v20 }
 0x102   :  { %v94_v22 = vpop.permute.xlu0 %93 }
 0x103   :  { %v96_v24 = vmul.f32 %v94_v22, %v84_v23 }
 0x105   :  { %98 = vrot.lane.b32.xlu1 %v96_v24, %s2800_s12 }
 0x10a   :  { %v89_v25 = vpop.permute.xlu0 %88 }
 0x10b   :  { %v91_v26 = vmul.f32 %v89_v25, %v84_v23 }
 0x177   :  { %v99_v27 = vpop.permute.xlu1 %98 }
 0x178   :  { %v101_v28 = vadd.f32 %v99_v27, %v91_v26 }
 0x17a   :  { %2434 = vtanh.f32 %v101_v28 }
 0x180   :  { %v2435_v29 = vpop.eup %2434 }
 0x181   :  { %104 = vrot.lane.b32.xlu1 %v2435_v29, %s2800_s12 }
 0x1f3   :  { %v105_v30 = vpop.permute.xlu1 %104 }
 0x1f4   :  { %v2893_v31 = vmul.f32 %v105_v30, %v84_v23  ;;  %v230_v30 = vld [vmem:[%s3275_s0 + $0x18] sm:$0xff] }
 0x1f6   :  { %v108_v32 = vpack.c.bf16 %v2893_v31, %v2893_v31 }
 0x1f8   :  { %112 = vrot.lane.b32.xlu2 %v108_v32, %s2801_s2 }
 0x252   :  { %v113_v33 = vpop.permute.xlu2 %112 }
 0x253   :  { %2337 = vmatmul.msk.bf16.vlgmr.msra.gmra.mxu1 %vm49_vm0, %v113_v33 }
 0x254   :  { %603 = vmatpush.bf16.msra.mxu1 %v2854_v0 }
 0x258   :  { %604 = vmatpush.bf16.msra.mxu1 %v2860_v1 }
 0x2d0   :  { %v126_v35 = vpop.f32.mrf.mxu1 }
 0x2d1   :  { %v130_v36 = vadd.f32 %v126_v35, %v110_v34 }
 0x2d3   :  { %2436 = vtanh.f32 %v130_v36  ;;  %v2338_v39 = vmul.f32 -1.442695, %v130_v36 }
 0x2d5   :  { %2438 = vpow2.f32 %v2338_v39 }
 0x2d8   :  { %v128_v37 = vpop.f32.mrf.mxu1 }
 0x2d9   :  { %v2437_v38 = vpop.eup %2436 }
 0x2da   :  { %153 = vrot.lane.b32.xlu2 %v2437_v38, %s2800_s12 }
 0x2db   :  { %v2439_v40 = vpop.eup %2438 }
 0x2dc   :  { %v134_v41 = vadd.f32 1.0, %v2439_v40 }
 0x2de   :  { %2440 = vrcp.f32 %v134_v41  ;;  %v146_v47 = vand.u32 2147483648, %v134_v41  ;;  %vm140_vm6 = vweird.f32 %v134_v41  ;;  %v144_v48 = vand.u32 2147483647, %v134_v41 }
 0x2e0   :  { %v147_v50 = vor.u32 1.1754944e-38, %v146_v47  ;;  %vm145_vm8 = vcmp.eq.f32.partialorder %v144_v48, 8.507059e+37 }
 0x2e4   :  { %v2441_v42 = vpop.eup %2440 }
 0x2e5   :  { %v136_v43 = vmul.f32 %v2441_v42, %v134_v41  ;;  %vm141_vm5 = vweird.f32 %v2441_v42 }
 0x2e6   :  { %vm142_vm7 = vmor %vm140_vm6, %vm141_vm5 }
 0x2e7   :  { %v137_v44 = vsub.f32 1.0, %v136_v43 }
 0x2e9   :  { %v138_v45 = vmul.f32 %v2441_v42, %v137_v44 }
 0x2eb   :  { %v139_v46 = vadd.f32 %v2441_v42, %v138_v45 }
 0x2ed   :  { %v143_v49 = vsel %vm142_vm7, %v2441_v42, %v139_v46 }
 0x2ee   :  { %v148_v52 = vsel %vm145_vm8, %v147_v50, %v143_v49 }
 0x2ef   :  { %v151_v54 = vmul.f32 %v148_v52, %v101_v28 }
 0x334   :  { %v154_v51 = vpop.permute.xlu2 %153 }
 0x335   :  { %v156_v53 = vmul.f32 %v154_v51, %v148_v52 }
 0x337   :  { %158 = vrot.lane.b32.xlu0 %v156_v53, %s2800_s12 }
 0x3a9   :  { %v159_v55 = vpop.permute.xlu0 %158 }
 0x3aa   :  { %v161_v56 = vadd.f32 %v159_v55, %v151_v54 }
 0x3ac   :  { %2442 = vtanh.f32 %v161_v56 }
 0x3b2   :  { %v2443_v57 = vpop.eup %2442 }
 0x3b3   :  { %164 = vrot.lane.b32.xlu1 %v2443_v57, %s2800_s12 }
 0x425   :  { %v165_v58 = vpop.permute.xlu1 %164 }
 0x426   :  { %v167_v59 = vmul.f32 %v165_v58, %v148_v52 }
 0x428   :  { %v168_v60 = vpack.c.bf16 %v167_v59, %v167_v59  ;;  %v169_v25 = vadd.f32 %v167_v59, %v2893_v31  ;;  %v290_v59 = vld [vmem:[%s3275_s0 + $0x20] sm:$0xff] }
 0x42a   :  { %172 = vrot.lane.b32.xlu2 %v168_v60, %s2801_s2 }
 0x484   :  { %v173_v61 = vpop.permute.xlu2 %172 }
 0x485   :  { %2339 = vmatmul.msk.bf16.vlgmr.msra.gmra.mxu2 %vm49_vm0, %v173_v61 }
 0x486   :  { %663 = vmatpush.bf16.msra.mxu2 %v2854_v0 }
 0x48a   :  { %664 = vmatpush.bf16.msra.mxu2 %v2860_v1 }
 0x508   :  { %v186_v63 = vpop.f32.mrf.mxu2 }
 0x509   :  { %v190_v2 = vadd.f32 %v186_v63, %v170_v62 }
 0x50b   :  { %2444 = vtanh.f32 %v190_v2  ;;  %v2340_v5 = vmul.f32 -1.442695, %v190_v2 }
 0x50d   :  { %2446 = vpow2.f32 %v2340_v5 }
 0x510   :  { %v188_v3 = vpop.f32.mrf.mxu2 }
 0x511   :  { %v2445_v4 = vpop.eup %2444 }
 0x512   :  { %213 = vrot.lane.b32.xlu0 %v2445_v4, %s2800_s12 }
 0x513   :  { %v2447_v6 = vpop.eup %2446 }
 0x514   :  { %v194_v7 = vadd.f32 1.0, %v2447_v6 }
 0x516   :  { %2448 = vrcp.f32 %v194_v7  ;;  %v206_v13 = vand.u32 2147483648, %v194_v7  ;;  %vm200_vm10 = vweird.f32 %v194_v7  ;;  %v204_v14 = vand.u32 2147483647, %v194_v7 }
 0x518   :  { %v207_v16 = vor.u32 1.1754944e-38, %v206_v13  ;;  %vm205_vm12 = vcmp.eq.f32.partialorder %v204_v14, 8.507059e+37 }
 0x51c   :  { %v2449_v8 = vpop.eup %2448 }
 0x51d   :  { %v196_v9 = vmul.f32 %v2449_v8, %v194_v7  ;;  %vm201_vm9 = vweird.f32 %v2449_v8 }
 0x51e   :  { %vm202_vm11 = vmor %vm200_vm10, %vm201_vm9 }
 0x51f   :  { %v197_v10 = vsub.f32 1.0, %v196_v9 }
 0x521   :  { %v198_v11 = vmul.f32 %v2449_v8, %v197_v10 }
 0x523   :  { %v199_v12 = vadd.f32 %v2449_v8, %v198_v11 }
 0x525   :  { %v203_v15 = vsel %vm202_vm11, %v2449_v8, %v199_v12 }
 0x526   :  { %v208_v18 = vsel %vm205_vm12, %v207_v16, %v203_v15 }
 0x527   :  { %v211_v20 = vmul.f32 %v208_v18, %v161_v56 }
 0x584   :  { %v214_v17 = vpop.permute.xlu0 %213 }
 0x585   :  { %v216_v19 = vmul.f32 %v214_v17, %v208_v18 }
 0x587   :  { %218 = vrot.lane.b32.xlu1 %v216_v19, %s2800_s12 }
 0x5f9   :  { %v219_v21 = vpop.permute.xlu1 %218 }
 0x5fa   :  { %v221_v22 = vadd.f32 %v219_v21, %v211_v20 }
 0x5fc   :  { %2450 = vtanh.f32 %v221_v22 }
 0x602   :  { %v2451_v23 = vpop.eup %2450 }
 0x603   :  { %224 = vrot.lane.b32.xlu2 %v2451_v23, %s2800_s12 }
 0x65d   :  { %v225_v24 = vpop.permute.xlu2 %224 }
 0x65e   :  { %v227_v26 = vmul.f32 %v225_v24, %v208_v18 }
 0x660   :  { %v228_v27 = vpack.c.bf16 %v227_v26, %v227_v26  ;;  %v229_v28 = vadd.f32 %v227_v26, %v169_v25  ;;  %v350_v26 = vld [vmem:[%s3275_s0 + $0x28] sm:$0xff] }
 0x662   :  { %232 = vrot.lane.b32.xlu0 %v228_v27, %s2801_s2 }
 0x6d4   :  { %v233_v29 = vpop.permute.xlu0 %232 }
 0x6d5   :  { %2341 = vmatmul.msk.bf16.vlgmr.msra.gmra.mxu3 %vm49_vm0, %v233_v29 }
 0x6d6   :  { %723 = vmatpush.bf16.msra.mxu3 %v2854_v0 }
 0x6da   :  { %724 = vmatpush.bf16.msra.mxu3 %v2860_v1 }
 0x758   :  { %v246_v32 = vpop.f32.mrf.mxu3 }
 0x759   :  { %v250_v33 = vadd.f32 %v246_v32, %v230_v30 }
 0x75b   :  { %2452 = vtanh.f32 %v250_v33  ;;  %v2342_v35 = vmul.f32 -1.442695, %v250_v33 }
 0x75d   :  { %2454 = vpow2.f32 %v2342_v35 }
 0x760   :  { %v248_v31 = vpop.f32.mrf.mxu3 }
 0x761   :  { %v2453_v34 = vpop.eup %2452 }
 0x762   :  { %273 = vrot.lane.b32.xlu1 %v2453_v34, %s2800_s12 }
 0x763   :  { %v2455_v36 = vpop.eup %2454 }
 0x764   :  { %v254_v37 = vadd.f32 1.0, %v2455_v36 }
 0x766   :  { %2456 = vrcp.f32 %v254_v37  ;;  %v266_v43 = vand.u32 2147483648, %v254_v37  ;;  %vm260_vm14 = vweird.f32 %v254_v37  ;;  %v264_v44 = vand.u32 2147483647, %v254_v37 }
 0x768   :  { %v267_v46 = vor.u32 1.1754944e-38, %v266_v43  ;;  %vm265_vm1 = vcmp.eq.f32.partialorder %v264_v44, 8.507059e+37 }
 0x76c   :  { %v2457_v38 = vpop.eup %2456 }
 0x76d   :  { %v256_v39 = vmul.f32 %v2457_v38, %v254_v37  ;;  %vm261_vm13 = vweird.f32 %v2457_v38 }
 0x76e   :  { %vm262_vm15 = vmor %vm260_vm14, %vm261_vm13 }
 0x76f   :  { %v257_v40 = vsub.f32 1.0, %v256_v39 }
 0x771   :  { %v258_v41 = vmul.f32 %v2457_v38, %v257_v40 }
 0x773   :  { %v259_v42 = vadd.f32 %v2457_v38, %v258_v41 }
 0x775   :  { %v263_v45 = vsel %vm262_vm15, %v2457_v38, %v259_v42 }
 0x776   :  { %v268_v48 = vsel %vm265_vm1, %v267_v46, %v263_v45 }
 0x777   :  { %v271_v50 = vmul.f32 %v268_v48, %v221_v22 }
 0x7d4   :  { %v274_v47 = vpop.permute.xlu1 %273 }
 0x7d5   :  { %v276_v49 = vmul.f32 %v274_v47, %v268_v48 }
 0x7d7   :  { %278 = vrot.lane.b32.xlu2 %v276_v49, %s2800_s12 }
 0x831   :  { %v279_v51 = vpop.permute.xlu2 %278 }
 0x832   :  { %v281_v52 = vadd.f32 %v279_v51, %v271_v50 }
 0x834   :  { %2458 = vtanh.f32 %v281_v52 }
 0x83a   :  { %v2459_v53 = vpop.eup %2458 }
 0x83b   :  { %284 = vrot.lane.b32.xlu0 %v2459_v53, %s2800_s12 }
 0x8ad   :  { %v285_v54 = vpop.permute.xlu0 %284 }
 0x8ae   :  { %v287_v55 = vmul.f32 %v285_v54, %v268_v48 }
 0x8b0   :  { %v288_v56 = vpack.c.bf16 %v287_v55, %v287_v55  ;;  %v289_v57 = vadd.f32 %v287_v55, %v229_v28  ;;  %v410_v55 = vld [vmem:[%s3275_s0 + $0x30] sm:$0xff] }
 0x8b2   :  { %292 = vrot.lane.b32.xlu1 %v288_v56, %s2801_s2 }
 0x924   :  { %v293_v58 = vpop.permute.xlu1 %292 }
 0x925   :  { %2343 = vmatmul.msk.bf16.vlgmr.msrb.gmra.mxu0 %vm49_vm0, %v293_v58 }
 0x926   :  { %783 = vmatpush.bf16.msrb.mxu0 %v2854_v0 }
 0x92a   :  { %784 = vmatpush.bf16.msrb.mxu0 %v2860_v1 }
 0x9a2   :  { %v306_v60 = vpop.f32.mrf.mxu0 }
 0x9a3   :  { %v310_v61 = vadd.f32 %v306_v60, %v290_v59 }
 0x9a5   :  { %2460 = vtanh.f32 %v310_v61  ;;  %v2344_v2 = vmul.f32 -1.442695, %v310_v61 }
 0x9a7   :  { %2462 = vpow2.f32 %v2344_v2 }
 0x9aa   :  { %v308_v62 = vpop.f32.mrf.mxu0 }
 0x9ab   :  { %v2461_v63 = vpop.eup %2460 }
 0x9ac   :  { %333 = vrot.lane.b32.xlu2 %v2461_v63, %s2800_s12 }
 0x9ad   :  { %v2463_v3 = vpop.eup %2462 }
 0x9ae   :  { %v314_v4 = vadd.f32 1.0, %v2463_v3 }
 0x9b0   :  { %2464 = vrcp.f32 %v314_v4  ;;  %v326_v10 = vand.u32 2147483648, %v314_v4  ;;  %vm320_vm3 = vweird.f32 %v314_v4  ;;  %v324_v11 = vand.u32 2147483647, %v314_v4 }
 0x9b2   :  { %v327_v13 = vor.u32 1.1754944e-38, %v326_v10  ;;  %vm325_vm5 = vcmp.eq.f32.partialorder %v324_v11, 8.507059e+37 }
 0x9b6   :  { %v2465_v5 = vpop.eup %2464 }
 0x9b7   :  { %v316_v6 = vmul.f32 %v2465_v5, %v314_v4  ;;  %vm321_vm2 = vweird.f32 %v2465_v5 }
 0x9b8   :  { %vm322_vm4 = vmor %vm320_vm3, %vm321_vm2 }
 0x9b9   :  { %v317_v7 = vsub.f32 1.0, %v316_v6 }
 0x9bb   :  { %v318_v8 = vmul.f32 %v2465_v5, %v317_v7 }
 0x9bd   :  { %v319_v9 = vadd.f32 %v2465_v5, %v318_v8 }
 0x9bf   :  { %v323_v12 = vsel %vm322_vm4, %v2465_v5, %v319_v9 }
 0x9c0   :  { %v328_v15 = vsel %vm325_vm5, %v327_v13, %v323_v12 }
 0x9c1   :  { %v331_v17 = vmul.f32 %v328_v15, %v281_v52 }
 0xa06   :  { %v334_v14 = vpop.permute.xlu2 %333 }
 0xa07   :  { %v336_v16 = vmul.f32 %v334_v14, %v328_v15 }
 0xa09   :  { %338 = vrot.lane.b32.xlu0 %v336_v16, %s2800_s12 }
 0xa7b   :  { %v339_v18 = vpop.permute.xlu0 %338 }
 0xa7c   :  { %v341_v19 = vadd.f32 %v339_v18, %v331_v17 }
 0xa7e   :  { %2466 = vtanh.f32 %v341_v19 }
 0xa84   :  { %v2467_v20 = vpop.eup %2466 }
 0xa85   :  { %344 = vrot.lane.b32.xlu1 %v2467_v20, %s2800_s12 }
 0xaf7   :  { %v345_v21 = vpop.permute.xlu1 %344 }
 0xaf8   :  { %v347_v22 = vmul.f32 %v345_v21, %v328_v15 }
 0xafa   :  { %v348_v23 = vpack.c.bf16 %v347_v22, %v347_v22  ;;  %v349_v24 = vadd.f32 %v347_v22, %v289_v57  ;;  %v470_v22 = vld [vmem:[%s3275_s0 + $0x38] sm:$0xff] }
 0xafc   :  { %352 = vrot.lane.b32.xlu2 %v348_v23, %s2801_s2 }
 0xb56   :  { %v353_v25 = vpop.permute.xlu2 %352 }
 0xb57   :  { %2345 = vmatmul.msk.bf16.vlgmr.msrb.gmra.mxu1 %vm49_vm0, %v353_v25 }
 0xb58   :  { %843 = vmatpush.bf16.msrb.mxu1 %v2854_v0 }
 0xb5c   :  { %844 = vmatpush.bf16.msrb.mxu1 %v2860_v1 }
 0xbd4   :  { %v366_v27 = vpop.f32.mrf.mxu1 }
 0xbd5   :  { %v370_v28 = vadd.f32 %v366_v27, %v350_v26 }
 0xbd7   :  { %2468 = vtanh.f32 %v370_v28  ;;  %v2346_v32 = vmul.f32 -1.442695, %v370_v28 }
 0xbd9   :  { %2470 = vpow2.f32 %v2346_v32 }
 0xbdc   :  { %v368_v29 = vpop.f32.mrf.mxu1 }
 0xbdd   :  { %v2469_v30 = vpop.eup %2468 }
 0xbde   :  { %393 = vrot.lane.b32.xlu0 %v2469_v30, %s2800_s12 }
 0xbdf   :  { %v2471_v33 = vpop.eup %2470 }
 0xbe0   :  { %v374_v31 = vadd.f32 1.0, %v2471_v33 }
 0xbe2   :  { %2472 = vrcp.f32 %v374_v31  ;;  %v386_v39 = vand.u32 2147483648, %v374_v31  ;;  %vm380_vm7 = vweird.f32 %v374_v31  ;;  %v384_v40 = vand.u32 2147483647, %v374_v31 }
 0xbe4   :  { %v387_v42 = vor.u32 1.1754944e-38, %v386_v39  ;;  %vm385_vm9 = vcmp.eq.f32.partialorder %v384_v40, 8.507059e+37 }
 0xbe8   :  { %v2473_v34 = vpop.eup %2472 }
 0xbe9   :  { %v376_v35 = vmul.f32 %v2473_v34, %v374_v31  ;;  %vm381_vm6 = vweird.f32 %v2473_v34 }
 0xbea   :  { %vm382_vm8 = vmor %vm380_vm7, %vm381_vm6 }
 0xbeb   :  { %v377_v36 = vsub.f32 1.0, %v376_v35 }
 0xbed   :  { %v378_v37 = vmul.f32 %v2473_v34, %v377_v36 }
 0xbef   :  { %v379_v38 = vadd.f32 %v2473_v34, %v378_v37 }
 0xbf1   :  { %v383_v41 = vsel %vm382_vm8, %v2473_v34, %v379_v38 }
 0xbf2   :  { %v388_v44 = vsel %vm385_vm9, %v387_v42, %v383_v41 }
 0xbf3   :  { %v391_v46 = vmul.f32 %v388_v44, %v341_v19 }
 0xc50   :  { %v394_v43 = vpop.permute.xlu0 %393 }
 0xc51   :  { %v396_v45 = vmul.f32 %v394_v43, %v388_v44 }
 0xc53   :  { %398 = vrot.lane.b32.xlu1 %v396_v45, %s2800_s12 }
 0xcc5   :  { %v399_v47 = vpop.permute.xlu1 %398 }
 0xcc6   :  { %v401_v48 = vadd.f32 %v399_v47, %v391_v46 }
 0xcc8   :  { %2474 = vtanh.f32 %v401_v48 }
 0xcce   :  { %v2475_v49 = vpop.eup %2474 }
 0xccf   :  { %404 = vrot.lane.b32.xlu2 %v2475_v49, %s2800_s12 }
 0xd29   :  { %v405_v50 = vpop.permute.xlu2 %404 }
 0xd2a   :  { %v407_v51 = vmul.f32 %v405_v50, %v388_v44 }
 0xd2c   :  { %v408_v52 = vpack.c.bf16 %v407_v51, %v407_v51  ;;  %v409_v53 = vadd.f32 %v407_v51, %v349_v24  ;;  %v530_v51 = vld [vmem:[%s3275_s0 + $0x40] sm:$0xff] }
 0xd2e   :  { %412 = vrot.lane.b32.xlu0 %v408_v52, %s2801_s2 }
 0xda0   :  { %v413_v54 = vpop.permute.xlu0 %412 }
 0xda1   :  { %2347 = vmatmul.msk.bf16.vlgmr.msrb.gmra.mxu2 %vm49_vm0, %v413_v54 }
 0xda2   :  { %903 = vmatpush.bf16.msrb.mxu2 %v2854_v0 }
 0xda6   :  { %904 = vmatpush.bf16.msrb.mxu2 %v2860_v1 }
 0xe24   :  { %v426_v56 = vpop.f32.mrf.mxu2 }
 0xe25   :  { %v430_v57 = vadd.f32 %v426_v56, %v410_v55 }
 0xe27   :  { %2476 = vtanh.f32 %v430_v57  ;;  %v2348_v60 = vmul.f32 -1.442695, %v430_v57 }
 0xe29   :  { %2478 = vpow2.f32 %v2348_v60 }
 0xe2c   :  { %v428_v58 = vpop.f32.mrf.mxu2 }
 0xe2d   :  { %v2477_v59 = vpop.eup %2476 }
 0xe2e   :  { %453 = vrot.lane.b32.xlu1 %v2477_v59, %s2800_s12 }
 0xe2f   :  { %v2479_v61 = vpop.eup %2478 }
 0xe30   :  { %v434_v62 = vadd.f32 1.0, %v2479_v61 }
 0xe32   :  { %2480 = vrcp.f32 %v434_v62  ;;  %v446_v6 = vand.u32 2147483648, %v434_v62  ;;  %vm440_vm11 = vweird.f32 %v434_v62  ;;  %v444_v7 = vand.u32 2147483647, %v434_v62 }
 0xe34   :  { %v447_v9 = vor.u32 1.1754944e-38, %v446_v6  ;;  %vm445_vm13 = vcmp.eq.f32.partialorder %v444_v7, 8.507059e+37 }
 0xe38   :  { %v2481_v63 = vpop.eup %2480 }
 0xe39   :  { %v436_v2 = vmul.f32 %v2481_v63, %v434_v62  ;;  %vm441_vm10 = vweird.f32 %v2481_v63 }
 0xe3a   :  { %vm442_vm12 = vmor %vm440_vm11, %vm441_vm10 }
 0xe3b   :  { %v437_v3 = vsub.f32 1.0, %v436_v2 }
 0xe3d   :  { %v438_v4 = vmul.f32 %v2481_v63, %v437_v3 }
 0xe3f   :  { %v439_v5 = vadd.f32 %v2481_v63, %v438_v4 }
 0xe41   :  { %v443_v8 = vsel %vm442_vm12, %v2481_v63, %v439_v5 }
 0xe42   :  { %v448_v11 = vsel %vm445_vm13, %v447_v9, %v443_v8 }
 0xe43   :  { %v451_v13 = vmul.f32 %v448_v11, %v401_v48 }
 0xea0   :  { %v454_v10 = vpop.permute.xlu1 %453 }
 0xea1   :  { %v456_v12 = vmul.f32 %v454_v10, %v448_v11 }
 0xea3   :  { %458 = vrot.lane.b32.xlu2 %v456_v12, %s2800_s12 }
 0xefd   :  { %v459_v14 = vpop.permute.xlu2 %458 }
 0xefe   :  { %v461_v15 = vadd.f32 %v459_v14, %v451_v13 }
 0xf00   :  { %2482 = vtanh.f32 %v461_v15 }
 0xf06   :  { %v2483_v16 = vpop.eup %2482 }
 0xf07   :  { %464 = vrot.lane.b32.xlu0 %v2483_v16, %s2800_s12 }
 0xf79   :  { %v465_v17 = vpop.permute.xlu0 %464 }
 0xf7a   :  { %v467_v18 = vmul.f32 %v465_v17, %v448_v11 }
 0xf7c   :  { %v468_v19 = vpack.c.bf16 %v467_v18, %v467_v18  ;;  %v469_v20 = vadd.f32 %v467_v18, %v409_v53  ;;  %v590_v18 = vld [vmem:[%s3275_s0 + $0x48] sm:$0xff] }
 0xf7e   :  { %472 = vrot.lane.b32.xlu1 %v468_v19, %s2801_s2 }
 0xff0   :  { %v473_v21 = vpop.permute.xlu1 %472 }
 0xff1   :  { %2349 = vmatmul.msk.bf16.vlgmr.msrb.gmra.mxu3 %vm49_vm0, %v473_v21 }
 0xff2   :  { %963 = vmatpush.bf16.msrb.mxu3 %v2854_v0 }
 0xff6   :  { %964 = vmatpush.bf16.msrb.mxu3 %v2860_v1 }
0x1074   :  { %v486_v23 = vpop.f32.mrf.mxu3 }
0x1075   :  { %v490_v24 = vadd.f32 %v486_v23, %v470_v22 }
0x1077   :  { %2484 = vtanh.f32 %v490_v24  ;;  %v2350_v27 = vmul.f32 -1.442695, %v490_v24 }
0x1079   :  { %2486 = vpow2.f32 %v2350_v27 }
0x107c   :  { %v488_v25 = vpop.f32.mrf.mxu3 }
0x107d   :  { %v2485_v26 = vpop.eup %2484 }
0x107e   :  { %513 = vrot.lane.b32.xlu2 %v2485_v26, %s2800_s12 }
0x107f   :  { %v2487_v28 = vpop.eup %2486 }
0x1080   :  { %v494_v29 = vadd.f32 1.0, %v2487_v28 }
0x1082   :  { %2488 = vrcp.f32 %v494_v29  ;;  %v506_v35 = vand.u32 2147483648, %v494_v29  ;;  %vm500_vm15 = vweird.f32 %v494_v29  ;;  %v504_v36 = vand.u32 2147483647, %v494_v29 }
0x1084   :  { %v507_v38 = vor.u32 1.1754944e-38, %v506_v35  ;;  %vm505_vm2 = vcmp.eq.f32.partialorder %v504_v36, 8.507059e+37 }
0x1088   :  { %v2489_v30 = vpop.eup %2488 }
0x1089   :  { %v496_v32 = vmul.f32 %v2489_v30, %v494_v29  ;;  %vm501_vm14 = vweird.f32 %v2489_v30 }
0x108a   :  { %vm502_vm1 = vmor %vm500_vm15, %vm501_vm14 }
0x108b   :  { %v497_v33 = vsub.f32 1.0, %v496_v32 }
0x108d   :  { %v498_v31 = vmul.f32 %v2489_v30, %v497_v33 }
0x108f   :  { %v499_v34 = vadd.f32 %v2489_v30, %v498_v31 }
0x1091   :  { %v503_v37 = vsel %vm502_vm1, %v2489_v30, %v499_v34 }
0x1092   :  { %v508_v40 = vsel %vm505_vm2, %v507_v38, %v503_v37 }
0x1093   :  { %v511_v42 = vmul.f32 %v508_v40, %v461_v15 }
0x10d8   :  { %v514_v39 = vpop.permute.xlu2 %513 }
0x10d9   :  { %v516_v41 = vmul.f32 %v514_v39, %v508_v40 }
0x10db   :  { %518 = vrot.lane.b32.xlu0 %v516_v41, %s2800_s12 }
0x114d   :  { %v519_v43 = vpop.permute.xlu0 %518 }
0x114e   :  { %v521_v44 = vadd.f32 %v519_v43, %v511_v42 }
0x1150   :  { %2490 = vtanh.f32 %v521_v44 }
0x1156   :  { %v2491_v45 = vpop.eup %2490 }
0x1157   :  { %524 = vrot.lane.b32.xlu1 %v2491_v45, %s2800_s12 }
0x11c9   :  { %v525_v46 = vpop.permute.xlu1 %524 }
0x11ca   :  { %v527_v47 = vmul.f32 %v525_v46, %v508_v40 }
0x11cc   :  { %v528_v48 = vpack.c.bf16 %v527_v47, %v527_v47  ;;  %v529_v49 = vadd.f32 %v527_v47, %v469_v20  ;;  %v650_v47 = vld [vmem:[%s3275_s0 + $0x50] sm:$0xff] }
0x11ce   :  { %532 = vrot.lane.b32.xlu2 %v528_v48, %s2801_s2 }
0x1228   :  { %v533_v50 = vpop.permute.xlu2 %532 }
0x1229   :  { %2351 = vmatmul.msk.bf16.vlgmr.msra.gmra.mxu0 %vm49_vm0, %v533_v50 }
0x122a   :  { %1023 = vmatpush.bf16.msra.mxu0 %v2854_v0 }
0x122e   :  { %1024 = vmatpush.bf16.msra.mxu0 %v2860_v1 }
0x12a6   :  { %v546_v52 = vpop.f32.mrf.mxu0 }
0x12a7   :  { %v550_v53 = vadd.f32 %v546_v52, %v530_v51 }
0x12a9   :  { %2492 = vtanh.f32 %v550_v53  ;;  %v2352_v56 = vmul.f32 -1.442695, %v550_v53 }
0x12ab   :  { %2494 = vpow2.f32 %v2352_v56 }
0x12ae   :  { %v548_v54 = vpop.f32.mrf.mxu0 }
0x12af   :  { %v2493_v55 = vpop.eup %2492 }
0x12b0   :  { %573 = vrot.lane.b32.xlu0 %v2493_v55, %s2800_s12 }
0x12b1   :  { %v2495_v57 = vpop.eup %2494 }
0x12b2   :  { %v554_v58 = vadd.f32 1.0, %v2495_v57 }
0x12b4   :  { %2496 = vrcp.f32 %v554_v58  ;;  %v566_v2 = vand.u32 2147483648, %v554_v58  ;;  %vm560_vm4 = vweird.f32 %v554_v58  ;;  %v564_v3 = vand.u32 2147483647, %v554_v58 }
0x12b6   :  { %v567_v5 = vor.u32 1.1754944e-38, %v566_v2  ;;  %vm565_vm6 = vcmp.eq.f32.partialorder %v564_v3, 8.507059e+37 }
0x12ba   :  { %v2497_v59 = vpop.eup %2496 }
0x12bb   :  { %v556_v60 = vmul.f32 %v2497_v59, %v554_v58  ;;  %vm561_vm3 = vweird.f32 %v2497_v59 }
0x12bc   :  { %vm562_vm5 = vmor %vm560_vm4, %vm561_vm3 }
0x12bd   :  { %v557_v61 = vsub.f32 1.0, %v556_v60 }
0x12bf   :  { %v558_v62 = vmul.f32 %v2497_v59, %v557_v61 }
0x12c1   :  { %v559_v63 = vadd.f32 %v2497_v59, %v558_v62 }
0x12c3   :  { %v563_v4 = vsel %vm562_vm5, %v2497_v59, %v559_v63 }
0x12c4   :  { %v568_v7 = vsel %vm565_vm6, %v567_v5, %v563_v4 }
0x12c5   :  { %v571_v9 = vmul.f32 %v568_v7, %v521_v44 }
0x1322   :  { %v574_v6 = vpop.permute.xlu0 %573 }
0x1323   :  { %v576_v8 = vmul.f32 %v574_v6, %v568_v7 }
0x1325   :  { %578 = vrot.lane.b32.xlu1 %v576_v8, %s2800_s12 }
0x1397   :  { %v579_v10 = vpop.permute.xlu1 %578 }
0x1398   :  { %v581_v11 = vadd.f32 %v579_v10, %v571_v9 }
0x139a   :  { %2498 = vtanh.f32 %v581_v11 }
0x13a0   :  { %v2499_v12 = vpop.eup %2498 }
0x13a1   :  { %584 = vrot.lane.b32.xlu2 %v2499_v12, %s2800_s12 }
0x13fb   :  { %v585_v13 = vpop.permute.xlu2 %584 }
0x13fc   :  { %v587_v14 = vmul.f32 %v585_v13, %v568_v7  ;;  %v3003_v13 = vld [vmem:[%s3278_s3 + $0x8] sm:$0xff] }
0x13fe   :  { %v588_v15 = vpack.c.bf16 %v587_v14, %v587_v14  ;;  %v589_v16 = vadd.f32 %v587_v14, %v529_v49  ;;  %v710_v14 = vld [vmem:[%s3275_s0 + $0x58] sm:$0xff] }
0x1400   :  { %592 = vrot.lane.b32.xlu0 %v588_v15, %s2801_s2 }
0x1472   :  { %v593_v17 = vpop.permute.xlu0 %592 }
0x1473   :  { %2353 = vmatmul.msk.bf16.vlgmr.msra.gmra.mxu1 %vm49_vm0, %v593_v17 }
0x1474   :  { %1083 = vmatpush.bf16.msra.mxu1 %v2854_v0 }
0x1478   :  { %1084 = vmatpush.bf16.msra.mxu1 %v2860_v1 }
0x14f0   :  { %v606_v19 = vpop.f32.mrf.mxu1 }
0x14f1   :  { %v610_v20 = vadd.f32 %v606_v19, %v590_v18 }
0x14f3   :  { %2500 = vtanh.f32 %v610_v20  ;;  %v2354_v23 = vmul.f32 -1.442695, %v610_v20 }
0x14f5   :  { %2502 = vpow2.f32 %v2354_v23 }
0x14f8   :  { %v608_v21 = vpop.f32.mrf.mxu1 }
0x14f9   :  { %v2501_v22 = vpop.eup %2500 }
0x14fa   :  { %633 = vrot.lane.b32.xlu1 %v2501_v22, %s2800_s12 }
0x14fb   :  { %v2503_v24 = vpop.eup %2502 }
0x14fc   :  { %v614_v25 = vadd.f32 1.0, %v2503_v24 }
0x14fe   :  { %2504 = vrcp.f32 %v614_v25  ;;  %v626_v32 = vand.u32 2147483648, %v614_v25  ;;  %vm620_vm8 = vweird.f32 %v614_v25  ;;  %v624_v33 = vand.u32 2147483647, %v614_v25 }
0x1500   :  { %v627_v34 = vor.u32 1.1754944e-38, %v626_v32  ;;  %vm625_vm10 = vcmp.eq.f32.partialorder %v624_v33, 8.507059e+37 }
0x1504   :  { %v2505_v26 = vpop.eup %2504 }
0x1505   :  { %v616_v27 = vmul.f32 %v2505_v26, %v614_v25  ;;  %vm621_vm7 = vweird.f32 %v2505_v26 }
0x1506   :  { %vm622_vm9 = vmor %vm620_vm8, %vm621_vm7 }
0x1507   :  { %v617_v28 = vsub.f32 1.0, %v616_v27 }
0x1509   :  { %v618_v29 = vmul.f32 %v2505_v26, %v617_v28 }
0x150b   :  { %v619_v30 = vadd.f32 %v2505_v26, %v618_v29 }
0x150d   :  { %v623_v31 = vsel %vm622_vm9, %v2505_v26, %v619_v30 }
0x150e   :  { %v628_v36 = vsel %vm625_vm10, %v627_v34, %v623_v31 }
0x150f   :  { %v631_v38 = vmul.f32 %v628_v36, %v581_v11 }
0x156c   :  { %v634_v35 = vpop.permute.xlu1 %633 }
0x156d   :  { %v636_v37 = vmul.f32 %v634_v35, %v628_v36 }
0x156f   :  { %638 = vrot.lane.b32.xlu2 %v636_v37, %s2800_s12 }
0x15c9   :  { %v639_v39 = vpop.permute.xlu2 %638 }
0x15ca   :  { %v641_v40 = vadd.f32 %v639_v39, %v631_v38 }
0x15cc   :  { %2506 = vtanh.f32 %v641_v40 }
0x15d2   :  { %v2507_v41 = vpop.eup %2506 }
0x15d3   :  { %644 = vrot.lane.b32.xlu0 %v2507_v41, %s2800_s12 }
0x1645   :  { %v645_v42 = vpop.permute.xlu0 %644 }
0x1646   :  { %v647_v43 = vmul.f32 %v645_v42, %v628_v36  ;;  %v3019_v42 = vld [vmem:[%s3278_s3] sm:$0xff] }
0x1648   :  { %v648_v44 = vpack.c.bf16 %v647_v43, %v647_v43  ;;  %v649_v45 = vadd.f32 %v647_v43, %v589_v16  ;;  %v770_v43 = vld [vmem:[%s3275_s0 + $0x60] sm:$0xff] }
0x164a   :  { %652 = vrot.lane.b32.xlu1 %v648_v44, %s2801_s2 }
0x16bc   :  { %v653_v46 = vpop.permute.xlu1 %652 }
0x16bd   :  { %2355 = vmatmul.msk.bf16.vlgmr.msra.gmra.mxu2 %vm49_vm0, %v653_v46 }
0x16be   :  { %1143 = vmatpush.bf16.msra.mxu2 %v2854_v0 }
0x16c2   :  { %1144 = vmatpush.bf16.msra.mxu2 %v2860_v1 }
0x1740   :  { %v666_v48 = vpop.f32.mrf.mxu2 }
0x1741   :  { %v670_v49 = vadd.f32 %v666_v48, %v650_v47 }
0x1743   :  { %2508 = vtanh.f32 %v670_v49  ;;  %v2356_v52 = vmul.f32 -1.442695, %v670_v49 }
0x1745   :  { %2510 = vpow2.f32 %v2356_v52 }
0x1748   :  { %v668_v50 = vpop.f32.mrf.mxu2 }
0x1749   :  { %v2509_v51 = vpop.eup %2508 }
0x174a   :  { %693 = vrot.lane.b32.xlu2 %v2509_v51, %s2800_s12 }
0x174b   :  { %v2511_v53 = vpop.eup %2510 }
0x174c   :  { %v674_v54 = vadd.f32 1.0, %v2511_v53 }
0x174e   :  { %2512 = vrcp.f32 %v674_v54  ;;  %v686_v59 = vand.u32 2147483648, %v674_v54  ;;  %vm680_vm12 = vweird.f32 %v674_v54  ;;  %v684_v60 = vand.u32 2147483647, %v674_v54 }
0x1750   :  { %v687_v62 = vor.u32 1.1754944e-38, %v686_v59  ;;  %vm685_vm14 = vcmp.eq.f32.partialorder %v684_v60, 8.507059e+37 }
0x1754   :  { %v2513_v55 = vpop.eup %2512 }
0x1755   :  { %v676_v0 = vmul.f32 %v2513_v55, %v674_v54  ;;  %vm681_vm11 = vweird.f32 %v2513_v55 }
0x1756   :  { %vm682_vm13 = vmor %vm680_vm12, %vm681_vm11 }
0x1757   :  { %v677_v56 = vsub.f32 1.0, %v676_v0 }
0x1759   :  { %v678_v57 = vmul.f32 %v2513_v55, %v677_v56 }
0x175b   :  { %v679_v58 = vadd.f32 %v2513_v55, %v678_v57 }
0x175d   :  { %v683_v61 = vsel %vm682_vm13, %v2513_v55, %v679_v58 }
0x175e   :  { %v688_v2 = vsel %vm685_vm14, %v687_v62, %v683_v61 }
0x175f   :  { %v691_v4 = vmul.f32 %v688_v2, %v641_v40 }
0x17a4   :  { %v694_v63 = vpop.permute.xlu2 %693 }
0x17a5   :  { %v696_v3 = vmul.f32 %v694_v63, %v688_v2 }
0x17a7   :  { %698 = vrot.lane.b32.xlu0 %v696_v3, %s2800_s12 }
0x1819   :  { %v699_v5 = vpop.permute.xlu0 %698 }
0x181a   :  { %v701_v6 = vadd.f32 %v699_v5, %v691_v4 }
0x181c   :  { %2514 = vtanh.f32 %v701_v6 }
0x1822   :  { %v2515_v7 = vpop.eup %2514 }
0x1823   :  { %704 = vrot.lane.b32.xlu1 %v2515_v7, %s2800_s12 }
0x1895   :  { %v705_v8 = vpop.permute.xlu1 %704 }
0x1896   :  { %v707_v9 = vmul.f32 %v705_v8, %v688_v2 }
0x1898   :  { %v708_v10 = vpack.c.bf16 %v707_v9, %v707_v9  ;;  %v709_v11 = vadd.f32 %v707_v9, %v649_v45  ;;  %v830_v9 = vld [vmem:[%s3275_s0 + $0x68] sm:$0xff] }
0x189a   :  { %712 = vrot.lane.b32.xlu2 %v708_v10, %s2801_s2 }
0x18f4   :  { %v713_v12 = vpop.permute.xlu2 %712 }
0x18f5   :  { %2357 = vmatmul.msk.bf16.vlgmr.msra.gmra.mxu3 %vm49_vm0, %v713_v12 }
0x18f6   :  { %1203 = vmatpush.bf16.msra.mxu3 %v3003_v13 }
0x18fa   :  { %1204 = vmatpush.bf16.msra.mxu3 %v2860_v1 }
0x1978   :  { %v726_v15 = vpop.f32.mrf.mxu3 }
0x1979   :  { %v730_v16 = vadd.f32 %v726_v15, %v710_v14 }
0x197b   :  { %2516 = vtanh.f32 %v730_v16  ;;  %v2358_v19 = vmul.f32 -1.442695, %v730_v16 }
0x197d   :  { %2518 = vpow2.f32 %v2358_v19 }
0x1980   :  { %v728_v17 = vpop.f32.mrf.mxu3 }
0x1981   :  { %v2517_v18 = vpop.eup %2516 }
0x1982   :  { %753 = vrot.lane.b32.xlu0 %v2517_v18, %s2800_s12 }
0x1983   :  { %v2519_v20 = vpop.eup %2518 }
0x1984   :  { %v734_v21 = vadd.f32 1.0, %v2519_v20 }
0x1986   :  { %2520 = vrcp.f32 %v734_v21  ;;  %v746_v26 = vand.u32 2147483648, %v734_v21  ;;  %vm740_vm1 = vweird.f32 %v734_v21  ;;  %v744_v27 = vand.u32 2147483647, %v734_v21 }
0x1988   :  { %v747_v29 = vor.u32 1.1754944e-38, %v746_v26  ;;  %vm745_vm3 = vcmp.eq.f32.partialorder %v744_v27, 8.507059e+37 }
0x198c   :  { %v2521_v22 = vpop.eup %2520 }
0x198d   :  { %v736_v23 = vmul.f32 %v2521_v22, %v734_v21  ;;  %vm741_vm15 = vweird.f32 %v2521_v22 }
0x198e   :  { %vm742_vm2 = vmor %vm740_vm1, %vm741_vm15 }
0x198f   :  { %v737_v24 = vsub.f32 1.0, %v736_v23 }
0x1991   :  { %v738_v1 = vmul.f32 %v2521_v22, %v737_v24 }
0x1993   :  { %v739_v25 = vadd.f32 %v2521_v22, %v738_v1 }
0x1995   :  { %v743_v28 = vsel %vm742_vm2, %v2521_v22, %v739_v25 }
0x1996   :  { %v748_v32 = vsel %vm745_vm3, %v747_v29, %v743_v28 }
0x1997   :  { %v751_v31 = vmul.f32 %v748_v32, %v701_v6 }
0x19f4   :  { %v754_v30 = vpop.permute.xlu0 %753 }
0x19f5   :  { %v756_v33 = vmul.f32 %v754_v30, %v748_v32 }
0x19f7   :  { %758 = vrot.lane.b32.xlu1 %v756_v33, %s2800_s12 }
0x1a69   :  { %v759_v34 = vpop.permute.xlu1 %758 }
0x1a6a   :  { %v761_v35 = vadd.f32 %v759_v34, %v751_v31 }
0x1a6c   :  { %2522 = vtanh.f32 %v761_v35 }
0x1a72   :  { %v2523_v36 = vpop.eup %2522 }
0x1a73   :  { %764 = vrot.lane.b32.xlu2 %v2523_v36, %s2800_s12 }
0x1acd   :  { %v765_v37 = vpop.permute.xlu2 %764 }
0x1ace   :  { %v767_v38 = vmul.f32 %v765_v37, %v748_v32 }
0x1ad0   :  { %v768_v39 = vpack.c.bf16 %v767_v38, %v767_v38  ;;  %v769_v40 = vadd.f32 %v767_v38, %v709_v11  ;;  %v890_v38 = vld [vmem:[%s3275_s0 + $0x70] sm:$0xff] }
0x1ad2   :  { %772 = vrot.lane.b32.xlu0 %v768_v39, %s2801_s2 }
0x1b44   :  { %v773_v41 = vpop.permute.xlu0 %772 }
0x1b45   :  { %2359 = vmatmul.msk.bf16.vlgmr.msrb.gmra.mxu0 %vm49_vm0, %v773_v41 }
0x1b46   :  { %1263 = vmatpush.bf16.msrb.mxu0 %v3003_v13 }
0x1b4a   :  { %1264 = vmatpush.bf16.msrb.mxu0 %v3019_v42 }
0x1bc2   :  { %v786_v44 = vpop.f32.mrf.mxu0 }
0x1bc3   :  { %v790_v45 = vadd.f32 %v786_v44, %v770_v43 }
0x1bc5   :  { %2524 = vtanh.f32 %v790_v45  ;;  %v2360_v48 = vmul.f32 -1.442695, %v790_v45 }
0x1bc7   :  { %2526 = vpow2.f32 %v2360_v48 }
0x1bca   :  { %v788_v46 = vpop.f32.mrf.mxu0 }
0x1bcb   :  { %v2525_v47 = vpop.eup %2524 }
0x1bcc   :  { %813 = vrot.lane.b32.xlu1 %v2525_v47, %s2800_s12 }
0x1bcd   :  { %v2527_v49 = vpop.eup %2526 }
0x1bce   :  { %v794_v50 = vadd.f32 1.0, %v2527_v49 }
0x1bd0   :  { %2528 = vrcp.f32 %v794_v50  ;;  %v806_v0 = vand.u32 2147483648, %v794_v50  ;;  %vm800_vm5 = vweird.f32 %v794_v50  ;;  %v804_v56 = vand.u32 2147483647, %v794_v50 }
0x1bd2   :  { %v807_v58 = vor.u32 1.1754944e-38, %v806_v0  ;;  %vm805_vm7 = vcmp.eq.f32.partialorder %v804_v56, 8.507059e+37 }
0x1bd6   :  { %v2529_v51 = vpop.eup %2528 }
0x1bd7   :  { %v796_v52 = vmul.f32 %v2529_v51, %v794_v50  ;;  %vm801_vm4 = vweird.f32 %v2529_v51 }
0x1bd8   :  { %vm802_vm6 = vmor %vm800_vm5, %vm801_vm4 }
0x1bd9   :  { %v797_v53 = vsub.f32 1.0, %v796_v52 }
0x1bdb   :  { %v798_v54 = vmul.f32 %v2529_v51, %v797_v53 }
0x1bdd   :  { %v799_v55 = vadd.f32 %v2529_v51, %v798_v54 }
0x1bdf   :  { %v803_v57 = vsel %vm802_vm6, %v2529_v51, %v799_v55 }
0x1be0   :  { %v808_v60 = vsel %vm805_vm7, %v807_v58, %v803_v57 }
0x1be1   :  { %v811_v62 = vmul.f32 %v808_v60, %v761_v35 }
0x1c3e   :  { %v814_v59 = vpop.permute.xlu1 %813 }
0x1c3f   :  { %v816_v61 = vmul.f32 %v814_v59, %v808_v60 }
0x1c41   :  { %818 = vrot.lane.b32.xlu2 %v816_v61, %s2800_s12 }
0x1c9b   :  { %v819_v63 = vpop.permute.xlu2 %818 }
0x1c9c   :  { %v821_v2 = vadd.f32 %v819_v63, %v811_v62 }
0x1c9e   :  { %2530 = vtanh.f32 %v821_v2 }
0x1ca4   :  { %v2531_v3 = vpop.eup %2530 }
0x1ca5   :  { %824 = vrot.lane.b32.xlu0 %v2531_v3, %s2800_s12 }
0x1d17   :  { %v825_v4 = vpop.permute.xlu0 %824 }
0x1d18   :  { %v827_v5 = vmul.f32 %v825_v4, %v808_v60 }
0x1d1a   :  { %v828_v6 = vpack.c.bf16 %v827_v5, %v827_v5  ;;  %v829_v7 = vadd.f32 %v827_v5, %v769_v40  ;;  %v950_v5 = vld [vmem:[%s3275_s0 + $0x78] sm:$0xff] }
0x1d1c   :  { %832 = vrot.lane.b32.xlu1 %v828_v6, %s2801_s2 }
0x1d8e   :  { %v833_v8 = vpop.permute.xlu1 %832 }
0x1d8f   :  { %2361 = vmatmul.msk.bf16.vlgmr.msrb.gmra.mxu1 %vm49_vm0, %v833_v8 }
0x1d90   :  { %1323 = vmatpush.bf16.msrb.mxu1 %v3003_v13 }
0x1d94   :  { %1324 = vmatpush.bf16.msrb.mxu1 %v3019_v42 }
0x1e0c   :  { %v846_v10 = vpop.f32.mrf.mxu1 }
0x1e0d   :  { %v850_v11 = vadd.f32 %v846_v10, %v830_v9 }
0x1e0f   :  { %2532 = vtanh.f32 %v850_v11  ;;  %v2362_v15 = vmul.f32 -1.442695, %v850_v11 }
0x1e11   :  { %2534 = vpow2.f32 %v2362_v15 }
0x1e14   :  { %v848_v12 = vpop.f32.mrf.mxu1 }
0x1e15   :  { %v2533_v14 = vpop.eup %2532 }
0x1e16   :  { %873 = vrot.lane.b32.xlu2 %v2533_v14, %s2800_s12 }
0x1e17   :  { %v2535_v16 = vpop.eup %2534 }
0x1e18   :  { %v854_v17 = vadd.f32 1.0, %v2535_v16 }
0x1e1a   :  { %2536 = vrcp.f32 %v854_v17  ;;  %v866_v23 = vand.u32 2147483648, %v854_v17  ;;  %vm860_vm9 = vweird.f32 %v854_v17  ;;  %v864_v24 = vand.u32 2147483647, %v854_v17 }
0x1e1c   :  { %v867_v25 = vor.u32 1.1754944e-38, %v866_v23  ;;  %vm865_vm11 = vcmp.eq.f32.partialorder %v864_v24, 8.507059e+37 }
0x1e20   :  { %v2537_v18 = vpop.eup %2536 }
0x1e21   :  { %v856_v19 = vmul.f32 %v2537_v18, %v854_v17  ;;  %vm861_vm8 = vweird.f32 %v2537_v18 }
0x1e22   :  { %vm862_vm10 = vmor %vm860_vm9, %vm861_vm8 }
0x1e23   :  { %v857_v20 = vsub.f32 1.0, %v856_v19 }
0x1e25   :  { %v858_v21 = vmul.f32 %v2537_v18, %v857_v20 }
0x1e27   :  { %v859_v22 = vadd.f32 %v2537_v18, %v858_v21 }
0x1e29   :  { %v863_v1 = vsel %vm862_vm10, %v2537_v18, %v859_v22 }
0x1e2a   :  { %v868_v27 = vsel %vm865_vm11, %v867_v25, %v863_v1 }
0x1e2b   :  { %v871_v29 = vmul.f32 %v868_v27, %v821_v2 }
0x1e70   :  { %v874_v26 = vpop.permute.xlu2 %873 }
0x1e71   :  { %v876_v28 = vmul.f32 %v874_v26, %v868_v27 }
0x1e73   :  { %878 = vrot.lane.b32.xlu0 %v876_v28, %s2800_s12 }
0x1ee5   :  { %v879_v30 = vpop.permute.xlu0 %878 }
0x1ee6   :  { %v881_v32 = vadd.f32 %v879_v30, %v871_v29 }
0x1ee8   :  { %2538 = vtanh.f32 %v881_v32 }
0x1eee   :  { %v2539_v33 = vpop.eup %2538 }
0x1eef   :  { %884 = vrot.lane.b32.xlu1 %v2539_v33, %s2800_s12 }
0x1f61   :  { %v885_v31 = vpop.permute.xlu1 %884 }
0x1f62   :  { %v887_v34 = vmul.f32 %v885_v31, %v868_v27 }
0x1f64   :  { %v888_v35 = vpack.c.bf16 %v887_v34, %v887_v34  ;;  %v889_v36 = vadd.f32 %v887_v34, %v829_v7  ;;  %v1010_v34 = vld [vmem:[%s3275_s0 + $0x80] sm:$0xff] }
0x1f66   :  { %892 = vrot.lane.b32.xlu2 %v888_v35, %s2801_s2 }
0x1fc0   :  { %v893_v37 = vpop.permute.xlu2 %892 }
0x1fc1   :  { %2363 = vmatmul.msk.bf16.vlgmr.msrb.gmra.mxu2 %vm49_vm0, %v893_v37 }
0x1fc2   :  { %1383 = vmatpush.bf16.msrb.mxu2 %v3003_v13 }
0x1fc6   :  { %1384 = vmatpush.bf16.msrb.mxu2 %v3019_v42 }
0x2044   :  { %v906_v39 = vpop.f32.mrf.mxu2 }
0x2045   :  { %v910_v40 = vadd.f32 %v906_v39, %v890_v38 }
0x2047   :  { %2540 = vtanh.f32 %v910_v40  ;;  %v2364_v44 = vmul.f32 -1.442695, %v910_v40 }
0x2049   :  { %2542 = vpow2.f32 %v2364_v44 }
0x204c   :  { %v908_v41 = vpop.f32.mrf.mxu2 }
0x204d   :  { %v2541_v43 = vpop.eup %2540 }
0x204e   :  { %933 = vrot.lane.b32.xlu0 %v2541_v43, %s2800_s12 }
0x204f   :  { %v2543_v45 = vpop.eup %2542 }
0x2050   :  { %v914_v46 = vadd.f32 1.0, %v2543_v45 }
0x2052   :  { %2544 = vrcp.f32 %v914_v46  ;;  %v926_v52 = vand.u32 2147483648, %v914_v46  ;;  %vm920_vm13 = vweird.f32 %v914_v46  ;;  %v924_v53 = vand.u32 2147483647, %v914_v46 }
0x2054   :  { %v927_v55 = vor.u32 1.1754944e-38, %v926_v52  ;;  %vm925_vm15 = vcmp.eq.f32.partialorder %v924_v53, 8.507059e+37 }
0x2058   :  { %v2545_v47 = vpop.eup %2544 }
0x2059   :  { %v916_v48 = vmul.f32 %v2545_v47, %v914_v46  ;;  %vm921_vm12 = vweird.f32 %v2545_v47 }
0x205a   :  { %vm922_vm14 = vmor %vm920_vm13, %vm921_vm12 }
0x205b   :  { %v917_v49 = vsub.f32 1.0, %v916_v48 }
0x205d   :  { %v918_v50 = vmul.f32 %v2545_v47, %v917_v49 }
0x205f   :  { %v919_v51 = vadd.f32 %v2545_v47, %v918_v50 }
0x2061   :  { %v923_v54 = vsel %vm922_vm14, %v2545_v47, %v919_v51 }
0x2062   :  { %v928_v56 = vsel %vm925_vm15, %v927_v55, %v923_v54 }
0x2063   :  { %v931_v58 = vmul.f32 %v928_v56, %v881_v32 }
0x20c0   :  { %v934_v0 = vpop.permute.xlu0 %933 }
0x20c1   :  { %v936_v57 = vmul.f32 %v934_v0, %v928_v56 }
0x20c3   :  { %938 = vrot.lane.b32.xlu1 %v936_v57, %s2800_s12 }
0x2135   :  { %v939_v59 = vpop.permute.xlu1 %938 }
0x2136   :  { %v941_v60 = vadd.f32 %v939_v59, %v931_v58 }
0x2138   :  { %2546 = vtanh.f32 %v941_v60 }
0x213e   :  { %v2547_v61 = vpop.eup %2546 }
0x213f   :  { %944 = vrot.lane.b32.xlu2 %v2547_v61, %s2800_s12 }
0x2199   :  { %v945_v62 = vpop.permute.xlu2 %944 }
0x219a   :  { %v947_v63 = vmul.f32 %v945_v62, %v928_v56 }
0x219c   :  { %v948_v2 = vpack.c.bf16 %v947_v63, %v947_v63  ;;  %v949_v3 = vadd.f32 %v947_v63, %v889_v36  ;;  %v1070_v63 = vld [vmem:[%s3275_s0 + $0x88] sm:$0xff] }
0x219e   :  { %952 = vrot.lane.b32.xlu0 %v948_v2, %s2801_s2 }
0x2210   :  { %v953_v4 = vpop.permute.xlu0 %952 }
0x2211   :  { %2365 = vmatmul.msk.bf16.vlgmr.msrb.gmra.mxu3 %vm49_vm0, %v953_v4 }
0x2212   :  { %1443 = vmatpush.bf16.msrb.mxu3 %v3003_v13 }
0x2216   :  { %1444 = vmatpush.bf16.msrb.mxu3 %v3019_v42 }
0x2294   :  { %v966_v6 = vpop.f32.mrf.mxu3 }
0x2295   :  { %v970_v7 = vadd.f32 %v966_v6, %v950_v5 }
0x2297   :  { %2548 = vtanh.f32 %v970_v7  ;;  %v2366_v10 = vmul.f32 -1.442695, %v970_v7 }
0x2299   :  { %2550 = vpow2.f32 %v2366_v10 }
0x229c   :  { %v968_v8 = vpop.f32.mrf.mxu3 }
0x229d   :  { %v2549_v9 = vpop.eup %2548 }
0x229e   :  { %993 = vrot.lane.b32.xlu1 %v2549_v9, %s2800_s12 }
0x229f   :  { %v2551_v11 = vpop.eup %2550 }
0x22a0   :  { %v974_v12 = vadd.f32 1.0, %v2551_v11 }
0x22a2   :  { %2552 = vrcp.f32 %v974_v12  ;;  %v986_v19 = vand.u32 2147483648, %v974_v12  ;;  %vm980_vm2 = vweird.f32 %v974_v12  ;;  %v984_v20 = vand.u32 2147483647, %v974_v12 }
0x22a4   :  { %v987_v22 = vor.u32 1.1754944e-38, %v986_v19  ;;  %vm985_vm4 = vcmp.eq.f32.partialorder %v984_v20, 8.507059e+37 }
0x22a8   :  { %v2553_v14 = vpop.eup %2552 }
0x22a9   :  { %v976_v15 = vmul.f32 %v2553_v14, %v974_v12  ;;  %vm981_vm1 = vweird.f32 %v2553_v14 }
0x22aa   :  { %vm982_vm3 = vmor %vm980_vm2, %vm981_vm1 }
0x22ab   :  { %v977_v16 = vsub.f32 1.0, %v976_v15 }
0x22ad   :  { %v978_v17 = vmul.f32 %v2553_v14, %v977_v16 }
0x22af   :  { %v979_v18 = vadd.f32 %v2553_v14, %v978_v17 }
0x22b1   :  { %v983_v21 = vsel %vm982_vm3, %v2553_v14, %v979_v18 }
0x22b2   :  { %v988_v24 = vsel %vm985_vm4, %v987_v22, %v983_v21 }
0x22b3   :  { %v991_v25 = vmul.f32 %v988_v24, %v941_v60 }
0x2310   :  { %v994_v23 = vpop.permute.xlu1 %993 }
0x2311   :  { %v996_v1 = vmul.f32 %v994_v23, %v988_v24 }
0x2313   :  { %998 = vrot.lane.b32.xlu2 %v996_v1, %s2800_s12 }
0x236d   :  { %v999_v26 = vpop.permute.xlu2 %998 }
0x236e   :  { %v1001_v27 = vadd.f32 %v999_v26, %v991_v25 }
0x2370   :  { %2554 = vtanh.f32 %v1001_v27 }
0x2376   :  { %v2555_v28 = vpop.eup %2554 }
0x2377   :  { %1004 = vrot.lane.b32.xlu0 %v2555_v28, %s2800_s12 }
0x23e9   :  { %v1005_v29 = vpop.permute.xlu0 %1004 }
0x23ea   :  { %v1007_v30 = vmul.f32 %v1005_v29, %v988_v24 }
0x23ec   :  { %v1008_v32 = vpack.c.bf16 %v1007_v30, %v1007_v30  ;;  %v1009_v33 = vadd.f32 %v1007_v30, %v949_v3  ;;  %v1130_v30 = vld [vmem:[%s3275_s0 + $0x90] sm:$0xff] }
0x23ee   :  { %1012 = vrot.lane.b32.xlu1 %v1008_v32, %s2801_s2 }
0x2460   :  { %v1013_v31 = vpop.permute.xlu1 %1012 }
0x2461   :  { %2367 = vmatmul.msk.bf16.vlgmr.msra.gmra.mxu0 %vm49_vm0, %v1013_v31 }
0x2462   :  { %1503 = vmatpush.bf16.msra.mxu0 %v3003_v13 }
0x2466   :  { %1504 = vmatpush.bf16.msra.mxu0 %v3019_v42 }
0x24de   :  { %v1026_v35 = vpop.f32.mrf.mxu0 }
0x24df   :  { %v1030_v36 = vadd.f32 %v1026_v35, %v1010_v34 }
0x24e1   :  { %2556 = vtanh.f32 %v1030_v36  ;;  %v2368_v39 = vmul.f32 -1.442695, %v1030_v36 }
0x24e3   :  { %2558 = vpow2.f32 %v2368_v39 }
0x24e6   :  { %v1028_v37 = vpop.f32.mrf.mxu0 }
0x24e7   :  { %v2557_v38 = vpop.eup %2556 }
0x24e8   :  { %1053 = vrot.lane.b32.xlu2 %v2557_v38, %s2800_s12 }
0x24e9   :  { %v2559_v40 = vpop.eup %2558 }
0x24ea   :  { %v1034_v41 = vadd.f32 1.0, %v2559_v40 }
0x24ec   :  { %2560 = vrcp.f32 %v1034_v41  ;;  %v1046_v48 = vand.u32 2147483648, %v1034_v41  ;;  %vm1040_vm6 = vweird.f32 %v1034_v41  ;;  %v1044_v49 = vand.u32 2147483647, %v1034_v41 }
0x24ee   :  { %v1047_v51 = vor.u32 1.1754944e-38, %v1046_v48  ;;  %vm1045_vm8 = vcmp.eq.f32.partialorder %v1044_v49, 8.507059e+37 }
0x24f2   :  { %v2561_v43 = vpop.eup %2560 }
0x24f3   :  { %v1036_v44 = vmul.f32 %v2561_v43, %v1034_v41  ;;  %vm1041_vm5 = vweird.f32 %v2561_v43 }
0x24f4   :  { %vm1042_vm7 = vmor %vm1040_vm6, %vm1041_vm5 }
0x24f5   :  { %v1037_v45 = vsub.f32 1.0, %v1036_v44 }
0x24f7   :  { %v1038_v46 = vmul.f32 %v2561_v43, %v1037_v45 }
0x24f9   :  { %v1039_v47 = vadd.f32 %v2561_v43, %v1038_v46 }
0x24fb   :  { %v1043_v50 = vsel %vm1042_vm7, %v2561_v43, %v1039_v47 }
0x24fc   :  { %v1048_v53 = vsel %vm1045_vm8, %v1047_v51, %v1043_v50 }
0x24fd   :  { %v1051_v55 = vmul.f32 %v1048_v53, %v1001_v27 }
0x2542   :  { %v1054_v52 = vpop.permute.xlu2 %1053 }
0x2543   :  { %v1056_v54 = vmul.f32 %v1054_v52, %v1048_v53 }
0x2545   :  { %1058 = vrot.lane.b32.xlu0 %v1056_v54, %s2800_s12 }
0x25b7   :  { %v1059_v0 = vpop.permute.xlu0 %1058 }
0x25b8   :  { %v1061_v56 = vadd.f32 %v1059_v0, %v1051_v55 }
0x25ba   :  { %2562 = vtanh.f32 %v1061_v56 }
0x25c0   :  { %v2563_v57 = vpop.eup %2562 }
0x25c1   :  { %1064 = vrot.lane.b32.xlu1 %v2563_v57, %s2800_s12 }
0x2633   :  { %v1065_v58 = vpop.permute.xlu1 %1064 }
0x2634   :  { %v1067_v59 = vmul.f32 %v1065_v58, %v1048_v53 }
0x2636   :  { %v1068_v60 = vpack.c.bf16 %v1067_v59, %v1067_v59  ;;  %v1069_v61 = vadd.f32 %v1067_v59, %v1009_v33  ;;  %v1190_v59 = vld [vmem:[%s3275_s0 + $0x98] sm:$0xff] }
0x2638   :  { %1072 = vrot.lane.b32.xlu2 %v1068_v60, %s2801_s2 }
0x2692   :  { %v1073_v62 = vpop.permute.xlu2 %1072 }
0x2693   :  { %2369 = vmatmul.msk.bf16.vlgmr.msra.gmra.mxu1 %vm49_vm0, %v1073_v62 }
0x2694   :  { %1563 = vmatpush.bf16.msra.mxu1 %v3003_v13 }
0x2698   :  { %1564 = vmatpush.bf16.msra.mxu1 %v3019_v42 }
0x2710   :  { %v1086_v2 = vpop.f32.mrf.mxu1 }
0x2711   :  { %v1090_v3 = vadd.f32 %v1086_v2, %v1070_v63 }
0x2713   :  { %2564 = vtanh.f32 %v1090_v3  ;;  %v2370_v6 = vmul.f32 -1.442695, %v1090_v3 }
0x2715   :  { %2566 = vpow2.f32 %v2370_v6 }
0x2718   :  { %v1088_v4 = vpop.f32.mrf.mxu1 }
0x2719   :  { %v2565_v5 = vpop.eup %2564 }
0x271a   :  { %1113 = vrot.lane.b32.xlu0 %v2565_v5, %s2800_s12 }
0x271b   :  { %v2567_v7 = vpop.eup %2566 }
0x271c   :  { %v1094_v8 = vadd.f32 1.0, %v2567_v7 }
0x271e   :  { %2568 = vrcp.f32 %v1094_v8  ;;  %v1106_v15 = vand.u32 2147483648, %v1094_v8  ;;  %vm1100_vm10 = vweird.f32 %v1094_v8  ;;  %v1104_v16 = vand.u32 2147483647, %v1094_v8 }
0x2720   :  { %v1107_v18 = vor.u32 1.1754944e-38, %v1106_v15  ;;  %vm1105_vm12 = vcmp.eq.f32.partialorder %v1104_v16, 8.507059e+37 }
0x2724   :  { %v2569_v9 = vpop.eup %2568 }
0x2725   :  { %v1096_v10 = vmul.f32 %v2569_v9, %v1094_v8  ;;  %vm1101_vm9 = vweird.f32 %v2569_v9 }
0x2726   :  { %vm1102_vm11 = vmor %vm1100_vm10, %vm1101_vm9 }
0x2727   :  { %v1097_v11 = vsub.f32 1.0, %v1096_v10 }
0x2729   :  { %v1098_v12 = vmul.f32 %v2569_v9, %v1097_v11 }
0x272b   :  { %v1099_v14 = vadd.f32 %v2569_v9, %v1098_v12 }
0x272d   :  { %v1103_v17 = vsel %vm1102_vm11, %v2569_v9, %v1099_v14 }
0x272e   :  { %v1108_v20 = vsel %vm1105_vm12, %v1107_v18, %v1103_v17 }
0x272f   :  { %v1111_v22 = vmul.f32 %v1108_v20, %v1061_v56 }
0x278c   :  { %v1114_v19 = vpop.permute.xlu0 %1113 }
0x278d   :  { %v1116_v21 = vmul.f32 %v1114_v19, %v1108_v20 }
0x278f   :  { %1118 = vrot.lane.b32.xlu1 %v1116_v21, %s2800_s12 }
0x2801   :  { %v1119_v23 = vpop.permute.xlu1 %1118 }
0x2802   :  { %v1121_v24 = vadd.f32 %v1119_v23, %v1111_v22 }
0x2804   :  { %2570 = vtanh.f32 %v1121_v24 }
0x280a   :  { %v2571_v1 = vpop.eup %2570 }
0x280b   :  { %1124 = vrot.lane.b32.xlu2 %v2571_v1, %s2800_s12 }
0x2865   :  { %v1125_v25 = vpop.permute.xlu2 %1124 }
0x2866   :  { %v1127_v26 = vmul.f32 %v1125_v25, %v1108_v20 }
0x2868   :  { %v1128_v27 = vpack.c.bf16 %v1127_v26, %v1127_v26  ;;  %v1129_v28 = vadd.f32 %v1127_v26, %v1069_v61  ;;  %v1250_v26 = vld [vmem:[%s3275_s0 + $0xa0] sm:$0xff] }
0x286a   :  { %1132 = vrot.lane.b32.xlu0 %v1128_v27, %s2801_s2 }
0x28dc   :  { %v1133_v29 = vpop.permute.xlu0 %1132 }
0x28dd   :  { %2371 = vmatmul.msk.bf16.vlgmr.msra.gmra.mxu2 %vm49_vm0, %v1133_v29 }
0x28de   :  { %1623 = vmatpush.bf16.msra.mxu2 %v3003_v13 }
0x28e2   :  { %1624 = vmatpush.bf16.msra.mxu2 %v3019_v42 }
0x2960   :  { %v1146_v32 = vpop.f32.mrf.mxu2 }
0x2961   :  { %v1150_v33 = vadd.f32 %v1146_v32, %v1130_v30 }
0x2963   :  { %2572 = vtanh.f32 %v1150_v33  ;;  %v2372_v35 = vmul.f32 -1.442695, %v1150_v33 }
0x2965   :  { %2574 = vpow2.f32 %v2372_v35 }
0x2968   :  { %v1148_v31 = vpop.f32.mrf.mxu2 }
0x2969   :  { %v2573_v34 = vpop.eup %2572 }
0x296a   :  { %1173 = vrot.lane.b32.xlu1 %v2573_v34, %s2800_s12 }
0x296b   :  { %v2575_v36 = vpop.eup %2574 }
0x296c   :  { %v1154_v37 = vadd.f32 1.0, %v2575_v36 }
0x296e   :  { %2576 = vrcp.f32 %v1154_v37  ;;  %v1166_v44 = vand.u32 2147483648, %v1154_v37  ;;  %vm1160_vm14 = vweird.f32 %v1154_v37  ;;  %v1164_v45 = vand.u32 2147483647, %v1154_v37 }
0x2970   :  { %v1167_v47 = vor.u32 1.1754944e-38, %v1166_v44  ;;  %vm1165_vm1 = vcmp.eq.f32.partialorder %v1164_v45, 8.507059e+37 }
0x2974   :  { %v2577_v38 = vpop.eup %2576 }
0x2975   :  { %v1156_v39 = vmul.f32 %v2577_v38, %v1154_v37  ;;  %vm1161_vm13 = vweird.f32 %v2577_v38 }
0x2976   :  { %vm1162_vm15 = vmor %vm1160_vm14, %vm1161_vm13 }
0x2977   :  { %v1157_v40 = vsub.f32 1.0, %v1156_v39 }
0x2979   :  { %v1158_v41 = vmul.f32 %v2577_v38, %v1157_v40 }
0x297b   :  { %v1159_v43 = vadd.f32 %v2577_v38, %v1158_v41 }
0x297d   :  { %v1163_v46 = vsel %vm1162_vm15, %v2577_v38, %v1159_v43 }
0x297e   :  { %v1168_v49 = vsel %vm1165_vm1, %v1167_v47, %v1163_v46 }
0x297f   :  { %v1171_v51 = vmul.f32 %v1168_v49, %v1121_v24 }
0x29dc   :  { %v1174_v48 = vpop.permute.xlu1 %1173 }
0x29dd   :  { %v1176_v50 = vmul.f32 %v1174_v48, %v1168_v49 }
0x29df   :  { %1178 = vrot.lane.b32.xlu2 %v1176_v50, %s2800_s12 }
0x2a39   :  { %v1179_v52 = vpop.permute.xlu2 %1178 }
0x2a3a   :  { %v1181_v53 = vadd.f32 %v1179_v52, %v1171_v51 }
0x2a3c   :  { %2578 = vtanh.f32 %v1181_v53 }
0x2a42   :  { %v2579_v54 = vpop.eup %2578 }
0x2a43   :  { %1184 = vrot.lane.b32.xlu0 %v2579_v54, %s2800_s12 }
0x2ab5   :  { %v1185_v55 = vpop.permute.xlu0 %1184 }
0x2ab6   :  { %v1187_v0 = vmul.f32 %v1185_v55, %v1168_v49 }
0x2ab8   :  { %v1188_v56 = vpack.c.bf16 %v1187_v0, %v1187_v0  ;;  %v1189_v57 = vadd.f32 %v1187_v0, %v1129_v28  ;;  %v1310_v0 = vld [vmem:[%s3275_s0 + $0xa8] sm:$0xff] }
0x2aba   :  { %1192 = vrot.lane.b32.xlu1 %v1188_v56, %s2801_s2 }
0x2b2c   :  { %v1193_v58 = vpop.permute.xlu1 %1192 }
0x2b2d   :  { %2373 = vmatmul.msk.bf16.vlgmr.msra.gmra.mxu3 %vm49_vm0, %v1193_v58 }
0x2b2e   :  { %1683 = vmatpush.bf16.msra.mxu3 %v3003_v13 }
0x2b32   :  { %1684 = vmatpush.bf16.msra.mxu3 %v3019_v42 }
0x2bb0   :  { %v1206_v60 = vpop.f32.mrf.mxu3 }
0x2bb1   :  { %v1210_v61 = vadd.f32 %v1206_v60, %v1190_v59 }
0x2bb3   :  { %2580 = vtanh.f32 %v1210_v61  ;;  %v2374_v2 = vmul.f32 -1.442695, %v1210_v61 }
0x2bb5   :  { %2582 = vpow2.f32 %v2374_v2 }
0x2bb8   :  { %v1208_v62 = vpop.f32.mrf.mxu3 }
0x2bb9   :  { %v2581_v63 = vpop.eup %2580 }
0x2bba   :  { %1233 = vrot.lane.b32.xlu2 %v2581_v63, %s2800_s12 }
0x2bbb   :  { %v2583_v3 = vpop.eup %2582 }
0x2bbc   :  { %v1214_v4 = vadd.f32 1.0, %v2583_v3 }
0x2bbe   :  { %2584 = vrcp.f32 %v1214_v4  ;;  %v1226_v10 = vand.u32 2147483648, %v1214_v4  ;;  %vm1220_vm3 = vweird.f32 %v1214_v4  ;;  %v1224_v11 = vand.u32 2147483647, %v1214_v4 }
0x2bc0   :  { %v1227_v14 = vor.u32 1.1754944e-38, %v1226_v10  ;;  %vm1225_vm5 = vcmp.eq.f32.partialorder %v1224_v11, 8.507059e+37 }
0x2bc4   :  { %v2585_v5 = vpop.eup %2584 }
0x2bc5   :  { %v1216_v6 = vmul.f32 %v2585_v5, %v1214_v4  ;;  %vm1221_vm2 = vweird.f32 %v2585_v5 }
0x2bc6   :  { %vm1222_vm4 = vmor %vm1220_vm3, %vm1221_vm2 }
0x2bc7   :  { %v1217_v7 = vsub.f32 1.0, %v1216_v6 }
0x2bc9   :  { %v1218_v8 = vmul.f32 %v2585_v5, %v1217_v7 }
0x2bcb   :  { %v1219_v9 = vadd.f32 %v2585_v5, %v1218_v8 }
0x2bcd   :  { %v1223_v12 = vsel %vm1222_vm4, %v2585_v5, %v1219_v9 }
0x2bce   :  { %v1228_v16 = vsel %vm1225_vm5, %v1227_v14, %v1223_v12 }
0x2bcf   :  { %v1231_v18 = vmul.f32 %v1228_v16, %v1181_v53 }
0x2c14   :  { %v1234_v15 = vpop.permute.xlu2 %1233 }
0x2c15   :  { %v1236_v17 = vmul.f32 %v1234_v15, %v1228_v16 }
0x2c17   :  { %1238 = vrot.lane.b32.xlu0 %v1236_v17, %s2800_s12 }
0x2c89   :  { %v1239_v19 = vpop.permute.xlu0 %1238 }
0x2c8a   :  { %v1241_v20 = vadd.f32 %v1239_v19, %v1231_v18 }
0x2c8c   :  { %2586 = vtanh.f32 %v1241_v20 }
0x2c92   :  { %v2587_v21 = vpop.eup %2586 }
0x2c93   :  { %1244 = vrot.lane.b32.xlu1 %v2587_v21, %s2800_s12 }
0x2d05   :  { %v1245_v22 = vpop.permute.xlu1 %1244 }
0x2d06   :  { %v1247_v23 = vmul.f32 %v1245_v22, %v1228_v16 }
0x2d08   :  { %v1248_v24 = vpack.c.bf16 %v1247_v23, %v1247_v23  ;;  %v1249_v1 = vadd.f32 %v1247_v23, %v1189_v57  ;;  %v1370_v23 = vld [vmem:[%s3275_s0 + $0xb0] sm:$0xff] }
0x2d0a   :  { %1252 = vrot.lane.b32.xlu2 %v1248_v24, %s2801_s2 }
0x2d64   :  { %v1253_v25 = vpop.permute.xlu2 %1252 }
0x2d65   :  { %2375 = vmatmul.msk.bf16.vlgmr.msrb.gmra.mxu0 %vm49_vm0, %v1253_v25 }
0x2d66   :  { %1743 = vmatpush.bf16.msrb.mxu0 %v3003_v13 }
0x2d6a   :  { %1744 = vmatpush.bf16.msrb.mxu0 %v3019_v42 }
0x2de2   :  { %v1266_v27 = vpop.f32.mrf.mxu0 }
0x2de3   :  { %v1270_v28 = vadd.f32 %v1266_v27, %v1250_v26 }
0x2de5   :  { %2588 = vtanh.f32 %v1270_v28  ;;  %v2376_v32 = vmul.f32 -1.442695, %v1270_v28 }
0x2de7   :  { %2590 = vpow2.f32 %v2376_v32 }
0x2dea   :  { %v1268_v29 = vpop.f32.mrf.mxu0 }
0x2deb   :  { %v2589_v30 = vpop.eup %2588 }
0x2dec   :  { %1293 = vrot.lane.b32.xlu0 %v2589_v30, %s2800_s12 }
0x2ded   :  { %v2591_v33 = vpop.eup %2590 }
0x2dee   :  { %v1274_v31 = vadd.f32 1.0, %v2591_v33 }
0x2df0   :  { %2592 = vrcp.f32 %v1274_v31  ;;  %v1286_v39 = vand.u32 2147483648, %v1274_v31  ;;  %vm1280_vm7 = vweird.f32 %v1274_v31  ;;  %v1284_v40 = vand.u32 2147483647, %v1274_v31 }
0x2df2   :  { %v1287_v43 = vor.u32 1.1754944e-38, %v1286_v39  ;;  %vm1285_vm9 = vcmp.eq.f32.partialorder %v1284_v40, 8.507059e+37 }
0x2df6   :  { %v2593_v34 = vpop.eup %2592 }
0x2df7   :  { %v1276_v35 = vmul.f32 %v2593_v34, %v1274_v31  ;;  %vm1281_vm6 = vweird.f32 %v2593_v34 }
0x2df8   :  { %vm1282_vm8 = vmor %vm1280_vm7, %vm1281_vm6 }
0x2df9   :  { %v1277_v36 = vsub.f32 1.0, %v1276_v35 }
0x2dfb   :  { %v1278_v37 = vmul.f32 %v2593_v34, %v1277_v36 }
0x2dfd   :  { %v1279_v38 = vadd.f32 %v2593_v34, %v1278_v37 }
0x2dff   :  { %v1283_v41 = vsel %vm1282_vm8, %v2593_v34, %v1279_v38 }
0x2e00   :  { %v1288_v45 = vsel %vm1285_vm9, %v1287_v43, %v1283_v41 }
0x2e01   :  { %v1291_v47 = vmul.f32 %v1288_v45, %v1241_v20 }
0x2e5e   :  { %v1294_v44 = vpop.permute.xlu0 %1293 }
0x2e5f   :  { %v1296_v46 = vmul.f32 %v1294_v44, %v1288_v45 }
0x2e61   :  { %1298 = vrot.lane.b32.xlu1 %v1296_v46, %s2800_s12 }
0x2ed3   :  { %v1299_v48 = vpop.permute.xlu1 %1298 }
0x2ed4   :  { %v1301_v49 = vadd.f32 %v1299_v48, %v1291_v47 }
0x2ed6   :  { %2594 = vtanh.f32 %v1301_v49 }
0x2edc   :  { %v2595_v50 = vpop.eup %2594 }
0x2edd   :  { %1304 = vrot.lane.b32.xlu2 %v2595_v50, %s2800_s12 }
0x2f37   :  { %v1305_v51 = vpop.permute.xlu2 %1304 }
0x2f38   :  { %v1307_v52 = vmul.f32 %v1305_v51, %v1288_v45  ;;  %v3133_v51 = vld [vmem:[%s3278_s3 + $0x8] sm:$0xff] }
0x2f3a   :  { %v1308_v53 = vpack.c.bf16 %v1307_v52, %v1307_v52  ;;  %v1309_v54 = vadd.f32 %v1307_v52, %v1249_v1  ;;  %v1430_v52 = vld [vmem:[%s3275_s0 + $0xb8] sm:$0xff] }
0x2f3c   :  { %1312 = vrot.lane.b32.xlu0 %v1308_v53, %s2801_s2 }
0x2fae   :  { %v1313_v55 = vpop.permute.xlu0 %1312 }
0x2faf   :  { %2377 = vmatmul.msk.bf16.vlgmr.msrb.gmra.mxu1 %vm49_vm0, %v1313_v55 }
0x2fb0   :  { %1803 = vmatpush.bf16.msrb.mxu1 %v3003_v13 }
0x2fb4   :  { %1804 = vmatpush.bf16.msrb.mxu1 %v3019_v42 }
0x302c   :  { %v1326_v56 = vpop.f32.mrf.mxu1 }
0x302d   :  { %v1330_v57 = vadd.f32 %v1326_v56, %v1310_v0 }
0x302f   :  { %2596 = vtanh.f32 %v1330_v57  ;;  %v2378_v60 = vmul.f32 -1.442695, %v1330_v57 }
0x3031   :  { %2598 = vpow2.f32 %v2378_v60 }
0x3034   :  { %v1328_v58 = vpop.f32.mrf.mxu1 }
0x3035   :  { %v2597_v59 = vpop.eup %2596 }
0x3036   :  { %1353 = vrot.lane.b32.xlu1 %v2597_v59, %s2800_s12 }
0x3037   :  { %v2599_v61 = vpop.eup %2598 }
0x3038   :  { %v1334_v62 = vadd.f32 1.0, %v2599_v61 }
0x303a   :  { %2600 = vrcp.f32 %v1334_v62  ;;  %v1346_v6 = vand.u32 2147483648, %v1334_v62  ;;  %vm1340_vm11 = vweird.f32 %v1334_v62  ;;  %v1344_v7 = vand.u32 2147483647, %v1334_v62 }
0x303c   :  { %v1347_v9 = vor.u32 1.1754944e-38, %v1346_v6  ;;  %vm1345_vm13 = vcmp.eq.f32.partialorder %v1344_v7, 8.507059e+37 }
0x3040   :  { %v2601_v63 = vpop.eup %2600 }
0x3041   :  { %v1336_v2 = vmul.f32 %v2601_v63, %v1334_v62  ;;  %vm1341_vm10 = vweird.f32 %v2601_v63 }
0x3042   :  { %vm1342_vm12 = vmor %vm1340_vm11, %vm1341_vm10 }
0x3043   :  { %v1337_v3 = vsub.f32 1.0, %v1336_v2 }
0x3045   :  { %v1338_v4 = vmul.f32 %v2601_v63, %v1337_v3 }
0x3047   :  { %v1339_v5 = vadd.f32 %v2601_v63, %v1338_v4 }
0x3049   :  { %v1343_v8 = vsel %vm1342_vm12, %v2601_v63, %v1339_v5 }
0x304a   :  { %v1348_v11 = vsel %vm1345_vm13, %v1347_v9, %v1343_v8 }
0x304b   :  { %v1351_v14 = vmul.f32 %v1348_v11, %v1301_v49 }
0x30a8   :  { %v1354_v10 = vpop.permute.xlu1 %1353 }
0x30a9   :  { %v1356_v12 = vmul.f32 %v1354_v10, %v1348_v11 }
0x30ab   :  { %1358 = vrot.lane.b32.xlu2 %v1356_v12, %s2800_s12 }
0x3105   :  { %v1359_v15 = vpop.permute.xlu2 %1358 }
0x3106   :  { %v1361_v16 = vadd.f32 %v1359_v15, %v1351_v14 }
0x3108   :  { %2602 = vtanh.f32 %v1361_v16 }
0x310e   :  { %v2603_v17 = vpop.eup %2602 }
0x310f   :  { %1364 = vrot.lane.b32.xlu0 %v2603_v17, %s2800_s12 }
0x3181   :  { %v1365_v18 = vpop.permute.xlu0 %1364 }
0x3182   :  { %v1367_v19 = vmul.f32 %v1365_v18, %v1348_v11  ;;  %v3149_v18 = vld [vmem:[%s3278_s3] sm:$0xff] }
0x3184   :  { %v1368_v20 = vpack.c.bf16 %v1367_v19, %v1367_v19  ;;  %v1369_v21 = vadd.f32 %v1367_v19, %v1309_v54  ;;  %v1490_v19 = vld [vmem:[%s3275_s0 + $0xc0] sm:$0xff] }
0x3186   :  { %1372 = vrot.lane.b32.xlu1 %v1368_v20, %s2801_s2 }
0x31f8   :  { %v1373_v22 = vpop.permute.xlu1 %1372 }
0x31f9   :  { %2379 = vmatmul.msk.bf16.vlgmr.msrb.gmra.mxu2 %vm49_vm0, %v1373_v22 }
0x31fa   :  { %1863 = vmatpush.bf16.msrb.mxu2 %v3003_v13 }
0x31fe   :  { %1864 = vmatpush.bf16.msrb.mxu2 %v3019_v42 }
0x327c   :  { %v1386_v24 = vpop.f32.mrf.mxu2 }
0x327d   :  { %v1390_v1 = vadd.f32 %v1386_v24, %v1370_v23 }
0x327f   :  { %2604 = vtanh.f32 %v1390_v1  ;;  %v2380_v27 = vmul.f32 -1.442695, %v1390_v1 }
0x3281   :  { %2606 = vpow2.f32 %v2380_v27 }
0x3284   :  { %v1388_v25 = vpop.f32.mrf.mxu2 }
0x3285   :  { %v2605_v26 = vpop.eup %2604 }
0x3286   :  { %1413 = vrot.lane.b32.xlu2 %v2605_v26, %s2800_s12 }
0x3287   :  { %v2607_v28 = vpop.eup %2606 }
0x3288   :  { %v1394_v29 = vadd.f32 1.0, %v2607_v28 }
0x328a   :  { %2608 = vrcp.f32 %v1394_v29  ;;  %v1406_v34 = vand.u32 2147483648, %v1394_v29  ;;  %vm1400_vm15 = vweird.f32 %v1394_v29  ;;  %v1404_v35 = vand.u32 2147483647, %v1394_v29 }
0x328c   :  { %v1407_v37 = vor.u32 1.1754944e-38, %v1406_v34  ;;  %vm1405_vm2 = vcmp.eq.f32.partialorder %v1404_v35, 8.507059e+37 }
0x3290   :  { %v2609_v30 = vpop.eup %2608 }
0x3291   :  { %v1396_v13 = vmul.f32 %v2609_v30, %v1394_v29  ;;  %vm1401_vm14 = vweird.f32 %v2609_v30 }
0x3292   :  { %vm1402_vm1 = vmor %vm1400_vm15, %vm1401_vm14 }
0x3293   :  { %v1397_v32 = vsub.f32 1.0, %v1396_v13 }
0x3295   :  { %v1398_v33 = vmul.f32 %v2609_v30, %v1397_v32 }
0x3297   :  { %v1399_v31 = vadd.f32 %v2609_v30, %v1398_v33 }
0x3299   :  { %v1403_v36 = vsel %vm1402_vm1, %v2609_v30, %v1399_v31 }
0x329a   :  { %v1408_v39 = vsel %vm1405_vm2, %v1407_v37, %v1403_v36 }
0x329b   :  { %v1411_v41 = vmul.f32 %v1408_v39, %v1361_v16 }
0x32e0   :  { %v1414_v38 = vpop.permute.xlu2 %1413 }
0x32e1   :  { %v1416_v40 = vmul.f32 %v1414_v38, %v1408_v39 }
0x32e3   :  { %1418 = vrot.lane.b32.xlu0 %v1416_v40, %s2800_s12 }
0x3355   :  { %v1419_v43 = vpop.permute.xlu0 %1418 }
0x3356   :  { %v1421_v44 = vadd.f32 %v1419_v43, %v1411_v41 }
0x3358   :  { %2610 = vtanh.f32 %v1421_v44 }
0x335e   :  { %v2611_v45 = vpop.eup %2610 }
0x335f   :  { %1424 = vrot.lane.b32.xlu1 %v2611_v45, %s2800_s12 }
0x33d1   :  { %v1425_v46 = vpop.permute.xlu1 %1424 }
0x33d2   :  { %v1427_v47 = vmul.f32 %v1425_v46, %v1408_v39 }
0x33d4   :  { %v1428_v48 = vpack.c.bf16 %v1427_v47, %v1427_v47  ;;  %v1429_v49 = vadd.f32 %v1427_v47, %v1369_v21  ;;  %v1550_v47 = vld [vmem:[%s3275_s0 + $0xc8] sm:$0xff] }
0x33d6   :  { %1432 = vrot.lane.b32.xlu2 %v1428_v48, %s2801_s2 }
0x3430   :  { %v1433_v50 = vpop.permute.xlu2 %1432 }
0x3431   :  { %2381 = vmatmul.msk.bf16.vlgmr.msrb.gmra.mxu3 %vm49_vm0, %v1433_v50 }
0x3432   :  { %1923 = vmatpush.bf16.msrb.mxu3 %v3133_v51 }
0x3436   :  { %1924 = vmatpush.bf16.msrb.mxu3 %v3019_v42 }
0x34b4   :  { %v1446_v53 = vpop.f32.mrf.mxu3 }
0x34b5   :  { %v1450_v54 = vadd.f32 %v1446_v53, %v1430_v52 }
0x34b7   :  { %2612 = vtanh.f32 %v1450_v54  ;;  %v2382_v56 = vmul.f32 -1.442695, %v1450_v54 }
0x34b9   :  { %2614 = vpow2.f32 %v2382_v56 }
0x34bc   :  { %v1448_v55 = vpop.f32.mrf.mxu3 }
0x34bd   :  { %v2613_v0 = vpop.eup %2612 }
0x34be   :  { %1473 = vrot.lane.b32.xlu0 %v2613_v0, %s2800_s12 }
0x34bf   :  { %v2615_v57 = vpop.eup %2614 }
0x34c0   :  { %v1454_v58 = vadd.f32 1.0, %v2615_v57 }
0x34c2   :  { %2616 = vrcp.f32 %v1454_v58  ;;  %v1466_v63 = vand.u32 2147483648, %v1454_v58  ;;  %vm1460_vm4 = vweird.f32 %v1454_v58  ;;  %v1464_v2 = vand.u32 2147483647, %v1454_v58 }
0x34c4   :  { %v1467_v4 = vor.u32 1.1754944e-38, %v1466_v63  ;;  %vm1465_vm6 = vcmp.eq.f32.partialorder %v1464_v2, 8.507059e+37 }
0x34c8   :  { %v2617_v59 = vpop.eup %2616 }
0x34c9   :  { %v1456_v60 = vmul.f32 %v2617_v59, %v1454_v58  ;;  %vm1461_vm3 = vweird.f32 %v2617_v59 }
0x34ca   :  { %vm1462_vm5 = vmor %vm1460_vm4, %vm1461_vm3 }
0x34cb   :  { %v1457_v61 = vsub.f32 1.0, %v1456_v60 }
0x34cd   :  { %v1458_v42 = vmul.f32 %v2617_v59, %v1457_v61 }
0x34cf   :  { %v1459_v62 = vadd.f32 %v2617_v59, %v1458_v42 }
0x34d1   :  { %v1463_v3 = vsel %vm1462_vm5, %v2617_v59, %v1459_v62 }
0x34d2   :  { %v1468_v6 = vsel %vm1465_vm6, %v1467_v4, %v1463_v3 }
0x34d3   :  { %v1471_v8 = vmul.f32 %v1468_v6, %v1421_v44 }
0x3530   :  { %v1474_v5 = vpop.permute.xlu0 %1473 }
0x3531   :  { %v1476_v7 = vmul.f32 %v1474_v5, %v1468_v6 }
0x3533   :  { %1478 = vrot.lane.b32.xlu1 %v1476_v7, %s2800_s12 }
0x35a5   :  { %v1479_v9 = vpop.permute.xlu1 %1478 }
0x35a6   :  { %v1481_v10 = vadd.f32 %v1479_v9, %v1471_v8 }
0x35a8   :  { %2618 = vtanh.f32 %v1481_v10 }
0x35ae   :  { %v2619_v11 = vpop.eup %2618 }
0x35af   :  { %1484 = vrot.lane.b32.xlu2 %v2619_v11, %s2800_s12 }
0x3609   :  { %v1485_v12 = vpop.permute.xlu2 %1484 }
0x360a   :  { %v1487_v14 = vmul.f32 %v1485_v12, %v1468_v6 }
0x360c   :  { %v1488_v15 = vpack.c.bf16 %v1487_v14, %v1487_v14  ;;  %v1489_v16 = vadd.f32 %v1487_v14, %v1429_v49  ;;  %v1610_v14 = vld [vmem:[%s3275_s0 + $0xd0] sm:$0xff] }
0x360e   :  { %1492 = vrot.lane.b32.xlu0 %v1488_v15, %s2801_s2 }
0x3680   :  { %v1493_v17 = vpop.permute.xlu0 %1492 }
0x3681   :  { %2383 = vmatmul.msk.bf16.vlgmr.msra.gmra.mxu0 %vm49_vm0, %v1493_v17 }
0x3682   :  { %1983 = vmatpush.bf16.msra.mxu0 %v3133_v51 }
0x3686   :  { %1984 = vmatpush.bf16.msra.mxu0 %v3149_v18 }
0x36fe   :  { %v1506_v20 = vpop.f32.mrf.mxu0 }
0x36ff   :  { %v1510_v21 = vadd.f32 %v1506_v20, %v1490_v19 }
0x3701   :  { %2620 = vtanh.f32 %v1510_v21  ;;  %v2384_v24 = vmul.f32 -1.442695, %v1510_v21 }
0x3703   :  { %2622 = vpow2.f32 %v2384_v24 }
0x3706   :  { %v1508_v22 = vpop.f32.mrf.mxu0 }
0x3707   :  { %v2621_v23 = vpop.eup %2620 }
0x3708   :  { %1533 = vrot.lane.b32.xlu1 %v2621_v23, %s2800_s12 }
0x3709   :  { %v2623_v1 = vpop.eup %2622 }
0x370a   :  { %v1514_v25 = vadd.f32 1.0, %v2623_v1 }
0x370c   :  { %2624 = vrcp.f32 %v1514_v25  ;;  %v1526_v13 = vand.u32 2147483648, %v1514_v25  ;;  %vm1520_vm8 = vweird.f32 %v1514_v25  ;;  %v1524_v32 = vand.u32 2147483647, %v1514_v25 }
0x370e   :  { %v1527_v31 = vor.u32 1.1754944e-38, %v1526_v13  ;;  %vm1525_vm10 = vcmp.eq.f32.partialorder %v1524_v32, 8.507059e+37 }
0x3712   :  { %v2625_v26 = vpop.eup %2624 }
0x3713   :  { %v1516_v27 = vmul.f32 %v2625_v26, %v1514_v25  ;;  %vm1521_vm7 = vweird.f32 %v2625_v26 }
0x3714   :  { %vm1522_vm9 = vmor %vm1520_vm8, %vm1521_vm7 }
0x3715   :  { %v1517_v28 = vsub.f32 1.0, %v1516_v27 }
0x3717   :  { %v1518_v29 = vmul.f32 %v2625_v26, %v1517_v28 }
0x3719   :  { %v1519_v30 = vadd.f32 %v2625_v26, %v1518_v29 }
0x371b   :  { %v1523_v33 = vsel %vm1522_vm9, %v2625_v26, %v1519_v30 }
0x371c   :  { %v1528_v35 = vsel %vm1525_vm10, %v1527_v31, %v1523_v33 }
0x371d   :  { %v1531_v37 = vmul.f32 %v1528_v35, %v1481_v10 }
0x377a   :  { %v1534_v34 = vpop.permute.xlu1 %1533 }
0x377b   :  { %v1536_v36 = vmul.f32 %v1534_v34, %v1528_v35 }
0x377d   :  { %1538 = vrot.lane.b32.xlu2 %v1536_v36, %s2800_s12 }
0x37d7   :  { %v1539_v38 = vpop.permute.xlu2 %1538 }
0x37d8   :  { %v1541_v39 = vadd.f32 %v1539_v38, %v1531_v37 }
0x37da   :  { %2626 = vtanh.f32 %v1541_v39 }
0x37e0   :  { %v2627_v40 = vpop.eup %2626 }
0x37e1   :  { %1544 = vrot.lane.b32.xlu0 %v2627_v40, %s2800_s12 }
0x3853   :  { %v1545_v41 = vpop.permute.xlu0 %1544 }
0x3854   :  { %v1547_v43 = vmul.f32 %v1545_v41, %v1528_v35 }
0x3856   :  { %v1548_v44 = vpack.c.bf16 %v1547_v43, %v1547_v43  ;;  %v1549_v45 = vadd.f32 %v1547_v43, %v1489_v16  ;;  %v1670_v43 = vld [vmem:[%s3275_s0 + $0xd8] sm:$0xff] }
0x3858   :  { %1552 = vrot.lane.b32.xlu1 %v1548_v44, %s2801_s2 }
0x38ca   :  { %v1553_v46 = vpop.permute.xlu1 %1552 }
0x38cb   :  { %2385 = vmatmul.msk.bf16.vlgmr.msra.gmra.mxu1 %vm49_vm0, %v1553_v46 }
0x38cc   :  { %2043 = vmatpush.bf16.msra.mxu1 %v3133_v51 }
0x38d0   :  { %2044 = vmatpush.bf16.msra.mxu1 %v3149_v18 }
0x3948   :  { %v1566_v48 = vpop.f32.mrf.mxu1 }
0x3949   :  { %v1570_v49 = vadd.f32 %v1566_v48, %v1550_v47 }
0x394b   :  { %2628 = vtanh.f32 %v1570_v49  ;;  %v2386_v53 = vmul.f32 -1.442695, %v1570_v49 }
0x394d   :  { %2630 = vpow2.f32 %v2386_v53 }
0x3950   :  { %v1568_v50 = vpop.f32.mrf.mxu1 }
0x3951   :  { %v2629_v52 = vpop.eup %2628 }
0x3952   :  { %1593 = vrot.lane.b32.xlu2 %v2629_v52, %s2800_s12 }
0x3953   :  { %v2631_v54 = vpop.eup %2630 }
0x3954   :  { %v1574_v55 = vadd.f32 1.0, %v2631_v54 }
0x3956   :  { %2632 = vrcp.f32 %v1574_v55  ;;  %v1586_v60 = vand.u32 2147483648, %v1574_v55  ;;  %vm1580_vm12 = vweird.f32 %v1574_v55  ;;  %v1584_v61 = vand.u32 2147483647, %v1574_v55 }
0x3958   :  { %v1587_v62 = vor.u32 1.1754944e-38, %v1586_v60  ;;  %vm1585_vm14 = vcmp.eq.f32.partialorder %v1584_v61, 8.507059e+37 }
0x395c   :  { %v2633_v0 = vpop.eup %2632 }
0x395d   :  { %v1576_v56 = vmul.f32 %v2633_v0, %v1574_v55  ;;  %vm1581_vm11 = vweird.f32 %v2633_v0 }
0x395e   :  { %vm1582_vm13 = vmor %vm1580_vm12, %vm1581_vm11 }
0x395f   :  { %v1577_v57 = vsub.f32 1.0, %v1576_v56 }
0x3961   :  { %v1578_v58 = vmul.f32 %v2633_v0, %v1577_v57 }
0x3963   :  { %v1579_v59 = vadd.f32 %v2633_v0, %v1578_v58 }
0x3965   :  { %v1583_v42 = vsel %vm1582_vm13, %v2633_v0, %v1579_v59 }
0x3966   :  { %v1588_v2 = vsel %vm1585_vm14, %v1587_v62, %v1583_v42 }
0x3967   :  { %v1591_v4 = vmul.f32 %v1588_v2, %v1541_v39 }
0x39ac   :  { %v1594_v63 = vpop.permute.xlu2 %1593 }
0x39ad   :  { %v1596_v3 = vmul.f32 %v1594_v63, %v1588_v2 }
0x39af   :  { %1598 = vrot.lane.b32.xlu0 %v1596_v3, %s2800_s12 }
0x3a21   :  { %v1599_v5 = vpop.permute.xlu0 %1598 }
0x3a22   :  { %v1601_v6 = vadd.f32 %v1599_v5, %v1591_v4 }
0x3a24   :  { %2634 = vtanh.f32 %v1601_v6 }
0x3a2a   :  { %v2635_v7 = vpop.eup %2634 }
0x3a2b   :  { %1604 = vrot.lane.b32.xlu1 %v2635_v7, %s2800_s12  ;;  %v1730_v7 = vld [vmem:[%s3275_s0 + $0xe0] sm:$0xff] }
0x3a9d   :  { %v1605_v8 = vpop.permute.xlu1 %1604 }
0x3a9e   :  { %v1607_v9 = vmul.f32 %v1605_v8, %v1588_v2 }
0x3aa0   :  { %v1608_v10 = vpack.c.bf16 %v1607_v9, %v1607_v9  ;;  %v1609_v11 = vadd.f32 %v1607_v9, %v1549_v45 }
0x3aa2   :  { %1612 = vrot.lane.b32.xlu2 %v1608_v10, %s2801_s2 }
0x3afc   :  { %v1613_v12 = vpop.permute.xlu2 %1612 }
0x3afd   :  { %2387 = vmatmul.msk.bf16.vlgmr.msra.gmra.mxu2 %vm49_vm0, %v1613_v12 }
0x3afe   :  { %2103 = vmatpush.bf16.msra.mxu2 %v3133_v51 }
0x3b02   :  { %2104 = vmatpush.bf16.msra.mxu2 %v3149_v18 }
0x3b80   :  { %v1626_v15 = vpop.f32.mrf.mxu2 }
0x3b81   :  { %v1630_v16 = vadd.f32 %v1626_v15, %v1610_v14 }
0x3b83   :  { %2636 = vtanh.f32 %v1630_v16  ;;  %v2388_v20 = vmul.f32 -1.442695, %v1630_v16 }
0x3b85   :  { %2638 = vpow2.f32 %v2388_v20 }
0x3b88   :  { %v1628_v17 = vpop.f32.mrf.mxu2 }
0x3b89   :  { %v2637_v19 = vpop.eup %2636 }
0x3b8a   :  { %1653 = vrot.lane.b32.xlu0 %v2637_v19, %s2800_s12 }
0x3b8b   :  { %v2639_v21 = vpop.eup %2638 }
0x3b8c   :  { %v1634_v22 = vadd.f32 1.0, %v2639_v21 }
0x3b8e   :  { %2640 = vrcp.f32 %v1634_v22  ;;  %v1646_v27 = vand.u32 2147483648, %v1634_v22  ;;  %vm1640_vm1 = vweird.f32 %v1634_v22  ;;  %v1644_v28 = vand.u32 2147483647, %v1634_v22 }
0x3b90   :  { %v1647_v30 = vor.u32 1.1754944e-38, %v1646_v27  ;;  %vm1645_vm3 = vcmp.eq.f32.partialorder %v1644_v28, 8.507059e+37 }
0x3b94   :  { %v2641_v23 = vpop.eup %2640 }
0x3b95   :  { %v1636_v24 = vmul.f32 %v2641_v23, %v1634_v22  ;;  %vm1641_vm15 = vweird.f32 %v2641_v23 }
0x3b96   :  { %vm1642_vm2 = vmor %vm1640_vm1, %vm1641_vm15 }
0x3b97   :  { %v1637_v1 = vsub.f32 1.0, %v1636_v24 }
0x3b99   :  { %v1638_v25 = vmul.f32 %v2641_v23, %v1637_v1 }
0x3b9b   :  { %v1639_v26 = vadd.f32 %v2641_v23, %v1638_v25 }
0x3b9d   :  { %v1643_v29 = vsel %vm1642_vm2, %v2641_v23, %v1639_v26 }
0x3b9e   :  { %v1648_v32 = vsel %vm1645_vm3, %v1647_v30, %v1643_v29 }
0x3b9f   :  { %v1651_v31 = vmul.f32 %v1648_v32, %v1601_v6 }
0x3bfc   :  { %v1654_v13 = vpop.permute.xlu0 %1653 }
0x3bfd   :  { %v1656_v33 = vmul.f32 %v1654_v13, %v1648_v32 }
0x3bff   :  { %1658 = vrot.lane.b32.xlu1 %v1656_v33, %s2800_s12 }
0x3c71   :  { %v1659_v34 = vpop.permute.xlu1 %1658 }
0x3c72   :  { %v1661_v35 = vadd.f32 %v1659_v34, %v1651_v31 }
0x3c74   :  { %2642 = vtanh.f32 %v1661_v35 }
0x3c7a   :  { %v2643_v36 = vpop.eup %2642 }
0x3c7b   :  { %1664 = vrot.lane.b32.xlu2 %v2643_v36, %s2800_s12  ;;  %v1790_v36 = vld [vmem:[%s3275_s0 + $0xe8] sm:$0xff] }
0x3cd5   :  { %v1665_v37 = vpop.permute.xlu2 %1664 }
0x3cd6   :  { %v1667_v38 = vmul.f32 %v1665_v37, %v1648_v32 }
0x3cd8   :  { %v1668_v39 = vpack.c.bf16 %v1667_v38, %v1667_v38  ;;  %v1669_v40 = vadd.f32 %v1667_v38, %v1609_v11 }
0x3cda   :  { %1672 = vrot.lane.b32.xlu0 %v1668_v39, %s2801_s2 }
0x3d4c   :  { %v1673_v41 = vpop.permute.xlu0 %1672 }
0x3d4d   :  { %2389 = vmatmul.msk.bf16.vlgmr.msra.gmra.mxu3 %vm49_vm0, %v1673_v41 }
0x3d4e   :  { %2163 = vmatpush.bf16.msra.mxu3 %v3133_v51 }
0x3d52   :  { %2164 = vmatpush.bf16.msra.mxu3 %v3149_v18 }
0x3dd0   :  { %v1686_v44 = vpop.f32.mrf.mxu3 }
0x3dd1   :  { %v1690_v45 = vadd.f32 %v1686_v44, %v1670_v43 }
0x3dd3   :  { %2644 = vtanh.f32 %v1690_v45  ;;  %v2390_v48 = vmul.f32 -1.442695, %v1690_v45 }
0x3dd5   :  { %2646 = vpow2.f32 %v2390_v48 }
0x3dd8   :  { %v1688_v46 = vpop.f32.mrf.mxu3 }
0x3dd9   :  { %v2645_v47 = vpop.eup %2644 }
0x3dda   :  { %1713 = vrot.lane.b32.xlu1 %v2645_v47, %s2800_s12 }
0x3ddb   :  { %v2647_v49 = vpop.eup %2646 }
0x3ddc   :  { %v1694_v50 = vadd.f32 1.0, %v2647_v49 }
0x3dde   :  { %2648 = vrcp.f32 %v1694_v50  ;;  %v1706_v55 = vand.u32 2147483648, %v1694_v50  ;;  %vm1700_vm5 = vweird.f32 %v1694_v50  ;;  %v1704_v0 = vand.u32 2147483647, %v1694_v50 }
0x3de0   :  { %v1707_v57 = vor.u32 1.1754944e-38, %v1706_v55  ;;  %vm1705_vm7 = vcmp.eq.f32.partialorder %v1704_v0, 8.507059e+37 }
0x3de4   :  { %v2649_v52 = vpop.eup %2648 }
0x3de5   :  { %v1696_v51 = vmul.f32 %v2649_v52, %v1694_v50  ;;  %vm1701_vm4 = vweird.f32 %v2649_v52 }
0x3de6   :  { %vm1702_vm6 = vmor %vm1700_vm5, %vm1701_vm4 }
0x3de7   :  { %v1697_v53 = vsub.f32 1.0, %v1696_v51 }
0x3de9   :  { %v1698_v18 = vmul.f32 %v2649_v52, %v1697_v53 }
0x3deb   :  { %v1699_v54 = vadd.f32 %v2649_v52, %v1698_v18 }
0x3ded   :  { %v1703_v56 = vsel %vm1702_vm6, %v2649_v52, %v1699_v54 }
0x3dee   :  { %v1708_v59 = vsel %vm1705_vm7, %v1707_v57, %v1703_v56 }
0x3def   :  { %v1711_v61 = vmul.f32 %v1708_v59, %v1661_v35 }
0x3e4c   :  { %v1714_v58 = vpop.permute.xlu1 %1713 }
0x3e4d   :  { %v1716_v60 = vmul.f32 %v1714_v58, %v1708_v59 }
0x3e4f   :  { %1718 = vrot.lane.b32.xlu2 %v1716_v60, %s2800_s12 }
0x3ea9   :  { %v1719_v42 = vpop.permute.xlu2 %1718 }
0x3eaa   :  { %v1721_v62 = vadd.f32 %v1719_v42, %v1711_v61 }
0x3eac   :  { %2650 = vtanh.f32 %v1721_v62 }
0x3eb2   :  { %v2651_v63 = vpop.eup %2650 }
0x3eb3   :  { %1724 = vrot.lane.b32.xlu0 %v2651_v63, %s2800_s12  ;;  %v1850_v63 = vld [vmem:[%s3275_s0 + $0xf0] sm:$0xff] }
0x3f25   :  { %v1725_v2 = vpop.permute.xlu0 %1724 }
0x3f26   :  { %v1727_v3 = vmul.f32 %v1725_v2, %v1708_v59 }
0x3f28   :  { %v1728_v4 = vpack.c.bf16 %v1727_v3, %v1727_v3  ;;  %v1729_v5 = vadd.f32 %v1727_v3, %v1669_v40 }
0x3f2a   :  { %1732 = vrot.lane.b32.xlu1 %v1728_v4, %s2801_s2 }
0x3f9c   :  { %v1733_v6 = vpop.permute.xlu1 %1732 }
0x3f9d   :  { %2391 = vmatmul.msk.bf16.vlgmr.msrb.gmra.mxu0 %vm49_vm0, %v1733_v6 }
0x401a   :  { %v1746_v8 = vpop.f32.mrf.mxu0 }
0x401b   :  { %v1750_v9 = vadd.f32 %v1746_v8, %v1730_v7 }
0x401d   :  { %2652 = vtanh.f32 %v1750_v9  ;;  %v2392_v12 = vmul.f32 -1.442695, %v1750_v9 }
0x401f   :  { %2654 = vpow2.f32 %v2392_v12 }
0x4022   :  { %v1748_v10 = vpop.f32.mrf.mxu0 }
0x4023   :  { %v2653_v11 = vpop.eup %2652 }
0x4024   :  { %1773 = vrot.lane.b32.xlu2 %v2653_v11, %s2800_s12 }
0x4025   :  { %v2655_v14 = vpop.eup %2654 }
0x4026   :  { %v1754_v15 = vadd.f32 1.0, %v2655_v14 }
0x4028   :  { %2656 = vrcp.f32 %v1754_v15  ;;  %v1766_v22 = vand.u32 2147483648, %v1754_v15  ;;  %vm1760_vm9 = vweird.f32 %v1754_v15  ;;  %v1764_v23 = vand.u32 2147483647, %v1754_v15 }
0x402a   :  { %v1767_v1 = vor.u32 1.1754944e-38, %v1766_v22  ;;  %vm1765_vm11 = vcmp.eq.f32.partialorder %v1764_v23, 8.507059e+37 }
0x402e   :  { %v2657_v16 = vpop.eup %2656 }
0x402f   :  { %v1756_v17 = vmul.f32 %v2657_v16, %v1754_v15  ;;  %vm1761_vm8 = vweird.f32 %v2657_v16 }
0x4030   :  { %vm1762_vm10 = vmor %vm1760_vm9, %vm1761_vm8 }
0x4031   :  { %v1757_v19 = vsub.f32 1.0, %v1756_v17 }
0x4033   :  { %v1758_v20 = vmul.f32 %v2657_v16, %v1757_v19 }
0x4035   :  { %v1759_v21 = vadd.f32 %v2657_v16, %v1758_v20 }
0x4037   :  { %v1763_v24 = vsel %vm1762_vm10, %v2657_v16, %v1759_v21 }
0x4038   :  { %v1768_v26 = vsel %vm1765_vm11, %v1767_v1, %v1763_v24 }
0x4039   :  { %v1771_v28 = vmul.f32 %v1768_v26, %v1721_v62 }
0x407e   :  { %v1774_v25 = vpop.permute.xlu2 %1773 }
0x407f   :  { %v1776_v27 = vmul.f32 %v1774_v25, %v1768_v26 }
0x4081   :  { %1778 = vrot.lane.b32.xlu0 %v1776_v27, %s2800_s12 }
0x40f3   :  { %v1779_v29 = vpop.permute.xlu0 %1778 }
0x40f4   :  { %v1781_v30 = vadd.f32 %v1779_v29, %v1771_v28 }
0x40f6   :  { %2658 = vtanh.f32 %v1781_v30 }
0x40fc   :  { %v2659_v13 = vpop.eup %2658 }
0x40fd   :  { %1784 = vrot.lane.b32.xlu1 %v2659_v13, %s2800_s12  ;;  %v1910_v13 = vld [vmem:[%s3275_s0 + $0xf8] sm:$0xff] }
0x416f   :  { %v1785_v32 = vpop.permute.xlu1 %1784 }
0x4170   :  { %v1787_v33 = vmul.f32 %v1785_v32, %v1768_v26 }
0x4172   :  { %v1788_v31 = vpack.c.bf16 %v1787_v33, %v1787_v33  ;;  %v1789_v34 = vadd.f32 %v1787_v33, %v1729_v5 }
0x4174   :  { %1792 = vrot.lane.b32.xlu2 %v1788_v31, %s2801_s2 }
0x41ce   :  { %v1793_v35 = vpop.permute.xlu2 %1792 }
0x41cf   :  { %2393 = vmatmul.msk.bf16.vlgmr.msrb.gmra.mxu1 %vm49_vm0, %v1793_v35 }
0x424c   :  { %v1806_v37 = vpop.f32.mrf.mxu1 }
0x424d   :  { %v1810_v38 = vadd.f32 %v1806_v37, %v1790_v36 }
0x424f   :  { %2660 = vtanh.f32 %v1810_v38  ;;  %v2394_v41 = vmul.f32 -1.442695, %v1810_v38 }
0x4251   :  { %2662 = vpow2.f32 %v2394_v41 }
0x4254   :  { %v1808_v39 = vpop.f32.mrf.mxu1 }
0x4255   :  { %v2661_v40 = vpop.eup %2660 }
0x4256   :  { %1833 = vrot.lane.b32.xlu0 %v2661_v40, %s2800_s12 }
0x4257   :  { %v2663_v43 = vpop.eup %2662 }
0x4258   :  { %v1814_v44 = vadd.f32 1.0, %v2663_v43 }
0x425a   :  { %2664 = vrcp.f32 %v1814_v44  ;;  %v1826_v50 = vand.u32 2147483648, %v1814_v44  ;;  %vm1820_vm13 = vweird.f32 %v1814_v44  ;;  %v1824_v52 = vand.u32 2147483647, %v1814_v44 }
0x425c   :  { %v1827_v53 = vor.u32 1.1754944e-38, %v1826_v50  ;;  %vm1825_vm15 = vcmp.eq.f32.partialorder %v1824_v52, 8.507059e+37 }
0x4260   :  { %v2665_v45 = vpop.eup %2664 }
0x4261   :  { %v1816_v46 = vmul.f32 %v2665_v45, %v1814_v44  ;;  %vm1821_vm12 = vweird.f32 %v2665_v45 }
0x4262   :  { %vm1822_vm14 = vmor %vm1820_vm13, %vm1821_vm12 }
0x4263   :  { %v1817_v47 = vsub.f32 1.0, %v1816_v46 }
0x4265   :  { %v1818_v48 = vmul.f32 %v2665_v45, %v1817_v47 }
0x4267   :  { %v1819_v49 = vadd.f32 %v2665_v45, %v1818_v48 }
0x4269   :  { %v1823_v51 = vsel %vm1822_vm14, %v2665_v45, %v1819_v49 }
0x426a   :  { %v1828_v54 = vsel %vm1825_vm15, %v1827_v53, %v1823_v51 }
0x426b   :  { %v1831_v0 = vmul.f32 %v1828_v54, %v1781_v30 }
0x42c8   :  { %v1834_v18 = vpop.permute.xlu0 %1833 }
0x42c9   :  { %v1836_v55 = vmul.f32 %v1834_v18, %v1828_v54 }
0x42cb   :  { %1838 = vrot.lane.b32.xlu1 %v1836_v55, %s2800_s12 }
0x433d   :  { %v1839_v56 = vpop.permute.xlu1 %1838 }
0x433e   :  { %v1841_v57 = vadd.f32 %v1839_v56, %v1831_v0 }
0x4340   :  { %2666 = vtanh.f32 %v1841_v57 }
0x4346   :  { %v2667_v58 = vpop.eup %2666 }
0x4347   :  { %1844 = vrot.lane.b32.xlu2 %v2667_v58, %s2800_s12  ;;  %v1970_v58 = vld [vmem:[%s3275_s0 + $0x100] sm:$0xff] }
0x43a1   :  { %v1845_v59 = vpop.permute.xlu2 %1844 }
0x43a2   :  { %v1847_v60 = vmul.f32 %v1845_v59, %v1828_v54 }
0x43a4   :  { %v1848_v61 = vpack.c.bf16 %v1847_v60, %v1847_v60  ;;  %v1849_v42 = vadd.f32 %v1847_v60, %v1789_v34 }
0x43a6   :  { %1852 = vrot.lane.b32.xlu0 %v1848_v61, %s2801_s2 }
0x4418   :  { %v1853_v62 = vpop.permute.xlu0 %1852 }
0x4419   :  { %2395 = vmatmul.msk.bf16.vlgmr.msrb.gmra.mxu2 %vm49_vm0, %v1853_v62 }
0x449c   :  { %v1866_v2 = vpop.f32.mrf.mxu2 }
0x449d   :  { %v1870_v3 = vadd.f32 %v1866_v2, %v1850_v63 }
0x449f   :  { %2668 = vtanh.f32 %v1870_v3  ;;  %v2396_v6 = vmul.f32 -1.442695, %v1870_v3 }
0x44a1   :  { %2670 = vpow2.f32 %v2396_v6 }
0x44a4   :  { %v1868_v4 = vpop.f32.mrf.mxu2 }
0x44a5   :  { %v2669_v5 = vpop.eup %2668 }
0x44a6   :  { %1893 = vrot.lane.b32.xlu1 %v2669_v5, %s2800_s12 }
0x44a7   :  { %v2671_v7 = vpop.eup %2670 }
0x44a8   :  { %v1874_v8 = vadd.f32 1.0, %v2671_v7 }
0x44aa   :  { %2672 = vrcp.f32 %v1874_v8  ;;  %v1886_v15 = vand.u32 2147483648, %v1874_v8  ;;  %vm1880_vm2 = vweird.f32 %v1874_v8  ;;  %v1884_v16 = vand.u32 2147483647, %v1874_v8 }
0x44ac   :  { %v1887_v19 = vor.u32 1.1754944e-38, %v1886_v15  ;;  %vm1885_vm4 = vcmp.eq.f32.partialorder %v1884_v16, 8.507059e+37 }
0x44b0   :  { %v2673_v9 = vpop.eup %2672 }
0x44b1   :  { %v1876_v10 = vmul.f32 %v2673_v9, %v1874_v8  ;;  %vm1881_vm1 = vweird.f32 %v2673_v9 }
0x44b2   :  { %vm1882_vm3 = vmor %vm1880_vm2, %vm1881_vm1 }
0x44b3   :  { %v1877_v11 = vsub.f32 1.0, %v1876_v10 }
0x44b5   :  { %v1878_v12 = vmul.f32 %v2673_v9, %v1877_v11 }
0x44b7   :  { %v1879_v14 = vadd.f32 %v2673_v9, %v1878_v12 }
0x44b9   :  { %v1883_v17 = vsel %vm1882_vm3, %v2673_v9, %v1879_v14 }
0x44ba   :  { %v1888_v21 = vsel %vm1885_vm4, %v1887_v19, %v1883_v17 }
0x44bb   :  { %v1891_v23 = vmul.f32 %v1888_v21, %v1841_v57 }
0x4518   :  { %v1894_v20 = vpop.permute.xlu1 %1893 }
0x4519   :  { %v1896_v22 = vmul.f32 %v1894_v20, %v1888_v21 }
0x451b   :  { %1898 = vrot.lane.b32.xlu2 %v1896_v22, %s2800_s12 }
0x4575   :  { %v1899_v24 = vpop.permute.xlu2 %1898 }
0x4576   :  { %v1901_v1 = vadd.f32 %v1899_v24, %v1891_v23 }
0x4578   :  { %2674 = vtanh.f32 %v1901_v1 }
0x457e   :  { %v2675_v25 = vpop.eup %2674 }
0x457f   :  { %1904 = vrot.lane.b32.xlu0 %v2675_v25, %s2800_s12  ;;  %v2030_v25 = vld [vmem:[%s3275_s0 + $0x108] sm:$0xff] }
0x45f1   :  { %v1905_v26 = vpop.permute.xlu0 %1904 }
0x45f2   :  { %v1907_v27 = vmul.f32 %v1905_v26, %v1888_v21 }
0x45f4   :  { %v1908_v28 = vpack.c.bf16 %v1907_v27, %v1907_v27  ;;  %v1909_v29 = vadd.f32 %v1907_v27, %v1849_v42 }
0x45f6   :  { %1912 = vrot.lane.b32.xlu1 %v1908_v28, %s2801_s2 }
0x4668   :  { %v1913_v30 = vpop.permute.xlu1 %1912 }
0x4669   :  { %2397 = vmatmul.msk.bf16.vlgmr.msrb.gmra.mxu3 %vm49_vm0, %v1913_v30 }
0x46ec   :  { %v1926_v32 = vpop.f32.mrf.mxu3 }
0x46ed   :  { %v1930_v33 = vadd.f32 %v1926_v32, %v1910_v13 }
0x46ef   :  { %2676 = vtanh.f32 %v1930_v33  ;;  %v2398_v35 = vmul.f32 -1.442695, %v1930_v33 }
0x46f1   :  { %2678 = vpow2.f32 %v2398_v35 }
0x46f4   :  { %v1928_v31 = vpop.f32.mrf.mxu3 }
0x46f5   :  { %v2677_v34 = vpop.eup %2676 }
0x46f6   :  { %1953 = vrot.lane.b32.xlu2 %v2677_v34, %s2800_s12 }
0x46f7   :  { %v2679_v36 = vpop.eup %2678 }
0x46f8   :  { %v1934_v37 = vadd.f32 1.0, %v2679_v36 }
0x46fa   :  { %2680 = vrcp.f32 %v1934_v37  ;;  %v1946_v44 = vand.u32 2147483648, %v1934_v37  ;;  %vm1940_vm6 = vweird.f32 %v1934_v37  ;;  %v1944_v45 = vand.u32 2147483647, %v1934_v37 }
0x46fc   :  { %v1947_v47 = vor.u32 1.1754944e-38, %v1946_v44  ;;  %vm1945_vm8 = vcmp.eq.f32.partialorder %v1944_v45, 8.507059e+37 }
0x4700   :  { %v2681_v38 = vpop.eup %2680 }
0x4701   :  { %v1936_v39 = vmul.f32 %v2681_v38, %v1934_v37  ;;  %vm1941_vm5 = vweird.f32 %v2681_v38 }
0x4702   :  { %vm1942_vm7 = vmor %vm1940_vm6, %vm1941_vm5 }
0x4703   :  { %v1937_v40 = vsub.f32 1.0, %v1936_v39 }
0x4705   :  { %v1938_v41 = vmul.f32 %v2681_v38, %v1937_v40 }
0x4707   :  { %v1939_v43 = vadd.f32 %v2681_v38, %v1938_v41 }
0x4709   :  { %v1943_v46 = vsel %vm1942_vm7, %v2681_v38, %v1939_v43 }
0x470a   :  { %v1948_v49 = vsel %vm1945_vm8, %v1947_v47, %v1943_v46 }
0x470b   :  { %v1951_v52 = vmul.f32 %v1948_v49, %v1901_v1 }
0x4750   :  { %v1954_v48 = vpop.permute.xlu2 %1953 }
0x4751   :  { %v1956_v50 = vmul.f32 %v1954_v48, %v1948_v49 }
0x4753   :  { %1958 = vrot.lane.b32.xlu0 %v1956_v50, %s2800_s12 }
0x47c5   :  { %v1959_v51 = vpop.permute.xlu0 %1958 }
0x47c6   :  { %v1961_v53 = vadd.f32 %v1959_v51, %v1951_v52 }
0x47c8   :  { %2682 = vtanh.f32 %v1961_v53 }
0x47ce   :  { %v2683_v18 = vpop.eup %2682 }
0x47cf   :  { %1964 = vrot.lane.b32.xlu1 %v2683_v18, %s2800_s12  ;;  %v2090_v18 = vld [vmem:[%s3275_s0 + $0x110] sm:$0xff] }
0x4841   :  { %v1965_v54 = vpop.permute.xlu1 %1964 }
0x4842   :  { %v1967_v55 = vmul.f32 %v1965_v54, %v1948_v49 }
0x4844   :  { %v1968_v0 = vpack.c.bf16 %v1967_v55, %v1967_v55  ;;  %v1969_v56 = vadd.f32 %v1967_v55, %v1909_v29 }
0x4846   :  { %1972 = vrot.lane.b32.xlu2 %v1968_v0, %s2801_s2 }
0x48a0   :  { %v1973_v57 = vpop.permute.xlu2 %1972 }
0x48a1   :  { %2399 = vmatmul.msk.bf16.vlgmr.msra.gmra.mxu0 %vm49_vm0, %v1973_v57 }
0x491e   :  { %v1986_v59 = vpop.f32.mrf.mxu0 }
0x491f   :  { %v1990_v60 = vadd.f32 %v1986_v59, %v1970_v58 }
0x4921   :  { %2684 = vtanh.f32 %v1990_v60  ;;  %v2400_v62 = vmul.f32 -1.442695, %v1990_v60 }
0x4923   :  { %2686 = vpow2.f32 %v2400_v62 }
0x4926   :  { %v1988_v61 = vpop.f32.mrf.mxu0 }
0x4927   :  { %v2685_v42 = vpop.eup %2684 }
0x4928   :  { %2013 = vrot.lane.b32.xlu0 %v2685_v42, %s2800_s12 }
0x4929   :  { %v2687_v63 = vpop.eup %2686 }
0x492a   :  { %v1994_v2 = vadd.f32 1.0, %v2687_v63 }
0x492c   :  { %2688 = vrcp.f32 %v1994_v2  ;;  %v2006_v8 = vand.u32 2147483648, %v1994_v2  ;;  %vm2000_vm10 = vweird.f32 %v1994_v2  ;;  %v2004_v9 = vand.u32 2147483647, %v1994_v2 }
0x492e   :  { %v2007_v11 = vor.u32 1.1754944e-38, %v2006_v8  ;;  %vm2005_vm12 = vcmp.eq.f32.partialorder %v2004_v9, 8.507059e+37 }
0x4932   :  { %v2689_v3 = vpop.eup %2688 }
0x4933   :  { %v1996_v4 = vmul.f32 %v2689_v3, %v1994_v2  ;;  %vm2001_vm9 = vweird.f32 %v2689_v3 }
0x4934   :  { %vm2002_vm11 = vmor %vm2000_vm10, %vm2001_vm9 }
0x4935   :  { %v1997_v5 = vsub.f32 1.0, %v1996_v4 }
0x4937   :  { %v1998_v6 = vmul.f32 %v2689_v3, %v1997_v5 }
0x4939   :  { %v1999_v7 = vadd.f32 %v2689_v3, %v1998_v6 }
0x493b   :  { %v2003_v10 = vsel %vm2002_vm11, %v2689_v3, %v1999_v7 }
0x493c   :  { %v2008_v14 = vsel %vm2005_vm12, %v2007_v11, %v2003_v10 }
0x493d   :  { %v2011_v16 = vmul.f32 %v2008_v14, %v1961_v53 }
0x499a   :  { %v2014_v12 = vpop.permute.xlu0 %2013 }
0x499b   :  { %v2016_v15 = vmul.f32 %v2014_v12, %v2008_v14 }
0x499d   :  { %2018 = vrot.lane.b32.xlu1 %v2016_v15, %s2800_s12 }
0x4a0f   :  { %v2019_v17 = vpop.permute.xlu1 %2018 }
0x4a10   :  { %v2021_v19 = vadd.f32 %v2019_v17, %v2011_v16 }
0x4a12   :  { %2690 = vtanh.f32 %v2021_v19 }
0x4a18   :  { %v2691_v20 = vpop.eup %2690 }
0x4a19   :  { %2024 = vrot.lane.b32.xlu2 %v2691_v20, %s2800_s12  ;;  %v2150_v20 = vld [vmem:[%s3275_s0 + $0x118] sm:$0xff]  ;;  %s2802_s0 = smov 96  }
0x4a73   :  { %v2025_v21 = vpop.permute.xlu2 %2024 }
0x4a74   :  { %v2027_v22 = vmul.f32 %v2025_v21, %v2008_v14 }
0x4a76   :  { %v2028_v23 = vpack.c.bf16 %v2027_v22, %v2027_v22  ;;  %v2029_v24 = vadd.f32 %v2027_v22, %v1969_v56 }
0x4a78   :  { %2032 = vrot.lane.b32.xlu0 %v2028_v23, %s2801_s2 }
0x4aea   :  { %v2033_v1 = vpop.permute.xlu0 %2032 }
0x4aeb   :  { %2401 = vmatmul.msk.bf16.vlgmr.msra.gmra.mxu1 %vm49_vm0, %v2033_v1 }
0x4b68   :  { %v2046_v26 = vpop.f32.mrf.mxu1 }
0x4b69   :  { %v2050_v27 = vadd.f32 %v2046_v26, %v2030_v25 }
0x4b6b   :  { %2692 = vtanh.f32 %v2050_v27  ;;  %v2402_v30 = vmul.f32 -1.442695, %v2050_v27 }
0x4b6d   :  { %2694 = vpow2.f32 %v2402_v30 }
0x4b70   :  { %v2048_v28 = vpop.f32.mrf.mxu1 }
0x4b71   :  { %v2693_v29 = vpop.eup %2692 }
0x4b72   :  { %2073 = vrot.lane.b32.xlu1 %v2693_v29, %s2800_s12 }
0x4b73   :  { %v2695_v13 = vpop.eup %2694 }
0x4b74   :  { %v2054_v32 = vadd.f32 1.0, %v2695_v13 }
0x4b76   :  { %2696 = vrcp.f32 %v2054_v32  ;;  %v2066_v37 = vand.u32 2147483648, %v2054_v32  ;;  %vm2060_vm14 = vweird.f32 %v2054_v32  ;;  %v2064_v38 = vand.u32 2147483647, %v2054_v32 }
0x4b78   :  { %v2067_v40 = vor.u32 1.1754944e-38, %v2066_v37  ;;  %vm2065_vm1 = vcmp.eq.f32.partialorder %v2064_v38, 8.507059e+37 }
0x4b7c   :  { %v2697_v33 = vpop.eup %2696 }
0x4b7d   :  { %v2056_v31 = vmul.f32 %v2697_v33, %v2054_v32  ;;  %vm2061_vm13 = vweird.f32 %v2697_v33 }
0x4b7e   :  { %vm2062_vm15 = vmor %vm2060_vm14, %vm2061_vm13 }
0x4b7f   :  { %v2057_v34 = vsub.f32 1.0, %v2056_v31 }
0x4b81   :  { %v2058_v35 = vmul.f32 %v2697_v33, %v2057_v34 }
0x4b83   :  { %v2059_v36 = vadd.f32 %v2697_v33, %v2058_v35 }
0x4b85   :  { %v2063_v39 = vsel %vm2062_vm15, %v2697_v33, %v2059_v36 }
0x4b86   :  { %v2068_v43 = vsel %vm2065_vm1, %v2067_v40, %v2063_v39 }
0x4b87   :  { %v2071_v45 = vmul.f32 %v2068_v43, %v2021_v19 }
0x4be4   :  { %v2074_v41 = vpop.permute.xlu1 %2073 }
0x4be5   :  { %v2076_v44 = vmul.f32 %v2074_v41, %v2068_v43 }
0x4be7   :  { %2078 = vrot.lane.b32.xlu2 %v2076_v44, %s2800_s12  ;;  %v2419_v44 = vld [vmem:[%s3279_s4] sm:$0xff] }
0x4c41   :  { %v2079_v46 = vpop.permute.xlu2 %2078 }
0x4c42   :  { %v2081_v47 = vadd.f32 %v2079_v46, %v2071_v45 }
0x4c44   :  { %2698 = vtanh.f32 %v2081_v47 }
0x4c4a   :  { %v2699_v48 = vpop.eup %2698 }
0x4c4b   :  { %2084 = vrot.lane.b32.xlu0 %v2699_v48, %s2800_s12 }
0x4cbd   :  { %v2085_v49 = vpop.permute.xlu0 %2084 }
0x4cbe   :  { %v2087_v50 = vmul.f32 %v2085_v49, %v2068_v43  ;;  %v2420_v43 = vld [vmem:[%s3279_s4 + $0x8] sm:$0xff] }
0x4cbf   :  { %2243 = vmatpush.bf16.msrb.mxu0 %v2420_v43 }
0x4cc0   :  { %v2088_v52 = vpack.c.bf16 %v2087_v50, %v2087_v50  ;;  %v2089_v51 = vadd.f32 %v2087_v50, %v2029_v24 }
0x4cc2   :  { %2092 = vrot.lane.b32.xlu1 %v2088_v52, %s2801_s2 }
0x4cc3   :  { %2244 = vmatpush.bf16.msrb.mxu0 %v2419_v44 }
0x4d34   :  { %v2093_v53 = vpop.permute.xlu1 %2092 }
0x4d35   :  { %2403 = vmatmul.msk.bf16.vlgmr.msra.gmra.mxu2 %vm49_vm0, %v2093_v53  ;;  %v2427_v53 = vld [vmem:[%s3280_s5] ss:$0 sm:$0xff]  ;;  %s2287_s5 = sshll.u32 %s3281_s6, 4  ;;  %s2288_s5 = int_to_ptr.hbm [resolvable:$true] %s2287_s5 }
0x4db8   :  { %v2106_v54 = vpop.f32.mrf.mxu2 }
0x4db9   :  { %v2110_v55 = vadd.f32 %v2106_v54, %v2090_v18 }
0x4dbb   :  { %2700 = vtanh.f32 %v2110_v55  ;;  %v2404_v57 = vmul.f32 -1.442695, %v2110_v55 }
0x4dbd   :  { %2702 = vpow2.f32 %v2404_v57 }
0x4dc0   :  { %v2108_v0 = vpop.f32.mrf.mxu2 }
0x4dc1   :  { %v2701_v56 = vpop.eup %2700 }
0x4dc2   :  { %2133 = vrot.lane.b32.xlu2 %v2701_v56, %s2800_s12 }
0x4dc3   :  { %v2703_v58 = vpop.eup %2702 }
0x4dc4   :  { %v2114_v59 = vadd.f32 1.0, %v2703_v58 }
0x4dc6   :  { %2704 = vrcp.f32 %v2114_v59  ;;  %v2126_v2 = vand.u32 2147483648, %v2114_v59  ;;  %vm2120_vm3 = vweird.f32 %v2114_v59  ;;  %v2124_v3 = vand.u32 2147483647, %v2114_v59 }
0x4dc8   :  { %v2127_v5 = vor.u32 1.1754944e-38, %v2126_v2  ;;  %vm2125_vm5 = vcmp.eq.f32.partialorder %v2124_v3, 8.507059e+37 }
0x4dcc   :  { %v2705_v60 = vpop.eup %2704 }
0x4dcd   :  { %v2116_v61 = vmul.f32 %v2705_v60, %v2114_v59  ;;  %vm2121_vm2 = vweird.f32 %v2705_v60 }
0x4dce   :  { %vm2122_vm4 = vmor %vm2120_vm3, %vm2121_vm2 }
0x4dcf   :  { %v2117_v42 = vsub.f32 1.0, %v2116_v61 }
0x4dd1   :  { %v2118_v62 = vmul.f32 %v2705_v60, %v2117_v42 }
0x4dd3   :  { %v2119_v63 = vadd.f32 %v2705_v60, %v2118_v62 }
0x4dd5   :  { %v2123_v4 = vsel %vm2122_vm4, %v2705_v60, %v2119_v63 }
0x4dd6   :  { %v2128_v7 = vsel %vm2125_vm5, %v2127_v5, %v2123_v4 }
0x4dd7   :  { %v2131_v9 = vmul.f32 %v2128_v7, %v2081_v47 }
0x4e1c   :  { %v2134_v6 = vpop.permute.xlu2 %2133 }
0x4e1d   :  { %v2136_v8 = vmul.f32 %v2134_v6, %v2128_v7 }
0x4e1f   :  { %2138 = vrot.lane.b32.xlu0 %v2136_v8, %s2800_s12 }
0x4e91   :  { %v2139_v10 = vpop.permute.xlu0 %2138 }
0x4e92   :  { %v2141_v11 = vadd.f32 %v2139_v10, %v2131_v9 }
0x4e94   :  { %2706 = vtanh.f32 %v2141_v11 }
0x4e9a   :  { %v2707_v12 = vpop.eup %2706 }
0x4e9b   :  { %2144 = vrot.lane.b32.xlu1 %v2707_v12, %s2800_s12 }
0x4f0d   :  { %v2145_v14 = vpop.permute.xlu1 %2144 }
0x4f0e   :  { %v2147_v15 = vmul.f32 %v2145_v14, %v2128_v7 }
0x4f10   :  { %v2148_v16 = vpack.c.bf16 %v2147_v15, %v2147_v15  ;;  %v2149_v17 = vadd.f32 %v2147_v15, %v2089_v51 }
0x4f12   :  { %2152 = vrot.lane.b32.xlu2 %v2148_v16, %s2801_s2 }
0x4f6c   :  { %v2153_v19 = vpop.permute.xlu2 %2152 }
0x4f6d   :  { %2405 = vmatmul.msk.bf16.vlgmr.msra.gmra.mxu3 %vm49_vm0, %v2153_v19 }
0x4ff0   :  { %v2166_v21 = vpop.f32.mrf.mxu3 }
0x4ff1   :  { %v2170_v22 = vadd.f32 %v2166_v21, %v2150_v20 }
0x4ff3   :  { %2708 = vtanh.f32 %v2170_v22  ;;  %v2406_v1 = vmul.f32 -1.442695, %v2170_v22 }
0x4ff5   :  { %2710 = vpow2.f32 %v2406_v1 }
0x4ff8   :  { %v2168_v23 = vpop.f32.mrf.mxu3 }
0x4ff9   :  { %v2709_v24 = vpop.eup %2708 }
0x4ffa   :  { %2193 = vrot.lane.b32.xlu0 %v2709_v24, %s2800_s12 }
0x4ffb   :  { %v2711_v25 = vpop.eup %2710 }
0x4ffc   :  { %v2174_v26 = vadd.f32 1.0, %v2711_v25 }
0x4ffe   :  { %2712 = vrcp.f32 %v2174_v26  ;;  %v2186_v32 = vand.u32 2147483648, %v2174_v26  ;;  %vm2180_vm7 = vweird.f32 %v2174_v26  ;;  %v2184_v33 = vand.u32 2147483647, %v2174_v26 }
0x5000   :  { %v2187_v34 = vor.u32 1.1754944e-38, %v2186_v32  ;;  %vm2185_vm9 = vcmp.eq.f32.partialorder %v2184_v33, 8.507059e+37 }
0x5004   :  { %v2713_v27 = vpop.eup %2712 }
0x5005   :  { %v2176_v28 = vmul.f32 %v2713_v27, %v2174_v26  ;;  %vm2181_vm6 = vweird.f32 %v2713_v27 }
0x5006   :  { %vm2182_vm8 = vmor %vm2180_vm7, %vm2181_vm6 }
0x5007   :  { %v2177_v29 = vsub.f32 1.0, %v2176_v28 }
0x5009   :  { %v2178_v30 = vmul.f32 %v2713_v27, %v2177_v29 }
0x500b   :  { %v2179_v13 = vadd.f32 %v2713_v27, %v2178_v30 }
0x500d   :  { %v2183_v31 = vsel %vm2182_vm8, %v2713_v27, %v2179_v13 }
0x500e   :  { %v2188_v36 = vsel %vm2185_vm9, %v2187_v34, %v2183_v31 }
0x500f   :  { %v2191_v38 = vmul.f32 %v2188_v36, %v2141_v11 }
0x506c   :  { %v2194_v35 = vpop.permute.xlu0 %2193 }
0x506d   :  { %v2196_v37 = vmul.f32 %v2194_v35, %v2188_v36 }
0x506f   :  { %2198 = vrot.lane.b32.xlu1 %v2196_v37, %s2800_s12 }
0x50e1   :  { %v2199_v39 = vpop.permute.xlu1 %2198 }
0x50e2   :  { %v2201_v40 = vadd.f32 %v2199_v39, %v2191_v38 }
0x50e4   :  { %2714 = vtanh.f32 %v2201_v40 }
0x50ea   :  { %v2715_v41 = vpop.eup %2714 }
0x50eb   :  { %2204 = vrot.lane.b32.xlu2 %v2715_v41, %s2800_s12 }
0x50f3   :  { %2276 = vrot.lane.b32.xlu2 %v2201_v40, %s2802_s0 }
0x5145   :  { %v2205_v45 = vpop.permute.xlu2 %2204 }
0x5146   :  { %v2207_v46 = vmul.f32 %v2205_v45, %v2188_v36 }
0x5148   :  { %v2208_v47 = vadd.f32 %v2207_v46, %v2149_v17  ;;  %2271 = vrot.lane.b32.xlu1 %v2207_v46, %s2801_s2 }
0x514a   :  { %v2209_v48 = vmul.f32 0.027777778, %v2208_v47 }
0x514c   :  { %v2210_v49 = vpack.c.bf16 %v2209_v48, %v2209_v48 }
0x514d   :  { %v2277_v50 = vpop.permute.xlu2 %2276 }
0x514e   :  { %2279 = vst.msk [vmem:[#allocation6] sm:$0xff] %vm49_vm0, %v2277_v50  ;;  %2220 = vrot.lane.b32.xlu0 %v2210_v49, %s2801_s2  ;;  %s2309_s2 = sshll.u32 %s3283_s8, 4  ;;  %s2285_s8 = sshll.u32 %s2805_s7, 4  ;;  %s2310_s2 = int_to_ptr.hbm [resolvable:$true] %s2309_s2  ;;  %s2286_s8 = int_to_ptr.vmem [resolvable:$true] %s2285_s8 }
0x51ba   :  { %v2272_v52 = vpop.permute.xlu1 %2271 }
0x51bb   :  { %2274 = vst.msk [vmem:[#allocation4] sm:$0xff] %vm49_vm0, %v2272_v52 }
0x51bc   :  { %2301 = dma.vmem_to_hbm [thread:$0]  %s2297_s9, 128, %s2299_s29, [#allocation5]  }
0x51bd   :  { %2312 = dma.vmem_to_hbm [thread:$0]  %s2308_s1, 128, %s2310_s2, [#allocation5]  }
0x51c0   :  { %v2221_v51 = vpop.permute.xlu0 %2220 }
0x51c1   :  { %2415 = vmatmul.msk.bf16.vlgmr.msrb.gmra.mxu0 %vm49_vm0, %v2221_v51 }
0x523e   :  { %v2246_v18 = vpop.f32.mrf.mxu0 }
0x523f   :  { %v2247_v54 = vadd.f32 %v2427_v53, %v2246_v18 }
0x5241   :  { %v2416_v55 = vmul.f32 -1.442695, %v2247_v54 }
0x5243   :  { %2716 = vpow2.f32 %v2416_v55 }
0x5246   :  { %v2248_v0 = vpop.f32.mrf.mxu0 }
0x5249   :  { %v2717_v56 = vpop.eup %2716 }
0x524a   :  { %v2253_v57 = vadd.f32 1.0, %v2717_v56 }
0x524c   :  { %2718 = vrcp.f32 %v2253_v57  ;;  %v2265_v61 = vand.u32 2147483648, %v2253_v57  ;;  %v2263_v62 = vand.u32 2147483647, %v2253_v57  ;;  %vm2259_vm10 = vweird.f32 %v2253_v57 }
0x524e   :  { %v2266_v2 = vor.u32 1.1754944e-38, %v2265_v61  ;;  %vm2264_vm12 = vcmp.eq.f32.partialorder %v2263_v62, 8.507059e+37 }
0x5252   :  { %v2719_v58 = vpop.eup %2718 }
0x5253   :  { %v2255_v59 = vmul.f32 %v2719_v58, %v2253_v57  ;;  %vm2260_vm0 = vweird.f32 %v2719_v58 }
0x5254   :  { %vm2261_vm11 = vmor %vm2259_vm10, %vm2260_vm0 }
0x5255   :  { %v2256_v60 = vsub.f32 1.0, %v2255_v59 }
0x5257   :  { %v2257_v42 = vmul.f32 %v2719_v58, %v2256_v60 }
0x5259   :  { %v2258_v63 = vadd.f32 %v2719_v58, %v2257_v42 }
0x525b   :  { %v2262_v3 = vsel %vm2261_vm11, %v2719_v58, %v2258_v63 }
0x525c   :  { %v2267_v4 = vsel %vm2264_vm12, %v2266_v2, %v2262_v3 }
0x525d   :  { %2269 = vst [vmem:[#allocation2] sm:$0xff] %v2267_v4 }
0x525e   :  { %2290 = dma.vmem_to_hbm [thread:$0]  %s2286_s8, 128, %s2288_s5, [#allocation3]  }
0x525f   :  { %2796 = dma.done.wait [#allocation3], 128  }
0x5260   :  { %2797 = vsyncadd [#allocation3], 4294967168 }
0x5261   :  { %2798 = dma.done.wait [#allocation5], 256  }
0x5262   :  { %2799 = vsyncadd [#allocation5], 4294967040 }
0x5263   :  { %2325 = vsyncpa [#allocation3], 1 }
0x5264   :  { %2326 = vsyncpa [#allocation5], 1 }

</bundles_post_ra>
